<compile_context>
chip_gen: v6e
topology: v6e:2x2x1
jax: 0.10.0
libtpu: 0.0.40
codegen_flags: <defaults>
</compile_context>

<pallas_src>
import math

import jax
import jax.numpy as jnp
import numpy as np
from jax import lax
from jax.experimental import pallas as pl
from jax.experimental.pallas import tpu as pltpu

# ---- problem sizes (d_model / ffn dims fixed by the module) ----
S = 8                    # sequence length
B = 2                    # batch
D = 512                  # d_model
NHEAD = 2
HEAD_DIM = D // NHEAD    # 256
DFF = 1024               # dim_feedforward
NLAYERS = 3
N_DIM = 16               # n_dim
N_CTX = 8                # opts.n_ctx
OUT = N_DIM * N_CTX      # 128
BS = B * S               # 16 activation rows (2 full sublane groups)

LR_MUL = 0.01
EQ_SCALE = (1.0 / math.sqrt(D)) * LR_MUL     # EqualLinear weight scale
LRELU_SLOPE = 0.2
LRELU_SCALE = math.sqrt(2.0)                 # fused_leaky_relu scale
LN_EPS = 1e-5
PN_EPS = 1e-8


def _linear_bf16(x, w, b):
    """F.linear with bf16 operands on the MXU and f32 accumulation.
    x:(N,in) f32, w:(out,in) bf16 (streamed), b:(1,out) f32."""
    y = lax.dot_general(x.astype(jnp.bfloat16), w, (((1,), (1,)), ((), ())),
                        preferred_element_type=jnp.float32)
    return y + b


def _layernorm(x, w, b):
    mu = jnp.mean(x, axis=-1, keepdims=True)
    xc = x - mu
    var = jnp.mean(xc * xc, axis=-1, keepdims=True)
    return xc * lax.rsqrt(var + LN_EPS) * w + b


def mapper_kernel(x_ref,
                  w_in_ref, b_in_ref, w_out_ref, b_out_ref,
                  ln1_w_ref, ln1_b_ref,
                  w_ff1_ref, b_ff1_ref, w_ff2_ref, b_ff2_ref,
                  ln2_w_ref, ln2_b_ref,
                  w_fin_ref, b_fin_ref,
                  out_ref,
                  h_ref):
    i = pl.program_id(0)
    nl = pl.num_programs(0)

    # -------- step 0: load the (PixelNorm'ed, batch-major flattened) input ---
    @pl.when(i == 0)
    def _():
        h_ref[...] = x_ref[...]

    # -------- transformer encoder layer `i` (post-norm; dropout == identity) -
    xf = h_ref[...]                                     # (BS, D) f32

    # self attention: fused qkv projection (bf16 weights, f32 acc)
    qkv = _linear_bf16(xf, w_in_ref[0], b_in_ref[0])    # (BS, 3D)
    scale = 1.0 / math.sqrt(HEAD_DIM)
    q = qkv[:, :D] * scale
    k = qkv[:, D:2 * D]
    v = qkv[:, 2 * D:]

    def split_heads(t):
        # (BS, D) -> (B*NHEAD, S, HEAD_DIM); all slices are 8-row / 256-lane
        # aligned blocks, so this is a cheap layout copy.
        return jnp.stack(
            [t[b * S:(b + 1) * S, h * HEAD_DIM:(h + 1) * HEAD_DIM]
             for b in range(B) for h in range(NHEAD)], axis=0)

    qh, kh, vh = split_heads(q), split_heads(k), split_heads(v)

    # batched scores / softmax / PV  (one MXU issue each, one EUP recip)
    s = lax.dot_general(qh, kh, (((2,), (2,)), ((0,), (0,))),
                        preferred_element_type=jnp.float32)       # (B*H, S, S)
    s = s - jnp.max(s, axis=-1, keepdims=True)
    p = jnp.exp(s)
    p = p * pl.reciprocal(jnp.sum(p, axis=-1, keepdims=True), approx=True)
    o = lax.dot_general(p, vh, (((2,), (1,)), ((0,), (0,))),
                        preferred_element_type=jnp.float32)       # (B*H, S, HD)

    # reassemble heads in registers (no VMEM scratch, no masked stores)
    attn = jnp.concatenate(
        [jnp.concatenate([o[b * NHEAD + h] for h in range(NHEAD)], axis=-1)
         for b in range(B)], axis=0)                               # (BS, D)
    attn = _linear_bf16(attn, w_out_ref[0], b_out_ref[0])

    x1 = _layernorm(xf + attn, ln1_w_ref[0], ln1_b_ref[0])

    # feed-forward (relu activation, PyTorch default)
    ff = _linear_bf16(x1, w_ff1_ref[0], b_ff1_ref[0])
    ff = jnp.maximum(ff, 0.0)
    ff = _linear_bf16(ff, w_ff2_ref[0], b_ff2_ref[0])
    x2 = _layernorm(x1 + ff, ln2_w_ref[0], ln2_b_ref[0])

    h_ref[...] = x2

    # -------- last step: EqualLinear(512 -> OUT, lr_mul=0.01) + fused lrelu --
    @pl.when(i == nl - 1)
    def _():
        w = w_fin_ref[...] * EQ_SCALE                              # (OUT, D) f32
        oo = lax.dot_general(x2, w, (((1,), (1,)), ((), ())),
                             preferred_element_type=jnp.float32)
        oo = oo + b_fin_ref[...] * LR_MUL
        out_ref[...] = jnp.where(oo >= 0.0, oo, LRELU_SLOPE * oo) * LRELU_SCALE


def transformer_mapper(x, params):
    (w_in, b_in, w_out, b_out, ln1_w, ln1_b,
     w_ff1, b_ff1, w_ff2, b_ff2, ln2_w, ln2_b, w_fin, b_fin) = params

    # PixelNorm over dim=1 (exactly as nn.Sequential applies it to the (S,B,D)
    # input), hoisted to XLA: 32 KiB of data, and it keeps the kernel on a
    # clean (16, 512) tile-native layout.
    xn = x * lax.rsqrt(jnp.mean(x * x, axis=1, keepdims=True) + PN_EPS)
    xf = jnp.transpose(xn, (1, 0, 2)).reshape(BS, D)   # batch-major (BS, D)

    # Stream the four large per-layer matrices in bf16 (halves HBM traffic,
    # which is the wall clock); f32 accumulation happens inside the kernel.
    w_in_b = w_in.astype(jnp.bfloat16)
    w_out_b = w_out.astype(jnp.bfloat16)
    w_ff1_b = w_ff1.astype(jnp.bfloat16)
    w_ff2_b = w_ff2.astype(jnp.bfloat16)

    def per_layer(arr):
        # stacked (L, d1, d2) params: stream one layer slice per grid step
        # (default double buffering is enough — weight DMA is the bottleneck).
        return pl.BlockSpec((1,) + arr.shape[1:], lambda i: (i, 0, 0))

    grid_spec = pltpu.PrefetchScalarGridSpec(
        num_scalar_prefetch=0,
        grid=(NLAYERS,),
        in_specs=[
            pl.BlockSpec((BS, D), lambda i: (0, 0)),       # x (resident)
            per_layer(w_in_b), per_layer(b_in),
            per_layer(w_out_b), per_layer(b_out),
            per_layer(ln1_w), per_layer(ln1_b),
            per_layer(w_ff1_b), per_layer(b_ff1),
            per_layer(w_ff2_b), per_layer(b_ff2),
            per_layer(ln2_w), per_layer(ln2_b),
            pl.BlockSpec((OUT, D), lambda i: (0, 0)),      # final weight (resident)
            pl.BlockSpec((1, OUT), lambda i: (0, 0)),      # final bias
        ],
        out_specs=pl.BlockSpec((BS, OUT), lambda i: (0, 0)),
        scratch_shapes=[
            pltpu.VMEM((BS, D), jnp.float32),   # hidden state across layers
        ],
    )
    y = pl.pallas_call(
        mapper_kernel,
        out_shape=jax.ShapeDtypeStruct((BS, OUT), jnp.float32),
        grid_spec=grid_spec,
        compiler_params=pltpu.CompilerParams(
            dimension_semantics=("arbitrary",),
            vmem_limit_bytes=32 * 1024 * 1024),   # fits v7x's 64 MiB VMEM
    )(xf, w_in_b, b_in, w_out_b, b_out, ln1_w, ln1_b,
      w_ff1_b, b_ff1, w_ff2_b, b_ff2, ln2_w, ln2_b, w_fin, b_fin)

    # back to the module's (S, B, n_dim * n_ctx) output layout
    return jnp.transpose(y.reshape(B, S, OUT), (1, 0, 2))


# ----------------------------- pure-JAX reference -----------------------------
# Mirrors the kernel's precision policy (the four streamed matrices applied in
# bf16 with f32 accumulation, everything else f32) so the comparison isolates
# kernel-structure errors from the intended bf16 weight-streaming rounding.
def reference(x, params):
    (w_in, b_in, w_out, b_out, ln1_w, ln1_b,
     w_ff1, b_ff1, w_ff2, b_ff2, ln2_w, ln2_b, w_fin, b_fin) = params

    def ln(t, w, b):
        mu = jnp.mean(t, axis=-1, keepdims=True)
        tc = t - mu
        var = jnp.mean(tc * tc, axis=-1, keepdims=True)
        return tc * lax.rsqrt(var + LN_EPS) * w + b

    def lin_bf16(t, w, b):
        y = jnp.dot(t.astype(jnp.bfloat16), w.astype(jnp.bfloat16).T,
                    preferred_element_type=jnp.float32)
        return y + b

    h = x * lax.rsqrt(jnp.mean(x * x, axis=1, keepdims=True) + PN_EPS)
    for l in range(NLAYERS):
        xf = h.reshape(S * B, D)
        qkv = lin_bf16(xf, w_in[l], b_in[l])
        qkv = qkv.reshape(S, B, 3, NHEAD, HEAD_DIM)
        q, k, v = qkv[:, :, 0], qkv[:, :, 1], qkv[:, :, 2]      # (S,B,H,Hd)
        s = jnp.einsum('qbhd,kbhd->bhqk', q, k) / math.sqrt(HEAD_DIM)
        p = jax.nn.softmax(s, axis=-1)
        a = jnp.einsum('bhqk,kbhd->qbhd', p, v).reshape(S * B, D)
        a = lin_bf16(a, w_out[l], b_out[l])
        x1 = ln(xf + a, ln1_w[l], ln1_b[l])
        ff = jnp.maximum(lin_bf16(x1, w_ff1[l], b_ff1[l]), 0.0)
        ff = lin_bf16(ff, w_ff2[l], b_ff2[l])
        h = ln(x1 + ff, ln2_w[l], ln2_b[l]).reshape(S, B, D)
    o = h.reshape(S * B, D) @ (w_fin * EQ_SCALE).T + b_fin * LR_MUL
    o = jnp.where(o >= 0.0, o, LRELU_SLOPE * o) * LRELU_SCALE
    return o.reshape(S, B, OUT)


# ----------------------------------- main --------------------------------------
if __name__ == "__main__":
    key = jax.random.PRNGKey(0)
    ks = jax.random.split(key, 16)

    def rn(k, shape, scale):
        return scale * jax.random.normal(k, shape, jnp.float32)

    L = NLAYERS
    params = (
        rn(ks[0], (L, 3 * D, D), 0.05),          # in_proj_weight
        rn(ks[1], (L, 1, 3 * D), 0.02),          # in_proj_bias
        rn(ks[2], (L, D, D), 0.05),              # out_proj.weight
        rn(ks[3], (L, 1, D), 0.02),              # out_proj.bias
        jnp.ones((L, 1, D), jnp.float32),        # norm1.weight
        jnp.zeros((L, 1, D), jnp.float32),       # norm1.bias
        rn(ks[4], (L, DFF, D), 0.05),            # linear1.weight
        rn(ks[5], (L, 1, DFF), 0.02),            # linear1.bias
        rn(ks[6], (L, D, DFF), 0.05),            # linear2.weight
        rn(ks[7], (L, 1, D), 0.02),              # linear2.bias
        jnp.ones((L, 1, D), jnp.float32),        # norm2.weight
        jnp.zeros((L, 1, D), jnp.float32),       # norm2.bias
        jax.random.normal(ks[8], (OUT, D), jnp.float32) / LR_MUL,  # EqualLinear.weight
        jnp.zeros((1, OUT), jnp.float32),        # EqualLinear.bias (bias_init=0)
    )

    x = jax.random.normal(ks[9], (S, B, D), jnp.float32)

    run = jax.jit(transformer_mapper)
    y = jax.block_until_ready(run(x, params))

    y_ref = jax.block_until_ready(reference(x, params))
    np.testing.assert_allclose(np.asarray(y), np.asarray(y_ref),
                               rtol=2e-2, atol=2e-2)

    print("KERNEL_OK")
</pallas_src>

<mosaic_0001>
module attributes {stable_mosaic.version = 11 : i64} {
  func.func @mapper_kernel(%arg0: i32, %arg1: memref<16x512xf32, #tpu.memory_space<vmem>>, %arg2: memref<1x1536x512xbf16, #tpu.memory_space<vmem>>, %arg3: memref<1x1x1536xf32, #tpu.memory_space<vmem>>, %arg4: memref<1x512x512xbf16, #tpu.memory_space<vmem>>, %arg5: memref<1x1x512xf32, #tpu.memory_space<vmem>>, %arg6: memref<1x1x512xf32, #tpu.memory_space<vmem>>, %arg7: memref<1x1x512xf32, #tpu.memory_space<vmem>>, %arg8: memref<1x1024x512xbf16, #tpu.memory_space<vmem>>, %arg9: memref<1x1x1024xf32, #tpu.memory_space<vmem>>, %arg10: memref<1x512x1024xbf16, #tpu.memory_space<vmem>>, %arg11: memref<1x1x512xf32, #tpu.memory_space<vmem>>, %arg12: memref<1x1x512xf32, #tpu.memory_space<vmem>>, %arg13: memref<1x1x512xf32, #tpu.memory_space<vmem>>, %arg14: memref<128x512xf32, #tpu.memory_space<vmem>>, %arg15: memref<1x128xf32, #tpu.memory_space<vmem>>, %arg16: memref<16x128xf32, #tpu.memory_space<vmem>>, %arg17: memref<16x512xf32, #tpu.memory_space<vmem>>) attributes {dimension_semantics = [#tpu.dimension_semantics<arbitrary>], iteration_bounds = array<i64: 3>, scalar_prefetch = 0 : i64, scratch_operands = 1 : i64, tpu.core_type = #tpu.core_type<tc>, window_params = [{pipeline_mode = #tpu.pipeline_mode<synchronous>, transform_indices = @transform_0, window_bounds = array<i64: 16, 512>}, {transform_indices = @transform_1, window_bounds = array<i64: 1, 1536, 512>}, {transform_indices = @transform_2, window_bounds = array<i64: 1, 1, 1536>}, {transform_indices = @transform_3, window_bounds = array<i64: 1, 512, 512>}, {transform_indices = @transform_4, window_bounds = array<i64: 1, 1, 512>}, {transform_indices = @transform_5, window_bounds = array<i64: 1, 1, 512>}, {transform_indices = @transform_6, window_bounds = array<i64: 1, 1, 512>}, {transform_indices = @transform_7, window_bounds = array<i64: 1, 1024, 512>}, {transform_indices = @transform_8, window_bounds = array<i64: 1, 1, 1024>}, {transform_indices = @transform_9, window_bounds = array<i64: 1, 512, 1024>}, {transform_indices = @transform_10, window_bounds = array<i64: 1, 1, 512>}, {transform_indices = @transform_11, window_bounds = array<i64: 1, 1, 512>}, {transform_indices = @transform_12, window_bounds = array<i64: 1, 1, 512>}, {pipeline_mode = #tpu.pipeline_mode<synchronous>, transform_indices = @transform_13, window_bounds = array<i64: 128, 512>}, {pipeline_mode = #tpu.pipeline_mode<synchronous>, transform_indices = @transform_14, window_bounds = array<i64: 1, 128>}, {pipeline_mode = #tpu.pipeline_mode<synchronous>, transform_indices = @transform_15, window_bounds = array<i64: 16, 128>}]} {
    %c0_i32 = arith.constant 0 : i32
    %0 = arith.cmpi eq, %arg0, %c0_i32 : i32
    %1 = arith.extui %0 : i1 to i32
    %c0_i32_0 = arith.constant 0 : i32
    %2 = arith.cmpi ne, %1, %c0_i32_0 : i32
    scf.if %2 {
      %c0_60 = arith.constant 0 : index
      %c0_61 = arith.constant 0 : index
      %147 = vector.load %arg1[%c0_60, %c0_61] : memref<16x512xf32, #tpu.memory_space<vmem>>, vector<16x512xf32>
      %c0_62 = arith.constant 0 : index
      %c0_63 = arith.constant 0 : index
      %148 = vector.load %arg17[%c0_62, %c0_63] : memref<16x512xf32, #tpu.memory_space<vmem>>, vector<16x512xf32>
      tpu.vector_store %arg17[%c0_62, %c0_63], %147 {strides = array<i32>} : memref<16x512xf32, #tpu.memory_space<vmem>>, vector<16x512xf32>,
    } else {
    }
    %c0 = arith.constant 0 : index
    %c0_1 = arith.constant 0 : index
    %3 = vector.load %arg17[%c0, %c0_1] : memref<16x512xf32, #tpu.memory_space<vmem>>, vector<16x512xf32>
    %c0_2 = arith.constant 0 : index
    %c0_3 = arith.constant 0 : index
    %c0_4 = arith.constant 0 : index
    %4 = vector.load %arg2[%c0_2, %c0_3, %c0_4] : memref<1x1536x512xbf16, #tpu.memory_space<vmem>>, vector<1x1536x512xbf16>
    %5 = vector.shape_cast %4 : vector<1x1536x512xbf16> to vector<1536x512xbf16>
    %c0_5 = arith.constant 0 : index
    %c0_6 = arith.constant 0 : index
    %c0_7 = arith.constant 0 : index
    %6 = vector.load %arg3[%c0_5, %c0_6, %c0_7] : memref<1x1x1536xf32, #tpu.memory_space<vmem>>, vector<1x1x1536xf32>
    %7 = vector.shape_cast %6 : vector<1x1x1536xf32> to vector<1x1536xf32>
    %8 = arith.truncf %3 : vector<16x512xf32> to vector<16x512xbf16>
    %cst = arith.constant dense<0.000000e+00> : vector<16x1536xf32>
    %9 = tpu.matmul %8, %5, %cst {dimension_numbers = #tpu.dot_dimension_numbers<[1], [1], [0], [0], [0, 0, 1, 0], [], []>} : vector<16x512xbf16>, vector<1536x512xbf16>, vector<16x1536xf32> -> vector<16x1536xf32>
    %10 = vector.broadcast %7 : vector<1x1536xf32> to vector<16x1536xf32>
    %11 = arith.addf %9, %10 : vector<16x1536xf32>
    %12 = vector.extract_strided_slice %11 {offsets = [0, 0], sizes = [16, 512], strides = [1, 1]} : vector<16x1536xf32> to vector<16x512xf32>
    %cst_8 = arith.constant 6.250000e-02 : f32
    %13 = vector.broadcast %cst_8 : f32 to vector<16x512xf32>
    %14 = arith.mulf %12, %13 : vector<16x512xf32>
    %15 = vector.extract_strided_slice %11 {offsets = [0, 512], sizes = [16, 512], strides = [1, 1]} : vector<16x1536xf32> to vector<16x512xf32>
    %16 = vector.extract_strided_slice %11 {offsets = [0, 1024], sizes = [16, 512], strides = [1, 1]} : vector<16x1536xf32> to vector<16x512xf32>
    %17 = vector.extract_strided_slice %14 {offsets = [0, 0], sizes = [8, 256], strides = [1, 1]} : vector<16x512xf32> to vector<8x256xf32>
    %18 = vector.extract_strided_slice %14 {offsets = [0, 256], sizes = [8, 256], strides = [1, 1]} : vector<16x512xf32> to vector<8x256xf32>
    %19 = vector.extract_strided_slice %14 {offsets = [8, 0], sizes = [8, 256], strides = [1, 1]} : vector<16x512xf32> to vector<8x256xf32>
    %20 = vector.extract_strided_slice %14 {offsets = [8, 256], sizes = [8, 256], strides = [1, 1]} : vector<16x512xf32> to vector<8x256xf32>
    %21 = vector.shape_cast %17 : vector<8x256xf32> to vector<1x8x256xf32>
    %22 = vector.shape_cast %18 : vector<8x256xf32> to vector<1x8x256xf32>
    %23 = vector.shape_cast %19 : vector<8x256xf32> to vector<1x8x256xf32>
    %24 = vector.shape_cast %20 : vector<8x256xf32> to vector<1x8x256xf32>
    %25 = tpu.concatenate %21, %22, %23, %24 in 0 : vector<1x8x256xf32>, vector<1x8x256xf32>, vector<1x8x256xf32>, vector<1x8x256xf32> -> vector<4x8x256xf32>
    %26 = vector.extract_strided_slice %15 {offsets = [0, 0], sizes = [8, 256], strides = [1, 1]} : vector<16x512xf32> to vector<8x256xf32>
    %27 = vector.extract_strided_slice %15 {offsets = [0, 256], sizes = [8, 256], strides = [1, 1]} : vector<16x512xf32> to vector<8x256xf32>
    %28 = vector.extract_strided_slice %15 {offsets = [8, 0], sizes = [8, 256], strides = [1, 1]} : vector<16x512xf32> to vector<8x256xf32>
    %29 = vector.extract_strided_slice %15 {offsets = [8, 256], sizes = [8, 256], strides = [1, 1]} : vector<16x512xf32> to vector<8x256xf32>
    %30 = vector.shape_cast %26 : vector<8x256xf32> to vector<1x8x256xf32>
    %31 = vector.shape_cast %27 : vector<8x256xf32> to vector<1x8x256xf32>
    %32 = vector.shape_cast %28 : vector<8x256xf32> to vector<1x8x256xf32>
    %33 = vector.shape_cast %29 : vector<8x256xf32> to vector<1x8x256xf32>
    %34 = tpu.concatenate %30, %31, %32, %33 in 0 : vector<1x8x256xf32>, vector<1x8x256xf32>, vector<1x8x256xf32>, vector<1x8x256xf32> -> vector<4x8x256xf32>
    %35 = vector.extract_strided_slice %16 {offsets = [0, 0], sizes = [8, 256], strides = [1, 1]} : vector<16x512xf32> to vector<8x256xf32>
    %36 = vector.extract_strided_slice %16 {offsets = [0, 256], sizes = [8, 256], strides = [1, 1]} : vector<16x512xf32> to vector<8x256xf32>
    %37 = vector.extract_strided_slice %16 {offsets = [8, 0], sizes = [8, 256], strides = [1, 1]} : vector<16x512xf32> to vector<8x256xf32>
    %38 = vector.extract_strided_slice %16 {offsets = [8, 256], sizes = [8, 256], strides = [1, 1]} : vector<16x512xf32> to vector<8x256xf32>
    %39 = vector.shape_cast %35 : vector<8x256xf32> to vector<1x8x256xf32>
    %40 = vector.shape_cast %36 : vector<8x256xf32> to vector<1x8x256xf32>
    %41 = vector.shape_cast %37 : vector<8x256xf32> to vector<1x8x256xf32>
    %42 = vector.shape_cast %38 : vector<8x256xf32> to vector<1x8x256xf32>
    %43 = tpu.concatenate %39, %40, %41, %42 in 0 : vector<1x8x256xf32>, vector<1x8x256xf32>, vector<1x8x256xf32>, vector<1x8x256xf32> -> vector<4x8x256xf32>
    %cst_9 = arith.constant dense<0.000000e+00> : vector<4x8x8xf32>
    %44 = tpu.matmul %25, %34, %cst_9 {dimension_numbers = #tpu.dot_dimension_numbers<[2], [2], [1], [1], [0, 0, 0, 1, 1, 1], [0], [0]>} : vector<4x8x256xf32>, vector<4x8x256xf32>, vector<4x8x8xf32> -> vector<4x8x8xf32>
    %cst_10 = arith.constant dense<0xFF800000> : vector<4x8xf32>
    %45 = vector.multi_reduction <maximumf>, %44, %cst_10 [2] : vector<4x8x8xf32> to vector<4x8xf32>
    %46 = vector.shape_cast %45 : vector<4x8xf32> to vector<4x8x1xf32>
    %47 = vector.broadcast %46 : vector<4x8x1xf32> to vector<4x8x8xf32>
    %48 = arith.subf %44, %47 : vector<4x8x8xf32>
    %49 = math.exp %48 : vector<4x8x8xf32>
    %cst_11 = arith.constant dense<0.000000e+00> : vector<4x8xf32>
    %50 = vector.multi_reduction <add>, %49, %cst_11 [2] : vector<4x8x8xf32> to vector<4x8xf32>
    %51 = vector.shape_cast %50 : vector<4x8xf32> to vector<4x8x1xf32>
    %52 = tpu.reciprocal %51 {approx = true} : vector<4x8x1xf32> -> vector<4x8x1xf32>
    %53 = vector.broadcast %52 : vector<4x8x1xf32> to vector<4x8x8xf32>
    %54 = arith.mulf %49, %53 : vector<4x8x8xf32>
    %cst_12 = arith.constant dense<0.000000e+00> : vector<4x8x256xf32>
    %55 = tpu.matmul %54, %43, %cst_12 {dimension_numbers = #tpu.dot_dimension_numbers<[2], [1], [1], [2], [0, 0, 0, 1, 1, 2], [0], [0]>} : vector<4x8x8xf32>, vector<4x8x256xf32>, vector<4x8x256xf32> -> vector<4x8x256xf32>
    %56 = vector.extract_strided_slice %55 {offsets = [0, 0, 0], sizes = [1, 8, 256], strides = [1, 1, 1]} : vector<4x8x256xf32> to vector<1x8x256xf32>
    %57 = vector.shape_cast %56 : vector<1x8x256xf32> to vector<8x256xf32>
    %58 = vector.extract_strided_slice %55 {offsets = [1, 0, 0], sizes = [1, 8, 256], strides = [1, 1, 1]} : vector<4x8x256xf32> to vector<1x8x256xf32>
    %59 = vector.shape_cast %58 : vector<1x8x256xf32> to vector<8x256xf32>
    %60 = tpu.concatenate %57, %59 in 1 : vector<8x256xf32>, vector<8x256xf32> -> vector<8x512xf32>
    %61 = vector.extract_strided_slice %55 {offsets = [2, 0, 0], sizes = [1, 8, 256], strides = [1, 1, 1]} : vector<4x8x256xf32> to vector<1x8x256xf32>
    %62 = vector.shape_cast %61 : vector<1x8x256xf32> to vector<8x256xf32>
    %63 = vector.extract_strided_slice %55 {offsets = [3, 0, 0], sizes = [1, 8, 256], strides = [1, 1, 1]} : vector<4x8x256xf32> to vector<1x8x256xf32>
    %64 = vector.shape_cast %63 : vector<1x8x256xf32> to vector<8x256xf32>
    %65 = tpu.concatenate %62, %64 in 1 : vector<8x256xf32>, vector<8x256xf32> -> vector<8x512xf32>
    %66 = tpu.concatenate %60, %65 in 0 : vector<8x512xf32>, vector<8x512xf32> -> vector<16x512xf32>
    %c0_13 = arith.constant 0 : index
    %c0_14 = arith.constant 0 : index
    %c0_15 = arith.constant 0 : index
    %67 = vector.load %arg4[%c0_13, %c0_14, %c0_15] : memref<1x512x512xbf16, #tpu.memory_space<vmem>>, vector<1x512x512xbf16>
    %68 = vector.shape_cast %67 : vector<1x512x512xbf16> to vector<512x512xbf16>
    %c0_16 = arith.constant 0 : index
    %c0_17 = arith.constant 0 : index
    %c0_18 = arith.constant 0 : index
    %69 = vector.load %arg5[%c0_16, %c0_17, %c0_18] : memref<1x1x512xf32, #tpu.memory_space<vmem>>, vector<1x1x512xf32>
    %70 = vector.shape_cast %69 : vector<1x1x512xf32> to vector<1x512xf32>
    %71 = arith.truncf %66 : vector<16x512xf32> to vector<16x512xbf16>
    %cst_19 = arith.constant dense<0.000000e+00> : vector<16x512xf32>
    %72 = tpu.matmul %71, %68, %cst_19 {dimension_numbers = #tpu.dot_dimension_numbers<[1], [1], [0], [0], [0, 0, 1, 0], [], []>} : vector<16x512xbf16>, vector<512x512xbf16>, vector<16x512xf32> -> vector<16x512xf32>
    %73 = vector.broadcast %70 : vector<1x512xf32> to vector<16x512xf32>
    %74 = arith.addf %72, %73 : vector<16x512xf32>
    %75 = arith.addf %3, %74 : vector<16x512xf32>
    %c0_20 = arith.constant 0 : index
    %c0_21 = arith.constant 0 : index
    %c0_22 = arith.constant 0 : index
    %76 = vector.load %arg6[%c0_20, %c0_21, %c0_22] : memref<1x1x512xf32, #tpu.memory_space<vmem>>, vector<1x1x512xf32>
    %77 = vector.shape_cast %76 : vector<1x1x512xf32> to vector<1x512xf32>
    %c0_23 = arith.constant 0 : index
    %c0_24 = arith.constant 0 : index
    %c0_25 = arith.constant 0 : index
    %78 = vector.load %arg7[%c0_23, %c0_24, %c0_25] : memref<1x1x512xf32, #tpu.memory_space<vmem>>, vector<1x1x512xf32>
    %79 = vector.shape_cast %78 : vector<1x1x512xf32> to vector<1x512xf32>
    %cst_26 = arith.constant dense<0.000000e+00> : vector<16xf32>
    %80 = vector.multi_reduction <add>, %75, %cst_26 [1] : vector<16x512xf32> to vector<16xf32>
    %81 = vector.shape_cast %80 : vector<16xf32> to vector<16x1xf32>
    %cst_27 = arith.constant 5.120000e+02 : f32
    %82 = vector.broadcast %cst_27 : f32 to vector<16x1xf32>
    %83 = arith.divf %81, %82 : vector<16x1xf32>
    %84 = vector.broadcast %83 : vector<16x1xf32> to vector<16x512xf32>
    %85 = arith.subf %75, %84 : vector<16x512xf32>
    %86 = arith.mulf %85, %85 : vector<16x512xf32>
    %cst_28 = arith.constant dense<0.000000e+00> : vector<16xf32>
    %87 = vector.multi_reduction <add>, %86, %cst_28 [1] : vector<16x512xf32> to vector<16xf32>
    %88 = vector.shape_cast %87 : vector<16xf32> to vector<16x1xf32>
    %cst_29 = arith.constant 5.120000e+02 : f32
    %89 = vector.broadcast %cst_29 : f32 to vector<16x1xf32>
    %90 = arith.divf %88, %89 : vector<16x1xf32>
    %cst_30 = arith.constant 9.99999974E-6 : f32
    %91 = vector.broadcast %cst_30 : f32 to vector<16x1xf32>
    %92 = arith.addf %90, %91 : vector<16x1xf32>
    %93 = math.rsqrt %92 : vector<16x1xf32>
    %94 = vector.broadcast %93 : vector<16x1xf32> to vector<16x512xf32>
    %95 = arith.mulf %85, %94 : vector<16x512xf32>
    %96 = vector.broadcast %77 : vector<1x512xf32> to vector<16x512xf32>
    %97 = arith.mulf %95, %96 : vector<16x512xf32>
    %98 = vector.broadcast %79 : vector<1x512xf32> to vector<16x512xf32>
    %99 = arith.addf %97, %98 : vector<16x512xf32>
    %c0_31 = arith.constant 0 : index
    %c0_32 = arith.constant 0 : index
    %c0_33 = arith.constant 0 : index
    %100 = vector.load %arg8[%c0_31, %c0_32, %c0_33] : memref<1x1024x512xbf16, #tpu.memory_space<vmem>>, vector<1x1024x512xbf16>
    %101 = vector.shape_cast %100 : vector<1x1024x512xbf16> to vector<1024x512xbf16>
    %c0_34 = arith.constant 0 : index
    %c0_35 = arith.constant 0 : index
    %c0_36 = arith.constant 0 : index
    %102 = vector.load %arg9[%c0_34, %c0_35, %c0_36] : memref<1x1x1024xf32, #tpu.memory_space<vmem>>, vector<1x1x1024xf32>
    %103 = vector.shape_cast %102 : vector<1x1x1024xf32> to vector<1x1024xf32>
    %104 = arith.truncf %99 : vector<16x512xf32> to vector<16x512xbf16>
    %cst_37 = arith.constant dense<0.000000e+00> : vector<16x1024xf32>
    %105 = tpu.matmul %104, %101, %cst_37 {dimension_numbers = #tpu.dot_dimension_numbers<[1], [1], [0], [0], [0, 0, 1, 0], [], []>} : vector<16x512xbf16>, vector<1024x512xbf16>, vector<16x1024xf32> -> vector<16x1024xf32>
    %106 = vector.broadcast %103 : vector<1x1024xf32> to vector<16x1024xf32>
    %107 = arith.addf %105, %106 : vector<16x1024xf32>
    %cst_38 = arith.constant 0.000000e+00 : f32
    %108 = vector.broadcast %cst_38 : f32 to vector<16x1024xf32>
    %109 = arith.maximumf %107, %108 : vector<16x1024xf32>
    %c0_39 = arith.constant 0 : index
    %c0_40 = arith.constant 0 : index
    %c0_41 = arith.constant 0 : index
    %110 = vector.load %arg10[%c0_39, %c0_40, %c0_41] : memref<1x512x1024xbf16, #tpu.memory_space<vmem>>, vector<1x512x1024xbf16>
    %111 = vector.shape_cast %110 : vector<1x512x1024xbf16> to vector<512x1024xbf16>
    %c0_42 = arith.constant 0 : index
    %c0_43 = arith.constant 0 : index
    %c0_44 = arith.constant 0 : index
    %112 = vector.load %arg11[%c0_42, %c0_43, %c0_44] : memref<1x1x512xf32, #tpu.memory_space<vmem>>, vector<1x1x512xf32>
    %113 = vector.shape_cast %112 : vector<1x1x512xf32> to vector<1x512xf32>
    %114 = arith.truncf %109 : vector<16x1024xf32> to vector<16x1024xbf16>
    %cst_45 = arith.constant dense<0.000000e+00> : vector<16x512xf32>
    %115 = tpu.matmul %114, %111, %cst_45 {dimension_numbers = #tpu.dot_dimension_numbers<[1], [1], [0], [0], [0, 0, 1, 0], [], []>} : vector<16x1024xbf16>, vector<512x1024xbf16>, vector<16x512xf32> -> vector<16x512xf32>
    %116 = vector.broadcast %113 : vector<1x512xf32> to vector<16x512xf32>
    %117 = arith.addf %115, %116 : vector<16x512xf32>
    %118 = arith.addf %99, %117 : vector<16x512xf32>
    %c0_46 = arith.constant 0 : index
    %c0_47 = arith.constant 0 : index
    %c0_48 = arith.constant 0 : index
    %119 = vector.load %arg12[%c0_46, %c0_47, %c0_48] : memref<1x1x512xf32, #tpu.memory_space<vmem>>, vector<1x1x512xf32>
    %120 = vector.shape_cast %119 : vector<1x1x512xf32> to vector<1x512xf32>
    %c0_49 = arith.constant 0 : index
    %c0_50 = arith.constant 0 : index
    %c0_51 = arith.constant 0 : index
    %121 = vector.load %arg13[%c0_49, %c0_50, %c0_51] : memref<1x1x512xf32, #tpu.memory_space<vmem>>, vector<1x1x512xf32>
    %122 = vector.shape_cast %121 : vector<1x1x512xf32> to vector<1x512xf32>
    %cst_52 = arith.constant dense<0.000000e+00> : vector<16xf32>
    %123 = vector.multi_reduction <add>, %118, %cst_52 [1] : vector<16x512xf32> to vector<16xf32>
    %124 = vector.shape_cast %123 : vector<16xf32> to vector<16x1xf32>
    %cst_53 = arith.constant 5.120000e+02 : f32
    %125 = vector.broadcast %cst_53 : f32 to vector<16x1xf32>
    %126 = arith.divf %124, %125 : vector<16x1xf32>
    %127 = vector.broadcast %126 : vector<16x1xf32> to vector<16x512xf32>
    %128 = arith.subf %118, %127 : vector<16x512xf32>
    %129 = arith.mulf %128, %128 : vector<16x512xf32>
    %cst_54 = arith.constant dense<0.000000e+00> : vector<16xf32>
    %130 = vector.multi_reduction <add>, %129, %cst_54 [1] : vector<16x512xf32> to vector<16xf32>
    %131 = vector.shape_cast %130 : vector<16xf32> to vector<16x1xf32>
    %cst_55 = arith.constant 5.120000e+02 : f32
    %132 = vector.broadcast %cst_55 : f32 to vector<16x1xf32>
    %133 = arith.divf %131, %132 : vector<16x1xf32>
    %cst_56 = arith.constant 9.99999974E-6 : f32
    %134 = vector.broadcast %cst_56 : f32 to vector<16x1xf32>
    %135 = arith.addf %133, %134 : vector<16x1xf32>
    %136 = math.rsqrt %135 : vector<16x1xf32>
    %137 = vector.broadcast %136 : vector<16x1xf32> to vector<16x512xf32>
    %138 = arith.mulf %128, %137 : vector<16x512xf32>
    %139 = vector.broadcast %120 : vector<1x512xf32> to vector<16x512xf32>
    %140 = arith.mulf %138, %139 : vector<16x512xf32>
    %141 = vector.broadcast %122 : vector<1x512xf32> to vector<16x512xf32>
    %142 = arith.addf %140, %141 : vector<16x512xf32>
    %c0_57 = arith.constant 0 : index
    %c0_58 = arith.constant 0 : index
    %143 = vector.load %arg17[%c0_57, %c0_58] : memref<16x512xf32, #tpu.memory_space<vmem>>, vector<16x512xf32>
    tpu.vector_store %arg17[%c0_57, %c0_58], %142 {strides = array<i32>} : memref<16x512xf32, #tpu.memory_space<vmem>>, vector<16x512xf32>,
    %c2_i32 = arith.constant 2 : i32
    %144 = arith.cmpi eq, %arg0, %c2_i32 : i32
    %145 = arith.extui %144 : i1 to i32
    %c0_i32_59 = arith.constant 0 : i32
    %146 = arith.cmpi ne, %145, %c0_i32_59 : i32
    scf.if %146 {
      %c0_60 = arith.constant 0 : index
      %c0_61 = arith.constant 0 : index
      %147 = vector.load %arg14[%c0_60, %c0_61] : memref<128x512xf32, #tpu.memory_space<vmem>>, vector<128x512xf32>
      %cst_62 = arith.constant 4.41941724E-4 : f32
      %148 = vector.broadcast %cst_62 : f32 to vector<128x512xf32>
      %149 = arith.mulf %147, %148 : vector<128x512xf32>
      %cst_63 = arith.constant dense<0.000000e+00> : vector<16x128xf32>
      %150 = tpu.matmul %142, %149, %cst_63 {dimension_numbers = #tpu.dot_dimension_numbers<[1], [1], [0], [0], [0, 0, 1, 0], [], []>} : vector<16x512xf32>, vector<128x512xf32>, vector<16x128xf32> -> vector<16x128xf32>
      %c0_64 = arith.constant 0 : index
      %c0_65 = arith.constant 0 : index
      %151 = vector.load %arg15[%c0_64, %c0_65] : memref<1x128xf32, #tpu.memory_space<vmem>>, vector<1x128xf32>
      %cst_66 = arith.constant 0.00999999977 : f32
      %152 = vector.broadcast %cst_66 : f32 to vector<1x128xf32>
      %153 = arith.mulf %151, %152 : vector<1x128xf32>
      %154 = vector.broadcast %153 : vector<1x128xf32> to vector<16x128xf32>
      %155 = arith.addf %150, %154 : vector<16x128xf32>
      %cst_67 = arith.constant 0.000000e+00 : f32
      %156 = vector.broadcast %cst_67 : f32 to vector<16x128xf32>
      %157 = arith.cmpf oge, %155, %156 : vector<16x128xf32>
      %cst_68 = arith.constant 2.000000e-01 : f32
      %158 = vector.broadcast %cst_68 : f32 to vector<16x128xf32>
      %159 = arith.mulf %158, %155 : vector<16x128xf32>
      %160 = arith.select %157, %155, %159 : vector<16x128xi1>, vector<16x128xf32>
      %cst_69 = arith.constant 1.41421354 : f32
      %161 = vector.broadcast %cst_69 : f32 to vector<16x128xf32>
      %162 = arith.mulf %160, %161 : vector<16x128xf32>
      %c0_70 = arith.constant 0 : index
      %c0_71 = arith.constant 0 : index
      %163 = vector.load %arg16[%c0_70, %c0_71] : memref<16x128xf32, #tpu.memory_space<vmem>>, vector<16x128xf32>
      tpu.vector_store %arg16[%c0_70, %c0_71], %162 {strides = array<i32>} : memref<16x128xf32, #tpu.memory_space<vmem>>, vector<16x128xf32>,
    } else {
    }
    return
  }
  func.func @transform_0(%arg0: i32) -> (i32, i32) {
    %c0_i32 = arith.constant 0 : i32
    %c0_i32_0 = arith.constant 0 : i32
    %c0_i32_1 = arith.constant 0 : i32
    return %c0_i32, %c0_i32_0 : i32, i32
  }
  func.func @transform_1(%arg0: i32) -> (i32, i32, i32) {
    %c0_i32 = arith.constant 0 : i32
    %c0_i32_0 = arith.constant 0 : i32
    %c0_i32_1 = arith.constant 0 : i32
    return %arg0, %c0_i32, %c0_i32_0 : i32, i32, i32
  }
  func.func @transform_2(%arg0: i32) -> (i32, i32, i32) {
    %c0_i32 = arith.constant 0 : i32
    %c0_i32_0 = arith.constant 0 : i32
    %c0_i32_1 = arith.constant 0 : i32
    return %arg0, %c0_i32, %c0_i32_0 : i32, i32, i32
  }
  func.func @transform_3(%arg0: i32) -> (i32, i32, i32) {
    %c0_i32 = arith.constant 0 : i32
    %c0_i32_0 = arith.constant 0 : i32
    %c0_i32_1 = arith.constant 0 : i32
    return %arg0, %c0_i32, %c0_i32_0 : i32, i32, i32
  }
  func.func @transform_4(%arg0: i32) -> (i32, i32, i32) {
    %c0_i32 = arith.constant 0 : i32
    %c0_i32_0 = arith.constant 0 : i32
    %c0_i32_1 = arith.constant 0 : i32
    return %arg0, %c0_i32, %c0_i32_0 : i32, i32, i32
  }
  func.func @transform_5(%arg0: i32) -> (i32, i32, i32) {
    %c0_i32 = arith.constant 0 : i32
    %c0_i32_0 = arith.constant 0 : i32
    %c0_i32_1 = arith.constant 0 : i32
    return %arg0, %c0_i32, %c0_i32_0 : i32, i32, i32
  }
  func.func @transform_6(%arg0: i32) -> (i32, i32, i32) {
    %c0_i32 = arith.constant 0 : i32
    %c0_i32_0 = arith.constant 0 : i32
    %c0_i32_1 = arith.constant 0 : i32
    return %arg0, %c0_i32, %c0_i32_0 : i32, i32, i32
  }
  func.func @transform_7(%arg0: i32) -> (i32, i32, i32) {
    %c0_i32 = arith.constant 0 : i32
    %c0_i32_0 = arith.constant 0 : i32
    %c0_i32_1 = arith.constant 0 : i32
    return %arg0, %c0_i32, %c0_i32_0 : i32, i32, i32
  }
  func.func @transform_8(%arg0: i32) -> (i32, i32, i32) {
    %c0_i32 = arith.constant 0 : i32
    %c0_i32_0 = arith.constant 0 : i32
    %c0_i32_1 = arith.constant 0 : i32
    return %arg0, %c0_i32, %c0_i32_0 : i32, i32, i32
  }
  func.func @transform_9(%arg0: i32) -> (i32, i32, i32) {
    %c0_i32 = arith.constant 0 : i32
    %c0_i32_0 = arith.constant 0 : i32
    %c0_i32_1 = arith.constant 0 : i32
    return %arg0, %c0_i32, %c0_i32_0 : i32, i32, i32
  }
  func.func @transform_10(%arg0: i32) -> (i32, i32, i32) {
    %c0_i32 = arith.constant 0 : i32
    %c0_i32_0 = arith.constant 0 : i32
    %c0_i32_1 = arith.constant 0 : i32
    return %arg0, %c0_i32, %c0_i32_0 : i32, i32, i32
  }
  func.func @transform_11(%arg0: i32) -> (i32, i32, i32) {
    %c0_i32 = arith.constant 0 : i32
    %c0_i32_0 = arith.constant 0 : i32
    %c0_i32_1 = arith.constant 0 : i32
    return %arg0, %c0_i32, %c0_i32_0 : i32, i32, i32
  }
  func.func @transform_12(%arg0: i32) -> (i32, i32, i32) {
    %c0_i32 = arith.constant 0 : i32
    %c0_i32_0 = arith.constant 0 : i32
    %c0_i32_1 = arith.constant 0 : i32
    return %arg0, %c0_i32, %c0_i32_0 : i32, i32, i32
  }
  func.func @transform_13(%arg0: i32) -> (i32, i32) {
    %c0_i32 = arith.constant 0 : i32
    %c0_i32_0 = arith.constant 0 : i32
    %c0_i32_1 = arith.constant 0 : i32
    return %c0_i32, %c0_i32_0 : i32, i32
  }
  func.func @transform_14(%arg0: i32) -> (i32, i32) {
    %c0_i32 = arith.constant 0 : i32
    %c0_i32_0 = arith.constant 0 : i32
    %c0_i32_1 = arith.constant 0 : i32
    return %c0_i32, %c0_i32_0 : i32, i32
  }
  func.func @transform_15(%arg0: i32) -> (i32, i32) {
    %c0_i32 = arith.constant 0 : i32
    %c0_i32_0 = arith.constant 0 : i32
    %c0_i32_1 = arith.constant 0 : i32
    return %c0_i32, %c0_i32_0 : i32, i32
  }
}

</mosaic_0001>

<bundles_post_ra>
// kernel: transformer_mapper.1
= control target key start
LH: loop header
LB: loop body
LE: loop exit
PB: predicated region body
PF: predicated region fallthrough
CT: control target
= control target key end

     0   :  { %s12086_s18 = smov 0   ;;  %s13863_s0 = inlined_call_operand.vmem [shape: f32[16,512], index: 0, kind: input, shape index: {}]   ;;  %s13864_s1 = inlined_call_operand.vmem [shape: bf16[3,1536,512], index: 1, kind: input, shape index: {}]   ;;  %s13865_s2 = inlined_call_operand.vmem [shape: f32[3,1,1536], index: 2, kind: input, shape index: {}]   ;;  %s13866_s3 = inlined_call_operand.vmem [shape: bf16[3,512,512], index: 3, kind: input, shape index: {}]   ;;  %s13867_s4 = inlined_call_operand.vmem [shape: f32[3,1,512], index: 4, kind: input, shape index: {}]   ;;  %s13868_s5 = inlined_call_operand.vmem [shape: f32[3,1,512], index: 5, kind: input, shape index: {}]   ;;  %s13869_s6 = inlined_call_operand.vmem [shape: f32[3,1,512], index: 6, kind: input, shape index: {}]   ;;  %s13870_s7 = inlined_call_operand.vmem [shape: bf16[3,1024,512], index: 7, kind: input, shape index: {}]   ;;  %s13871_s8 = inlined_call_operand.vmem [shape: f32[3,1,1024], index: 8, kind: input, shape index: {}]   ;;  %s13872_s9 = inlined_call_operand.vmem [shape: bf16[3,512,1024], index: 9, kind: input, shape index: {}]   ;;  %s13873_s10 = inlined_call_operand.vmem [shape: f32[3,1,512], index: 10, kind: input, shape index: {}]   ;;  %s13874_s11 = inlined_call_operand.vmem [shape: f32[3,1,512], index: 11, kind: input, shape index: {}]   ;;  %s13875_s12 = inlined_call_operand.vmem [shape: f32[3,1,512], index: 12, kind: input, shape index: {}]   ;;  %s13876_s13 = inlined_call_operand.vmem [shape: f32[128,512], index: 13, kind: input, shape index: {}]   ;;  %s13877_s14 = inlined_call_operand.vmem [shape: f32[1,128], index: 14, kind: input, shape index: {}]   ;;  %s13878_s15 = inlined_call_operand.vmem [shape: f32[16,128], index: 15, kind: output, shape index: {}]  }
   0x1   :  { %13883 = sst [smem:[#allocation5_spill]] %s13864_s1 }
   0x2   :  { %13884 = sst [smem:[#allocation6_spill]] %s13865_s2 }
   0x3   :  { %13885 = sst [smem:[#allocation7_spill]] %s13866_s3 }
   0x4   :  { %13886 = sst [smem:[#allocation8_spill]] %s13870_s7 }
   0x5   :  { %13887 = sst [smem:[#allocation9_spill]] %s13876_s13 }
   0x6   :  { %13888 = sst [smem:[#allocation10_spill]] %s13877_s14 }
   0x7   :  { %13889 = sst [smem:[#allocation11_spill]] %s13878_s15 }
   0x8 LB: > { %13890 = sst [smem:[#allocation3_spill]] %s12003_s18  ;;  %s12092_s19 = sadd.s32 4294967295, %s12003_s18   ;;  %s12003_s18 = sphi %s12086_s18, %s25_s18  }
   0x9   : > { %p9751_p0 = scmp.ge.s32.totalorder %s12003_s18, 1  ;;  %p534_p1 = scmp.lt.s32.totalorder %s12003_s18, 4 }
   0xb   : > { %p535_p2 = pnand %p9751_p0, %p534_p1 }
   0xd   : > { %538 = sbr.rel (%p535_p2) target bundleno = 3867 (0xf1b), region = 80 }
  0x12   : > { %p624_p3 = scmp.lt.s32.totalorder %s12092_s19, 2  ;;  %s13891_s3 = sld [smem:[#allocation7_spill]] }
  0x13   : > { %s13893_s1 = sld [smem:[#allocation5_spill]]  ;;  %p9766_p4 = scmp.ne.s32.totalorder %s12092_s19, 0 }
  0x14   : > { %s625_s20 = scalar_select %p624_p3, %s12092_s19, 2 }
  0x15   : > { %s13894_s2 = sld [smem:[#allocation6_spill]] }
  0x16   : > { %s10801_s21 = smul.u32 3072, %s625_s20  ;;  %s10798_s22 = sshll.u32 %s625_s20, 10 }
  0x17   : > { %s10802_s23 = smul.u32 12, %s625_s20  ;;  %s12108_s30 = sshll.u32 %s625_s20, 2 }
  0x18   : > { %s12101_s26 = scalar_lea.vmem %s13891_s3, %s10798_s22  ;;  %s10799_s17 = sshll.u32 %s625_s20, 11 }
  0x19   : > { %13892 = sst [smem:[#allocation4_spill]] %s12101_s26  ;;  %s12106_s29 = scalar_lea.vmem %s13893_s1, %s10801_s21 }
  0x1a   : > { %s9760_s15 = sshll.u32 %s625_s20, 3  ;;  %s13895_s7 = sld [smem:[#allocation8_spill]] }
  0x1b   : > { %s12113_s18 = scalar_lea.vmem %s13894_s2, %s10802_s23  ;;  %s12135_s22 = scalar_lea.vmem %s13871_s8, %s9760_s15 }
  0x1c   : > { %s12140_s27 = scalar_lea.vmem %s13872_s9, %s10799_s17  ;;  %s667_s3 = scalar_lea.vmem %s13873_s10, %s12108_s30 }
  0x1d   : > { %s671_s13 = scalar_lea.vmem %s13874_s11, %s12108_s30  ;;  %679 = sbr.rel (%p9766_p4) target bundleno = 39 (0x27), region = 84 }
  0x20   : > { %s12130_s26 = scalar_lea.vmem %s13895_s7, %s10799_s17  ;;  %s675_s7 = scalar_lea.vmem %s13875_s12, %s12108_s30 }
  0x22   : > { %v680_v0 = vld [vmem:[%s13863_s0] sm:$0xff]  ;;  %v681_v1 = vld [vmem:[%s13863_s0 + $0x8] sm:$0xff]  ;;  %v682_v2 = vld [vmem:[%s13863_s0 + $0x10] sm:$0xff] }
  0x23   : > { %688 = vst [vmem:[#allocation2 + $0x30] sm:$0xff] %v680_v0  ;;  %689 = vst [vmem:[#allocation2] sm:$0xff] %v681_v1  ;;  %v683_v3 = vld [vmem:[%s13863_s0 + $0x18] sm:$0xff]  ;;  %v684_v4 = vld [vmem:[%s13863_s0 + $0x20] sm:$0xff] }
  0x24   : > { %690 = vst [vmem:[#allocation2 + $0x18] sm:$0xff] %v682_v2  ;;  %v685_v5 = vld [vmem:[%s13863_s0 + $0x28] sm:$0xff]  ;;  %691 = vst [vmem:[#allocation2 + $0x10] sm:$0xff] %v683_v3  ;;  %v686_v6 = vld [vmem:[%s13863_s0 + $0x30] sm:$0xff] }
  0x25   : > { %692 = vst [vmem:[#allocation2 + $0x8] sm:$0xff] %v684_v4  ;;  %693 = vst [vmem:[#allocation2 + $0x20] sm:$0xff] %v685_v5  ;;  %v687_v7 = vld [vmem:[%s13863_s0 + $0x38] sm:$0xff] }
  0x26   : > { %694 = vst [vmem:[#allocation2 + $0x28] sm:$0xff] %v686_v6  ;;  %695 = vst [vmem:[#allocation2 + $0x38] sm:$0xff] %v687_v7 }
  0x27 PF: > { %v10812_v8 = vld [vmem:[%s12106_s29 + $0xe4] ss:$16 sps:$4 sm:$0xff]   ;;  %v10814_v9 = vld [vmem:[%s12106_s29 + $0xec] ss:$16 sps:$4 sm:$0xff]   ;;  %v10816_v10 = vld [vmem:[%s12106_s29 + $0xe0] ss:$16 sps:$4 sm:$0xff]   ;;  %s13897_s24 = scalar_lea.vmem %s13867_s4, %s12108_s30  ;;  %s13898_s21 = scalar_lea.vmem %s13868_s5, %s12108_s30 }
  0x28   : > { %3076 = vmatprep.subr.bf16.mxu0 %v10812_v8  ;;  %v10817_v11 = vld [vmem:[%s12106_s29 + $0xe8] ss:$16 sps:$4 sm:$0xff]   ;;  %3119 = vmatprep.subr.bf16.mxu1 %v10814_v9  ;;  %v10818_v12 = vld [vmem:[%s12106_s29 + $0xc4] ss:$16 sps:$4 sm:$0xff]   ;;  %v10820_v13 = vld [vmem:[%s12106_s29 + $0xcc] ss:$16 sps:$4 sm:$0xff]   ;;  %s13899_s14 = scalar_lea.vmem %s13869_s6, %s12108_s30 }
  0x29   : > { %3077 = vmatpush1.bf16.xpose.msra.mxu0 %v10816_v10  ;;  %3120 = vmatpush1.bf16.xpose.msra.mxu1 %v10817_v11  ;;  %v10822_v14 = vld [vmem:[%s12106_s29 + $0xc0] ss:$16 sps:$4 sm:$0xff]   ;;  %v10823_v15 = vld [vmem:[%s12106_s29 + $0xc8] ss:$16 sps:$4 sm:$0xff]   ;;  %v10824_v16 = vld [vmem:[%s12106_s29 + $0xa4] ss:$16 sps:$4 sm:$0xff]  }
  0x2a   : > { %3078 = vmatprep.subr.bf16.mxu0 %v10818_v12  ;;  %3121 = vmatprep.subr.bf16.mxu1 %v10820_v13  ;;  %v10826_v17 = vld [vmem:[%s12106_s29 + $0xac] ss:$16 sps:$4 sm:$0xff]   ;;  %v10828_v18 = vld [vmem:[%s12106_s29 + $0xa0] ss:$16 sps:$4 sm:$0xff]   ;;  %v10829_v19 = vld [vmem:[%s12106_s29 + $0xa8] ss:$16 sps:$4 sm:$0xff]  }
  0x2b   : > { %v10830_v20 = vld [vmem:[%s12106_s29 + $0x84] ss:$16 sps:$4 sm:$0xff]   ;;  %v10832_v21 = vld [vmem:[%s12106_s29 + $0x8c] ss:$16 sps:$4 sm:$0xff]   ;;  %v10834_v22 = vld [vmem:[%s12106_s29 + $0x80] ss:$16 sps:$4 sm:$0xff]  }
  0x2c   : > { %v10835_v23 = vld [vmem:[%s12106_s29 + $0x88] ss:$16 sps:$4 sm:$0xff]   ;;  %v10836_v24 = vld [vmem:[%s12106_s29 + $0x64] ss:$16 sps:$4 sm:$0xff]   ;;  %v10838_v25 = vld [vmem:[%s12106_s29 + $0x6c] ss:$16 sps:$4 sm:$0xff]  }
  0x2d   : > { %v10840_v26 = vld [vmem:[%s12106_s29 + $0x60] ss:$16 sps:$4 sm:$0xff]   ;;  %v10841_v27 = vld [vmem:[%s12106_s29 + $0x68] ss:$16 sps:$4 sm:$0xff]   ;;  %v10842_v28 = vld [vmem:[%s12106_s29 + $0x44] ss:$16 sps:$4 sm:$0xff]  }
  0x2e   : > { %v10844_v29 = vld [vmem:[%s12106_s29 + $0x4c] ss:$16 sps:$4 sm:$0xff]   ;;  %v10846_v30 = vld [vmem:[%s12106_s29 + $0x40] ss:$16 sps:$4 sm:$0xff]   ;;  %v10847_v31 = vld [vmem:[%s12106_s29 + $0x48] ss:$16 sps:$4 sm:$0xff]  }
  0x2f   : > { %v10848_v32 = vld [vmem:[%s12106_s29 + $0x24] ss:$16 sps:$4 sm:$0xff]   ;;  %v10850_v33 = vld [vmem:[%s12106_s29 + $0x2c] ss:$16 sps:$4 sm:$0xff]   ;;  %v10852_v40 = vld [vmem:[%s12106_s29 + $0x20] ss:$16 sps:$4 sm:$0xff]  }
  0x30   : > { %v697_v34 = vld [vmem:[#allocation2] sm:$0xff]  ;;  %v699_v36 = vld [vmem:[#allocation2 + $0x10] sm:$0xff]  ;;  %v703_v37 = vld [vmem:[#allocation2 + $0x38] sm:$0xff]  ;;  %vm3880_vm0 = vcmask 64512   ;;  %p10795_p5 = scmp.ne.s32.totalorder %s12092_s19, 2 }
  0x31   : > { %3079 = vmatpush1.bf16.xpose.msra.mxu0 %v10822_v14  ;;  %3122 = vmatpush1.bf16.xpose.msra.mxu1 %v10823_v15  ;;  %v701_v35 = vld [vmem:[#allocation2 + $0x20] sm:$0xff]  ;;  %v12207_v39 = vpack.c.bf16 %v703_v37, %v699_v36  ;;  %v10853_v41 = vld [vmem:[%s12106_s29 + $0x28] ss:$16 sps:$4 sm:$0xff]   ;;  %v10856_v43 = vld [vmem:[%s12106_s29 + $0xc] ss:$16 sps:$4 sm:$0xff]   ;;  %s13902_s19 = sld [smem:[#allocation11_spill]] (!%p10795_p5) }
  0x32   : > { %3080 = vmatprep.subr.bf16.mxu0 %v10824_v16  ;;  %3123 = vmatprep.subr.bf16.mxu1 %v10826_v17  ;;  %v12205_v38 = vpack.c.bf16 %v701_v35, %v697_v34  ;;  %v10854_v42 = vld [vmem:[%s12106_s29 + $0x4] ss:$16 sps:$4 sm:$0xff]   ;;  %v10858_v44 = vld [vmem:[%s12106_s29] ss:$16 sps:$4 sm:$0xff]   ;;  %v10859_v45 = vld [vmem:[%s12106_s29 + $0x8] ss:$16 sps:$4 sm:$0xff]  }
  0x33   : > { %3151 = vmatprep.mubr.bf16.mxu1 %v12207_v39  ;;  %v10860_v46 = vld [vmem:[%s12106_s29 + $0x1e4] ss:$16 sps:$4 sm:$0xff]   ;;  %v10862_v47 = vld [vmem:[%s12106_s29 + $0x1ec] ss:$16 sps:$4 sm:$0xff]   ;;  %v10864_v48 = vld [vmem:[%s12106_s29 + $0x1e0] ss:$16 sps:$4 sm:$0xff]  }
  0x34   : > { %3108 = vmatprep.mubr.bf16.mxu0 %v12205_v38  ;;  %v10865_v49 = vld [vmem:[%s12106_s29 + $0x1e8] ss:$16 sps:$4 sm:$0xff]   ;;  %v10866_v50 = vld [vmem:[%s12106_s29 + $0x1c4] ss:$16 sps:$4 sm:$0xff]   ;;  %v10868_v51 = vld [vmem:[%s12106_s29 + $0x1cc] ss:$16 sps:$4 sm:$0xff]  }
  0x35   : > { %v10870_v52 = vld [vmem:[%s12106_s29 + $0x1c0] ss:$16 sps:$4 sm:$0xff]   ;;  %v10871_v53 = vld [vmem:[%s12106_s29 + $0x1c8] ss:$16 sps:$4 sm:$0xff]   ;;  %v10872_v54 = vld [vmem:[%s12106_s29 + $0x1a4] ss:$16 sps:$4 sm:$0xff]  }
  0x36   : > { %v10874_v55 = vld [vmem:[%s12106_s29 + $0x1ac] ss:$16 sps:$4 sm:$0xff]   ;;  %v10876_v56 = vld [vmem:[%s12106_s29 + $0x1a0] ss:$16 sps:$4 sm:$0xff]   ;;  %v10877_v57 = vld [vmem:[%s12106_s29 + $0x1a8] ss:$16 sps:$4 sm:$0xff]  }
  0x37   : > { %v10878_v58 = vld [vmem:[%s12106_s29 + $0x184] ss:$16 sps:$4 sm:$0xff]   ;;  %v10880_v59 = vld [vmem:[%s12106_s29 + $0x18c] ss:$16 sps:$4 sm:$0xff]   ;;  %v10882_v60 = vld [vmem:[%s12106_s29 + $0x180] ss:$16 sps:$4 sm:$0xff]  }
  0x38   : > { %v10883_v61 = vld [vmem:[%s12106_s29 + $0x188] ss:$16 sps:$4 sm:$0xff]   ;;  %v10884_v62 = vld [vmem:[%s12106_s29 + $0x164] ss:$16 sps:$4 sm:$0xff]   ;;  %v10886_v63 = vld [vmem:[%s12106_s29 + $0x16c] ss:$16 sps:$4 sm:$0xff]  }
  0x39   : > { %3081 = vmatpush1.bf16.xpose.msra.mxu0 %v10828_v18  ;;  %3124 = vmatpush1.bf16.xpose.msra.mxu1 %v10829_v19  ;;  %v10888_v0 = vld [vmem:[%s12106_s29 + $0x160] ss:$16 sps:$4 sm:$0xff]   ;;  %v10889_v1 = vld [vmem:[%s12106_s29 + $0x168] ss:$16 sps:$4 sm:$0xff]   ;;  %v10890_v2 = vld [vmem:[%s12106_s29 + $0x144] ss:$16 sps:$4 sm:$0xff]  }
  0x3a   : > { %3082 = vmatprep.subr.bf16.mxu0 %v10830_v20  ;;  %3125 = vmatprep.subr.bf16.mxu1 %v10832_v21  ;;  %v10892_v3 = vld [vmem:[%s12106_s29 + $0x14c] ss:$16 sps:$4 sm:$0xff]   ;;  %v10894_v4 = vld [vmem:[%s12106_s29 + $0x140] ss:$16 sps:$4 sm:$0xff]   ;;  %v10895_v5 = vld [vmem:[%s12106_s29 + $0x148] ss:$16 sps:$4 sm:$0xff]  }
  0x3b   : > { %v10896_v6 = vld [vmem:[%s12106_s29 + $0x124] ss:$16 sps:$4 sm:$0xff]   ;;  %v10898_v7 = vld [vmem:[%s12106_s29 + $0x12c] ss:$16 sps:$4 sm:$0xff]   ;;  %v10900_v8 = vld [vmem:[%s12106_s29 + $0x120] ss:$16 sps:$4 sm:$0xff]  }
  0x3c   : > { %v10901_v9 = vld [vmem:[%s12106_s29 + $0x128] ss:$16 sps:$4 sm:$0xff]   ;;  %v10902_v10 = vld [vmem:[%s12106_s29 + $0x104] ss:$16 sps:$4 sm:$0xff]   ;;  %v10904_v11 = vld [vmem:[%s12106_s29 + $0x10c] ss:$16 sps:$4 sm:$0xff]  }
  0x3d   : > { %v10906_v12 = vld [vmem:[%s12106_s29 + $0x100] ss:$16 sps:$4 sm:$0xff]   ;;  %v10907_v13 = vld [vmem:[%s12106_s29 + $0x108] ss:$16 sps:$4 sm:$0xff]   ;;  %v10910_v14 = vld [vmem:[%s12106_s29 + $0x2e4] ss:$16 sps:$4 sm:$0xff]  }
  0x3e   : > { %v10913_v15 = vld [vmem:[%s12106_s29 + $0x2ec] ss:$16 sps:$4 sm:$0xff]   ;;  %v696_v16 = vld [vmem:[#allocation2 + $0x30] sm:$0xff]  ;;  %v10911_v21 = vld [vmem:[%s12106_s29 + $0x2e8] ss:$16 sps:$4 sm:$0xff]  }
  0x3f   : > { %v700_v17 = vld [vmem:[#allocation2 + $0x8] sm:$0xff]  ;;  %v698_v18 = vld [vmem:[#allocation2 + $0x18] sm:$0xff]  ;;  %v10908_v20 = vld [vmem:[%s12106_s29 + $0x2e0] ss:$16 sps:$4 sm:$0xff]  }
  0x40   : > { %v702_v19 = vld [vmem:[#allocation2 + $0x28] sm:$0xff]  ;;  %v10926_v34 = vld [vmem:[%s12106_s29 + $0x280] ss:$16 sps:$4 sm:$0xff]   ;;  %v10934_v36 = vld [vmem:[%s12106_s29 + $0x264] ss:$16 sps:$4 sm:$0xff]  }
  0x41   : > { %3083 = vmatpush1.bf16.xpose.msra.mxu0 %v10834_v22  ;;  %3126 = vmatpush1.bf16.xpose.msra.mxu1 %v10835_v23  ;;  %v12253_v22 = vpack.c.bf16 %v700_v17, %v696_v16  ;;  %v12255_v23 = vpack.c.bf16 %v702_v19, %v698_v18  ;;  %v10929_v35 = vld [vmem:[%s12106_s29 + $0x288] ss:$16 sps:$4 sm:$0xff]   ;;  %v10937_v37 = vld [vmem:[%s12106_s29 + $0x26c] ss:$16 sps:$4 sm:$0xff]   ;;  %v10992_v16 = vld [vmem:[%s12106_s29 + $0x320] ss:$16 sps:$4 sm:$0xff]  }
  0x42   : > { %3084 = vmatprep.subr.bf16.mxu0 %v10836_v24  ;;  %3127 = vmatprep.subr.bf16.mxu1 %v10838_v25  ;;  %v10916_v24 = vld [vmem:[%s12106_s29 + $0x2c4] ss:$16 sps:$4 sm:$0xff]   ;;  %v10919_v25 = vld [vmem:[%s12106_s29 + $0x2cc] ss:$16 sps:$4 sm:$0xff]   ;;  %v10995_v17 = vld [vmem:[%s12106_s29 + $0x328] ss:$16 sps:$4 sm:$0xff]  }
  0x43   : > { %v11000_v18 = vld [vmem:[%s12106_s29 + $0x304] ss:$16 sps:$4 sm:$0xff]   ;;  %v11003_v19 = vld [vmem:[%s12106_s29 + $0x30c] ss:$16 sps:$4 sm:$0xff]  }
  0x49   : > { %3085 = vmatpush1.bf16.xpose.msra.mxu0 %v10840_v26  ;;  %3128 = vmatpush1.bf16.xpose.msra.mxu1 %v10841_v27  ;;  %v10914_v26 = vld [vmem:[%s12106_s29 + $0x2c0] ss:$16 sps:$4 sm:$0xff]   ;;  %v10917_v27 = vld [vmem:[%s12106_s29 + $0x2c8] ss:$16 sps:$4 sm:$0xff]  }
  0x4a   : > { %3086 = vmatprep.subr.bf16.mxu0 %v10842_v28  ;;  %3129 = vmatprep.subr.bf16.mxu1 %v10844_v29  ;;  %v10922_v28 = vld [vmem:[%s12106_s29 + $0x2a4] ss:$16 sps:$4 sm:$0xff]   ;;  %v10925_v29 = vld [vmem:[%s12106_s29 + $0x2ac] ss:$16 sps:$4 sm:$0xff]  }
  0x51   : > { %3087 = vmatpush1.bf16.xpose.msra.mxu0 %v10846_v30  ;;  %3130 = vmatpush1.bf16.xpose.msra.mxu1 %v10847_v31  ;;  %v10920_v30 = vld [vmem:[%s12106_s29 + $0x2a0] ss:$16 sps:$4 sm:$0xff]   ;;  %v10923_v31 = vld [vmem:[%s12106_s29 + $0x2a8] ss:$16 sps:$4 sm:$0xff]  }
  0x52   : > { %3088 = vmatprep.subr.bf16.mxu0 %v10848_v32  ;;  %3131 = vmatprep.subr.bf16.mxu1 %v10850_v33  ;;  %v10928_v32 = vld [vmem:[%s12106_s29 + $0x284] ss:$16 sps:$4 sm:$0xff]   ;;  %v10931_v33 = vld [vmem:[%s12106_s29 + $0x28c] ss:$16 sps:$4 sm:$0xff]  }
  0x59   : > { %3089 = vmatpush1.bf16.xpose.msra.mxu0 %v10852_v40  ;;  %3132 = vmatpush1.bf16.xpose.msra.mxu1 %v10853_v41  ;;  %v10932_v40 = vld [vmem:[%s12106_s29 + $0x260] ss:$16 sps:$4 sm:$0xff]   ;;  %v10935_v41 = vld [vmem:[%s12106_s29 + $0x268] ss:$16 sps:$4 sm:$0xff]  }
  0x5a   : > { %3090 = vmatprep.subr.bf16.mxu0 %v10854_v42  ;;  %3133 = vmatprep.subr.bf16.mxu1 %v10856_v43  ;;  %v10940_v42 = vld [vmem:[%s12106_s29 + $0x244] ss:$16 sps:$4 sm:$0xff]   ;;  %v10943_v43 = vld [vmem:[%s12106_s29 + $0x24c] ss:$16 sps:$4 sm:$0xff]  }
  0x61   : > { %3091 = vmatpush1.bf16.xpose.msra.mxu0 %v10858_v44  ;;  %3134 = vmatpush1.bf16.xpose.msra.mxu1 %v10859_v45  ;;  %v10938_v44 = vld [vmem:[%s12106_s29 + $0x240] ss:$16 sps:$4 sm:$0xff]   ;;  %v10941_v45 = vld [vmem:[%s12106_s29 + $0x248] ss:$16 sps:$4 sm:$0xff]  }
  0x62   : > { %3092 = vmatprep.subr.bf16.mxu0 %v10860_v46  ;;  %3135 = vmatprep.subr.bf16.mxu1 %v10862_v47  ;;  %v10946_v46 = vld [vmem:[%s12106_s29 + $0x224] ss:$16 sps:$4 sm:$0xff]   ;;  %v10949_v47 = vld [vmem:[%s12106_s29 + $0x22c] ss:$16 sps:$4 sm:$0xff]  }
  0x69   : > { %3093 = vmatpush2.bf16.xpose.msra.mxu0 %v10864_v48  ;;  %3136 = vmatpush2.bf16.xpose.msra.mxu1 %v10865_v49  ;;  %v10944_v48 = vld [vmem:[%s12106_s29 + $0x220] ss:$16 sps:$4 sm:$0xff]   ;;  %v10947_v49 = vld [vmem:[%s12106_s29 + $0x228] ss:$16 sps:$4 sm:$0xff]  }
  0x6a   : > { %3094 = vmatprep.subr.bf16.mxu0 %v10866_v50  ;;  %3137 = vmatprep.subr.bf16.mxu1 %v10868_v51  ;;  %v10952_v50 = vld [vmem:[%s12106_s29 + $0x204] ss:$16 sps:$4 sm:$0xff]   ;;  %v10955_v51 = vld [vmem:[%s12106_s29 + $0x20c] ss:$16 sps:$4 sm:$0xff]  }
  0x71   : > { %3095 = vmatpush2.bf16.xpose.msra.mxu0 %v10870_v52  ;;  %3138 = vmatpush2.bf16.xpose.msra.mxu1 %v10871_v53  ;;  %v10950_v52 = vld [vmem:[%s12106_s29 + $0x200] ss:$16 sps:$4 sm:$0xff]   ;;  %v10953_v53 = vld [vmem:[%s12106_s29 + $0x208] ss:$16 sps:$4 sm:$0xff]  }
  0x72   : > { %3096 = vmatprep.subr.bf16.mxu0 %v10872_v54  ;;  %3139 = vmatprep.subr.bf16.mxu1 %v10874_v55  ;;  %v10958_v54 = vld [vmem:[%s12106_s29 + $0x3e4] ss:$16 sps:$4 sm:$0xff]   ;;  %v10961_v55 = vld [vmem:[%s12106_s29 + $0x3ec] ss:$16 sps:$4 sm:$0xff]  }
  0x79   : > { %3097 = vmatpush2.bf16.xpose.msra.mxu0 %v10876_v56  ;;  %3140 = vmatpush2.bf16.xpose.msra.mxu1 %v10877_v57  ;;  %v10956_v56 = vld [vmem:[%s12106_s29 + $0x3e0] ss:$16 sps:$4 sm:$0xff]   ;;  %v10959_v57 = vld [vmem:[%s12106_s29 + $0x3e8] ss:$16 sps:$4 sm:$0xff]  }
  0x7a   : > { %3098 = vmatprep.subr.bf16.mxu0 %v10878_v58  ;;  %3141 = vmatprep.subr.bf16.mxu1 %v10880_v59  ;;  %v10964_v58 = vld [vmem:[%s12106_s29 + $0x3c4] ss:$16 sps:$4 sm:$0xff]   ;;  %v10967_v59 = vld [vmem:[%s12106_s29 + $0x3cc] ss:$16 sps:$4 sm:$0xff]  }
  0x81   : > { %3099 = vmatpush2.bf16.xpose.msra.mxu0 %v10882_v60  ;;  %3142 = vmatpush2.bf16.xpose.msra.mxu1 %v10883_v61  ;;  %v10962_v60 = vld [vmem:[%s12106_s29 + $0x3c0] ss:$16 sps:$4 sm:$0xff]   ;;  %v10965_v61 = vld [vmem:[%s12106_s29 + $0x3c8] ss:$16 sps:$4 sm:$0xff]  }
  0x82   : > { %3100 = vmatprep.subr.bf16.mxu0 %v10884_v62  ;;  %3143 = vmatprep.subr.bf16.mxu1 %v10886_v63  ;;  %v10970_v62 = vld [vmem:[%s12106_s29 + $0x3a4] ss:$16 sps:$4 sm:$0xff]   ;;  %v10973_v63 = vld [vmem:[%s12106_s29 + $0x3ac] ss:$16 sps:$4 sm:$0xff]  }
  0x89   : > { %3101 = vmatpush2.bf16.xpose.msra.mxu0 %v10888_v0  ;;  %3144 = vmatpush2.bf16.xpose.msra.mxu1 %v10889_v1  ;;  %v10968_v0 = vld [vmem:[%s12106_s29 + $0x3a0] ss:$16 sps:$4 sm:$0xff]   ;;  %v10971_v1 = vld [vmem:[%s12106_s29 + $0x3a8] ss:$16 sps:$4 sm:$0xff]  }
  0x8a   : > { %3102 = vmatprep.subr.bf16.mxu0 %v10890_v2  ;;  %3145 = vmatprep.subr.bf16.mxu1 %v10892_v3  ;;  %v10976_v2 = vld [vmem:[%s12106_s29 + $0x384] ss:$16 sps:$4 sm:$0xff]   ;;  %v10979_v3 = vld [vmem:[%s12106_s29 + $0x38c] ss:$16 sps:$4 sm:$0xff]  }
  0x91   : > { %3103 = vmatpush2.bf16.xpose.msra.mxu0 %v10894_v4  ;;  %3146 = vmatpush2.bf16.xpose.msra.mxu1 %v10895_v5  ;;  %v10974_v4 = vld [vmem:[%s12106_s29 + $0x380] ss:$16 sps:$4 sm:$0xff]   ;;  %v10977_v5 = vld [vmem:[%s12106_s29 + $0x388] ss:$16 sps:$4 sm:$0xff]  }
  0x92   : > { %3104 = vmatprep.subr.bf16.mxu0 %v10896_v6  ;;  %3147 = vmatprep.subr.bf16.mxu1 %v10898_v7  ;;  %v10982_v6 = vld [vmem:[%s12106_s29 + $0x364] ss:$16 sps:$4 sm:$0xff]   ;;  %v10985_v7 = vld [vmem:[%s12106_s29 + $0x36c] ss:$16 sps:$4 sm:$0xff]  }
  0x99   : > { %3105 = vmatpush2.bf16.xpose.msra.mxu0 %v10900_v8  ;;  %3148 = vmatpush2.bf16.xpose.msra.mxu1 %v10901_v9  ;;  %v10980_v8 = vld [vmem:[%s12106_s29 + $0x360] ss:$16 sps:$4 sm:$0xff]   ;;  %v10983_v9 = vld [vmem:[%s12106_s29 + $0x368] ss:$16 sps:$4 sm:$0xff]  }
  0x9a   : > { %3106 = vmatprep.subr.bf16.mxu0 %v10902_v10  ;;  %3149 = vmatprep.subr.bf16.mxu1 %v10904_v11  ;;  %v10988_v10 = vld [vmem:[%s12106_s29 + $0x344] ss:$16 sps:$4 sm:$0xff]   ;;  %v10991_v11 = vld [vmem:[%s12106_s29 + $0x34c] ss:$16 sps:$4 sm:$0xff]  }
  0xa1   : > { %3107 = vmatpush2.bf16.xpose.msra.mxu0 %v10906_v12  ;;  %3150 = vmatpush2.bf16.xpose.msra.mxu1 %v10907_v13  ;;  %v10986_v12 = vld [vmem:[%s12106_s29 + $0x340] ss:$16 sps:$4 sm:$0xff]   ;;  %v10989_v13 = vld [vmem:[%s12106_s29 + $0x348] ss:$16 sps:$4 sm:$0xff]  }
  0xa2   : > { %3162 = vmatprep.subr.bf16.mxu0 %v10910_v14  ;;  %3205 = vmatprep.subr.bf16.mxu1 %v10913_v15  ;;  %v10994_v14 = vld [vmem:[%s12106_s29 + $0x324] ss:$16 sps:$4 sm:$0xff]   ;;  %v10997_v15 = vld [vmem:[%s12106_s29 + $0x32c] ss:$16 sps:$4 sm:$0xff]  }
  0xa8   : > { %3109 = vmatmul.mubr.bf16.vlgmr.msra.gmra.mxu0 %v12253_v22  ;;  %3152 = vmatmul.mubr.bf16.vlgmr.msra.gmra.mxu1 %v12255_v23 }
  0xa9   : > { %3163 = vmatpush1.bf16.xpose.msra.mxu0 %v10908_v20  ;;  %3206 = vmatpush1.bf16.xpose.msra.mxu1 %v10911_v21  ;;  %v10998_v20 = vld [vmem:[%s12106_s29 + $0x300] ss:$16 sps:$4 sm:$0xff]   ;;  %v11001_v21 = vld [vmem:[%s12106_s29 + $0x308] ss:$16 sps:$4 sm:$0xff]  }
  0xaa   : > { %3164 = vmatprep.subr.bf16.mxu0 %v10916_v24  ;;  %3207 = vmatprep.subr.bf16.mxu1 %v10919_v25  ;;  %v11006_v24 = vld [vmem:[%s12106_s29 + $0x4e4] ss:$16 sps:$4 sm:$0xff]   ;;  %v11009_v25 = vld [vmem:[%s12106_s29 + $0x4ec] ss:$16 sps:$4 sm:$0xff]  }
  0xab   : > { %3194 = vmatprep.mubr.bf16.mxu0 %v12205_v38  ;;  %3237 = vmatprep.mubr.bf16.mxu1 %v12207_v39 }
  0xb1   : > { %3165 = vmatpush1.bf16.xpose.msra.mxu0 %v10914_v26  ;;  %3208 = vmatpush1.bf16.xpose.msra.mxu1 %v10917_v27  ;;  %v11004_v26 = vld [vmem:[%s12106_s29 + $0x4e0] ss:$16 sps:$4 sm:$0xff]   ;;  %v11007_v27 = vld [vmem:[%s12106_s29 + $0x4e8] ss:$16 sps:$4 sm:$0xff]  }
  0xb2   : > { %3166 = vmatprep.subr.bf16.mxu0 %v10922_v28  ;;  %3209 = vmatprep.subr.bf16.mxu1 %v10925_v29  ;;  %v11012_v28 = vld [vmem:[%s12106_s29 + $0x4c4] ss:$16 sps:$4 sm:$0xff]   ;;  %v11015_v29 = vld [vmem:[%s12106_s29 + $0x4cc] ss:$16 sps:$4 sm:$0xff]  }
  0xb9   : > { %3167 = vmatpush1.bf16.xpose.msra.mxu0 %v10920_v30  ;;  %3210 = vmatpush1.bf16.xpose.msra.mxu1 %v10923_v31  ;;  %v11010_v30 = vld [vmem:[%s12106_s29 + $0x4c0] ss:$16 sps:$4 sm:$0xff]   ;;  %v11013_v31 = vld [vmem:[%s12106_s29 + $0x4c8] ss:$16 sps:$4 sm:$0xff]  }
  0xba   : > { %3168 = vmatprep.subr.bf16.mxu0 %v10928_v32  ;;  %3211 = vmatprep.subr.bf16.mxu1 %v10931_v33  ;;  %v11018_v32 = vld [vmem:[%s12106_s29 + $0x4a4] ss:$16 sps:$4 sm:$0xff]   ;;  %v11021_v33 = vld [vmem:[%s12106_s29 + $0x4ac] ss:$16 sps:$4 sm:$0xff]  }
  0xc1   : > { %3169 = vmatpush1.bf16.xpose.msra.mxu0 %v10926_v34  ;;  %3212 = vmatpush1.bf16.xpose.msra.mxu1 %v10929_v35  ;;  %v11016_v34 = vld [vmem:[%s12106_s29 + $0x4a0] ss:$16 sps:$4 sm:$0xff]   ;;  %v11019_v35 = vld [vmem:[%s12106_s29 + $0x4a8] ss:$16 sps:$4 sm:$0xff]  }
  0xc2   : > { %3170 = vmatprep.subr.bf16.mxu0 %v10934_v36  ;;  %3213 = vmatprep.subr.bf16.mxu1 %v10937_v37  ;;  %v11024_v36 = vld [vmem:[%s12106_s29 + $0x484] ss:$16 sps:$4 sm:$0xff]   ;;  %v11027_v37 = vld [vmem:[%s12106_s29 + $0x48c] ss:$16 sps:$4 sm:$0xff]  }
  0xc9   : > { %3171 = vmatpush1.bf16.xpose.msra.mxu0 %v10932_v40  ;;  %3214 = vmatpush1.bf16.xpose.msra.mxu1 %v10935_v41  ;;  %v11022_v40 = vld [vmem:[%s12106_s29 + $0x480] ss:$16 sps:$4 sm:$0xff]   ;;  %v11025_v41 = vld [vmem:[%s12106_s29 + $0x488] ss:$16 sps:$4 sm:$0xff]  }
  0xca   : > { %3172 = vmatprep.subr.bf16.mxu0 %v10940_v42  ;;  %3215 = vmatprep.subr.bf16.mxu1 %v10943_v43  ;;  %v11030_v42 = vld [vmem:[%s12106_s29 + $0x464] ss:$16 sps:$4 sm:$0xff]   ;;  %v11033_v43 = vld [vmem:[%s12106_s29 + $0x46c] ss:$16 sps:$4 sm:$0xff]  }
  0xd1   : > { %3173 = vmatpush1.bf16.xpose.msra.mxu0 %v10938_v44  ;;  %3216 = vmatpush1.bf16.xpose.msra.mxu1 %v10941_v45  ;;  %v11028_v44 = vld [vmem:[%s12106_s29 + $0x460] ss:$16 sps:$4 sm:$0xff]   ;;  %v11031_v45 = vld [vmem:[%s12106_s29 + $0x468] ss:$16 sps:$4 sm:$0xff]  }
  0xd2   : > { %3174 = vmatprep.subr.bf16.mxu0 %v10946_v46  ;;  %3217 = vmatprep.subr.bf16.mxu1 %v10949_v47  ;;  %v11036_v46 = vld [vmem:[%s12106_s29 + $0x444] ss:$16 sps:$4 sm:$0xff]   ;;  %v11039_v47 = vld [vmem:[%s12106_s29 + $0x44c] ss:$16 sps:$4 sm:$0xff]  }
  0xd9   : > { %3175 = vmatpush1.bf16.xpose.msra.mxu0 %v10944_v48  ;;  %3218 = vmatpush1.bf16.xpose.msra.mxu1 %v10947_v49  ;;  %v11034_v48 = vld [vmem:[%s12106_s29 + $0x440] ss:$16 sps:$4 sm:$0xff]   ;;  %v11037_v49 = vld [vmem:[%s12106_s29 + $0x448] ss:$16 sps:$4 sm:$0xff]  }
  0xda   : > { %3176 = vmatprep.subr.bf16.mxu0 %v10952_v50  ;;  %3219 = vmatprep.subr.bf16.mxu1 %v10955_v51  ;;  %v11042_v50 = vld [vmem:[%s12106_s29 + $0x424] ss:$16 sps:$4 sm:$0xff]   ;;  %v11045_v51 = vld [vmem:[%s12106_s29 + $0x42c] ss:$16 sps:$4 sm:$0xff]  }
  0xe1   : > { %3177 = vmatpush1.bf16.xpose.msra.mxu0 %v10950_v52  ;;  %3220 = vmatpush1.bf16.xpose.msra.mxu1 %v10953_v53  ;;  %v11040_v52 = vld [vmem:[%s12106_s29 + $0x420] ss:$16 sps:$4 sm:$0xff]   ;;  %v11043_v53 = vld [vmem:[%s12106_s29 + $0x428] ss:$16 sps:$4 sm:$0xff]  }
  0xe2   : > { %3178 = vmatprep.subr.bf16.mxu0 %v10958_v54  ;;  %3221 = vmatprep.subr.bf16.mxu1 %v10961_v55  ;;  %v11048_v54 = vld [vmem:[%s12106_s29 + $0x404] ss:$16 sps:$4 sm:$0xff]   ;;  %v11051_v55 = vld [vmem:[%s12106_s29 + $0x40c] ss:$16 sps:$4 sm:$0xff]  }
  0xe9   : > { %3179 = vmatpush2.bf16.xpose.msra.mxu0 %v10956_v56  ;;  %3222 = vmatpush2.bf16.xpose.msra.mxu1 %v10959_v57  ;;  %v11046_v56 = vld [vmem:[%s12106_s29 + $0x400] ss:$16 sps:$4 sm:$0xff]   ;;  %v11049_v57 = vld [vmem:[%s12106_s29 + $0x408] ss:$16 sps:$4 sm:$0xff]  }
  0xea   : > { %3180 = vmatprep.subr.bf16.mxu0 %v10964_v58  ;;  %3223 = vmatprep.subr.bf16.mxu1 %v10967_v59  ;;  %v11054_v58 = vld [vmem:[%s12106_s29 + $0x5e4] ss:$16 sps:$4 sm:$0xff]   ;;  %v11057_v59 = vld [vmem:[%s12106_s29 + $0x5ec] ss:$16 sps:$4 sm:$0xff]  }
  0xf1   : > { %3181 = vmatpush2.bf16.xpose.msra.mxu0 %v10962_v60  ;;  %3224 = vmatpush2.bf16.xpose.msra.mxu1 %v10965_v61  ;;  %v11052_v60 = vld [vmem:[%s12106_s29 + $0x5e0] ss:$16 sps:$4 sm:$0xff]   ;;  %v11055_v61 = vld [vmem:[%s12106_s29 + $0x5e8] ss:$16 sps:$4 sm:$0xff]  }
  0xf2   : > { %3182 = vmatprep.subr.bf16.mxu0 %v10970_v62  ;;  %3225 = vmatprep.subr.bf16.mxu1 %v10973_v63  ;;  %v11060_v62 = vld [vmem:[%s12106_s29 + $0x5c4] ss:$16 sps:$4 sm:$0xff]   ;;  %v11063_v63 = vld [vmem:[%s12106_s29 + $0x5cc] ss:$16 sps:$4 sm:$0xff]  }
  0xf9   : > { %3183 = vmatpush2.bf16.xpose.msra.mxu0 %v10968_v0  ;;  %3226 = vmatpush2.bf16.xpose.msra.mxu1 %v10971_v1  ;;  %v11058_v0 = vld [vmem:[%s12106_s29 + $0x5c0] ss:$16 sps:$4 sm:$0xff]   ;;  %v11061_v1 = vld [vmem:[%s12106_s29 + $0x5c8] ss:$16 sps:$4 sm:$0xff]  }
  0xfa   : > { %3184 = vmatprep.subr.bf16.mxu0 %v10976_v2  ;;  %3227 = vmatprep.subr.bf16.mxu1 %v10979_v3  ;;  %v11066_v2 = vld [vmem:[%s12106_s29 + $0x5a4] ss:$16 sps:$4 sm:$0xff]   ;;  %v11069_v3 = vld [vmem:[%s12106_s29 + $0x5ac] ss:$16 sps:$4 sm:$0xff]  }
 0x101   : > { %3185 = vmatpush2.bf16.xpose.msra.mxu0 %v10974_v4  ;;  %3228 = vmatpush2.bf16.xpose.msra.mxu1 %v10977_v5  ;;  %v11064_v4 = vld [vmem:[%s12106_s29 + $0x5a0] ss:$16 sps:$4 sm:$0xff]   ;;  %v11067_v5 = vld [vmem:[%s12106_s29 + $0x5a8] ss:$16 sps:$4 sm:$0xff]  }
 0x102   : > { %3186 = vmatprep.subr.bf16.mxu0 %v10982_v6  ;;  %3229 = vmatprep.subr.bf16.mxu1 %v10985_v7  ;;  %v11072_v6 = vld [vmem:[%s12106_s29 + $0x584] ss:$16 sps:$4 sm:$0xff]   ;;  %v11075_v7 = vld [vmem:[%s12106_s29 + $0x58c] ss:$16 sps:$4 sm:$0xff]  }
 0x109   : > { %3187 = vmatpush2.bf16.xpose.msra.mxu0 %v10980_v8  ;;  %3230 = vmatpush2.bf16.xpose.msra.mxu1 %v10983_v9  ;;  %v11070_v8 = vld [vmem:[%s12106_s29 + $0x580] ss:$16 sps:$4 sm:$0xff]   ;;  %v11073_v9 = vld [vmem:[%s12106_s29 + $0x588] ss:$16 sps:$4 sm:$0xff]  }
 0x10a   : > { %3188 = vmatprep.subr.bf16.mxu0 %v10988_v10  ;;  %3231 = vmatprep.subr.bf16.mxu1 %v10991_v11  ;;  %v11078_v10 = vld [vmem:[%s12106_s29 + $0x564] ss:$16 sps:$4 sm:$0xff]   ;;  %v11081_v11 = vld [vmem:[%s12106_s29 + $0x56c] ss:$16 sps:$4 sm:$0xff]  }
 0x111   : > { %3189 = vmatpush2.bf16.xpose.msra.mxu0 %v10986_v12  ;;  %3232 = vmatpush2.bf16.xpose.msra.mxu1 %v10989_v13  ;;  %v11076_v12 = vld [vmem:[%s12106_s29 + $0x560] ss:$16 sps:$4 sm:$0xff]   ;;  %v11079_v13 = vld [vmem:[%s12106_s29 + $0x568] ss:$16 sps:$4 sm:$0xff]  }
 0x112   : > { %3190 = vmatprep.subr.bf16.mxu0 %v10994_v14  ;;  %3233 = vmatprep.subr.bf16.mxu1 %v10997_v15  ;;  %v11084_v14 = vld [vmem:[%s12106_s29 + $0x544] ss:$16 sps:$4 sm:$0xff]   ;;  %v11087_v15 = vld [vmem:[%s12106_s29 + $0x54c] ss:$16 sps:$4 sm:$0xff]  }
 0x119   : > { %3191 = vmatpush2.bf16.xpose.msra.mxu0 %v10992_v16  ;;  %3234 = vmatpush2.bf16.xpose.msra.mxu1 %v10995_v17  ;;  %v11082_v16 = vld [vmem:[%s12106_s29 + $0x540] ss:$16 sps:$4 sm:$0xff]   ;;  %v11085_v17 = vld [vmem:[%s12106_s29 + $0x548] ss:$16 sps:$4 sm:$0xff]  }
 0x11a   : > { %3192 = vmatprep.subr.bf16.mxu0 %v11000_v18  ;;  %3235 = vmatprep.subr.bf16.mxu1 %v11003_v19  ;;  %v11090_v18 = vld [vmem:[%s12106_s29 + $0x524] ss:$16 sps:$4 sm:$0xff]   ;;  %v11093_v19 = vld [vmem:[%s12106_s29 + $0x52c] ss:$16 sps:$4 sm:$0xff]  }
 0x121   : > { %3193 = vmatpush2.bf16.xpose.msra.mxu0 %v10998_v20  ;;  %3236 = vmatpush2.bf16.xpose.msra.mxu1 %v11001_v21  ;;  %v11088_v20 = vld [vmem:[%s12106_s29 + $0x520] ss:$16 sps:$4 sm:$0xff]   ;;  %v11091_v21 = vld [vmem:[%s12106_s29 + $0x528] ss:$16 sps:$4 sm:$0xff]  }
 0x122   : > { %3248 = vmatprep.subr.bf16.mxu0 %v11006_v24  ;;  %3291 = vmatprep.subr.bf16.mxu1 %v11009_v25  ;;  %v11096_v24 = vld [vmem:[%s12106_s29 + $0x504] ss:$16 sps:$4 sm:$0xff]   ;;  %v11099_v25 = vld [vmem:[%s12106_s29 + $0x50c] ss:$16 sps:$4 sm:$0xff]  }
 0x128   : > { %3195 = vmatmul.mubr.bf16.vlgmr.msra.gmra.mxu0 %v12253_v22  ;;  %3238 = vmatmul.mubr.bf16.vlgmr.msra.gmra.mxu1 %v12255_v23 }
 0x129   : > { %3249 = vmatpush1.bf16.xpose.msra.mxu0 %v11004_v26  ;;  %3292 = vmatpush1.bf16.xpose.msra.mxu1 %v11007_v27  ;;  %v11094_v26 = vld [vmem:[%s12106_s29 + $0x500] ss:$16 sps:$4 sm:$0xff]   ;;  %v11097_v27 = vld [vmem:[%s12106_s29 + $0x508] ss:$16 sps:$4 sm:$0xff]  }
 0x12a   : > { %3250 = vmatprep.subr.bf16.mxu0 %v11012_v28  ;;  %3293 = vmatprep.subr.bf16.mxu1 %v11015_v29  ;;  %v11102_v28 = vld [vmem:[%s12106_s29 + $0x6e4] ss:$16 sps:$4 sm:$0xff]   ;;  %v11105_v29 = vld [vmem:[%s12106_s29 + $0x6ec] ss:$16 sps:$4 sm:$0xff]  }
 0x12b   : > { %3280 = vmatprep.mubr.bf16.mxu0 %v12205_v38  ;;  %3323 = vmatprep.mubr.bf16.mxu1 %v12207_v39 }
 0x131   : > { %3251 = vmatpush1.bf16.xpose.msra.mxu0 %v11010_v30  ;;  %3294 = vmatpush1.bf16.xpose.msra.mxu1 %v11013_v31  ;;  %v11100_v30 = vld [vmem:[%s12106_s29 + $0x6e0] ss:$16 sps:$4 sm:$0xff]   ;;  %v11103_v31 = vld [vmem:[%s12106_s29 + $0x6e8] ss:$16 sps:$4 sm:$0xff]  }
 0x132   : > { %3252 = vmatprep.subr.bf16.mxu0 %v11018_v32  ;;  %3295 = vmatprep.subr.bf16.mxu1 %v11021_v33  ;;  %v11108_v32 = vld [vmem:[%s12106_s29 + $0x6c4] ss:$16 sps:$4 sm:$0xff]   ;;  %v11111_v33 = vld [vmem:[%s12106_s29 + $0x6cc] ss:$16 sps:$4 sm:$0xff]  }
 0x139   : > { %3253 = vmatpush1.bf16.xpose.msra.mxu0 %v11016_v34  ;;  %3296 = vmatpush1.bf16.xpose.msra.mxu1 %v11019_v35  ;;  %v11106_v34 = vld [vmem:[%s12106_s29 + $0x6c0] ss:$16 sps:$4 sm:$0xff]   ;;  %v11109_v35 = vld [vmem:[%s12106_s29 + $0x6c8] ss:$16 sps:$4 sm:$0xff]  }
 0x13a   : > { %3254 = vmatprep.subr.bf16.mxu0 %v11024_v36  ;;  %3297 = vmatprep.subr.bf16.mxu1 %v11027_v37  ;;  %v11114_v36 = vld [vmem:[%s12106_s29 + $0x6a4] ss:$16 sps:$4 sm:$0xff]   ;;  %v11117_v37 = vld [vmem:[%s12106_s29 + $0x6ac] ss:$16 sps:$4 sm:$0xff]  }
 0x141   : > { %3255 = vmatpush1.bf16.xpose.msra.mxu0 %v11022_v40  ;;  %3298 = vmatpush1.bf16.xpose.msra.mxu1 %v11025_v41  ;;  %v11112_v40 = vld [vmem:[%s12106_s29 + $0x6a0] ss:$16 sps:$4 sm:$0xff]   ;;  %v11115_v41 = vld [vmem:[%s12106_s29 + $0x6a8] ss:$16 sps:$4 sm:$0xff]  }
 0x142   : > { %3256 = vmatprep.subr.bf16.mxu0 %v11030_v42  ;;  %3299 = vmatprep.subr.bf16.mxu1 %v11033_v43  ;;  %v11120_v42 = vld [vmem:[%s12106_s29 + $0x684] ss:$16 sps:$4 sm:$0xff]   ;;  %v11123_v43 = vld [vmem:[%s12106_s29 + $0x68c] ss:$16 sps:$4 sm:$0xff]  }
 0x149   : > { %3257 = vmatpush1.bf16.xpose.msra.mxu0 %v11028_v44  ;;  %3300 = vmatpush1.bf16.xpose.msra.mxu1 %v11031_v45  ;;  %v11118_v44 = vld [vmem:[%s12106_s29 + $0x680] ss:$16 sps:$4 sm:$0xff]   ;;  %v11121_v45 = vld [vmem:[%s12106_s29 + $0x688] ss:$16 sps:$4 sm:$0xff]  }
 0x14a   : > { %3258 = vmatprep.subr.bf16.mxu0 %v11036_v46  ;;  %3301 = vmatprep.subr.bf16.mxu1 %v11039_v47  ;;  %v11126_v46 = vld [vmem:[%s12106_s29 + $0x664] ss:$16 sps:$4 sm:$0xff]   ;;  %v11129_v47 = vld [vmem:[%s12106_s29 + $0x66c] ss:$16 sps:$4 sm:$0xff]  }
 0x151   : > { %3259 = vmatpush1.bf16.xpose.msra.mxu0 %v11034_v48  ;;  %3302 = vmatpush1.bf16.xpose.msra.mxu1 %v11037_v49  ;;  %v11124_v48 = vld [vmem:[%s12106_s29 + $0x660] ss:$16 sps:$4 sm:$0xff]   ;;  %v11127_v49 = vld [vmem:[%s12106_s29 + $0x668] ss:$16 sps:$4 sm:$0xff]  }
 0x152   : > { %3260 = vmatprep.subr.bf16.mxu0 %v11042_v50  ;;  %3303 = vmatprep.subr.bf16.mxu1 %v11045_v51  ;;  %v11132_v50 = vld [vmem:[%s12106_s29 + $0x644] ss:$16 sps:$4 sm:$0xff]   ;;  %v11135_v51 = vld [vmem:[%s12106_s29 + $0x64c] ss:$16 sps:$4 sm:$0xff]  }
 0x159   : > { %3261 = vmatpush1.bf16.xpose.msra.mxu0 %v11040_v52  ;;  %3304 = vmatpush1.bf16.xpose.msra.mxu1 %v11043_v53  ;;  %v11130_v52 = vld [vmem:[%s12106_s29 + $0x640] ss:$16 sps:$4 sm:$0xff]   ;;  %v11133_v53 = vld [vmem:[%s12106_s29 + $0x648] ss:$16 sps:$4 sm:$0xff]  }
 0x15a   : > { %3262 = vmatprep.subr.bf16.mxu0 %v11048_v54  ;;  %3305 = vmatprep.subr.bf16.mxu1 %v11051_v55  ;;  %v11138_v54 = vld [vmem:[%s12106_s29 + $0x624] ss:$16 sps:$4 sm:$0xff]   ;;  %v11141_v55 = vld [vmem:[%s12106_s29 + $0x62c] ss:$16 sps:$4 sm:$0xff]  }
 0x161   : > { %3263 = vmatpush1.bf16.xpose.msra.mxu0 %v11046_v56  ;;  %3306 = vmatpush1.bf16.xpose.msra.mxu1 %v11049_v57  ;;  %v11136_v56 = vld [vmem:[%s12106_s29 + $0x620] ss:$16 sps:$4 sm:$0xff]   ;;  %v11139_v57 = vld [vmem:[%s12106_s29 + $0x628] ss:$16 sps:$4 sm:$0xff]  }
 0x162   : > { %3264 = vmatprep.subr.bf16.mxu0 %v11054_v58  ;;  %3307 = vmatprep.subr.bf16.mxu1 %v11057_v59  ;;  %v11144_v58 = vld [vmem:[%s12106_s29 + $0x604] ss:$16 sps:$4 sm:$0xff]   ;;  %v11147_v59 = vld [vmem:[%s12106_s29 + $0x60c] ss:$16 sps:$4 sm:$0xff]  }
 0x169   : > { %3265 = vmatpush2.bf16.xpose.msra.mxu0 %v11052_v60  ;;  %3308 = vmatpush2.bf16.xpose.msra.mxu1 %v11055_v61  ;;  %v11142_v60 = vld [vmem:[%s12106_s29 + $0x600] ss:$16 sps:$4 sm:$0xff]   ;;  %v11145_v61 = vld [vmem:[%s12106_s29 + $0x608] ss:$16 sps:$4 sm:$0xff]  }
 0x16a   : > { %3266 = vmatprep.subr.bf16.mxu0 %v11060_v62  ;;  %3309 = vmatprep.subr.bf16.mxu1 %v11063_v63  ;;  %v11150_v62 = vld [vmem:[%s12106_s29 + $0x7e4] ss:$16 sps:$4 sm:$0xff]   ;;  %v11153_v63 = vld [vmem:[%s12106_s29 + $0x7ec] ss:$16 sps:$4 sm:$0xff]  }
 0x171   : > { %3267 = vmatpush2.bf16.xpose.msra.mxu0 %v11058_v0  ;;  %3310 = vmatpush2.bf16.xpose.msra.mxu1 %v11061_v1  ;;  %v11148_v0 = vld [vmem:[%s12106_s29 + $0x7e0] ss:$16 sps:$4 sm:$0xff]   ;;  %v11151_v1 = vld [vmem:[%s12106_s29 + $0x7e8] ss:$16 sps:$4 sm:$0xff]  }
 0x172   : > { %3268 = vmatprep.subr.bf16.mxu0 %v11066_v2  ;;  %3311 = vmatprep.subr.bf16.mxu1 %v11069_v3  ;;  %v11156_v2 = vld [vmem:[%s12106_s29 + $0x7c4] ss:$16 sps:$4 sm:$0xff]   ;;  %v11159_v3 = vld [vmem:[%s12106_s29 + $0x7cc] ss:$16 sps:$4 sm:$0xff]  }
 0x179   : > { %3269 = vmatpush2.bf16.xpose.msra.mxu0 %v11064_v4  ;;  %3312 = vmatpush2.bf16.xpose.msra.mxu1 %v11067_v5  ;;  %v11154_v4 = vld [vmem:[%s12106_s29 + $0x7c0] ss:$16 sps:$4 sm:$0xff]   ;;  %v11157_v5 = vld [vmem:[%s12106_s29 + $0x7c8] ss:$16 sps:$4 sm:$0xff]  }
 0x17a   : > { %3270 = vmatprep.subr.bf16.mxu0 %v11072_v6  ;;  %3313 = vmatprep.subr.bf16.mxu1 %v11075_v7  ;;  %v11162_v6 = vld [vmem:[%s12106_s29 + $0x7a4] ss:$16 sps:$4 sm:$0xff]   ;;  %v11165_v7 = vld [vmem:[%s12106_s29 + $0x7ac] ss:$16 sps:$4 sm:$0xff]  }
 0x181   : > { %3271 = vmatpush2.bf16.xpose.msra.mxu0 %v11070_v8  ;;  %3314 = vmatpush2.bf16.xpose.msra.mxu1 %v11073_v9  ;;  %v11160_v8 = vld [vmem:[%s12106_s29 + $0x7a0] ss:$16 sps:$4 sm:$0xff]   ;;  %v11163_v9 = vld [vmem:[%s12106_s29 + $0x7a8] ss:$16 sps:$4 sm:$0xff]  }
 0x182   : > { %3272 = vmatprep.subr.bf16.mxu0 %v11078_v10  ;;  %3315 = vmatprep.subr.bf16.mxu1 %v11081_v11  ;;  %v11168_v10 = vld [vmem:[%s12106_s29 + $0x784] ss:$16 sps:$4 sm:$0xff]   ;;  %v11171_v11 = vld [vmem:[%s12106_s29 + $0x78c] ss:$16 sps:$4 sm:$0xff]  }
 0x189   : > { %3273 = vmatpush2.bf16.xpose.msra.mxu0 %v11076_v12  ;;  %3316 = vmatpush2.bf16.xpose.msra.mxu1 %v11079_v13  ;;  %v11166_v12 = vld [vmem:[%s12106_s29 + $0x780] ss:$16 sps:$4 sm:$0xff]   ;;  %v11169_v13 = vld [vmem:[%s12106_s29 + $0x788] ss:$16 sps:$4 sm:$0xff]  }
 0x18a   : > { %3274 = vmatprep.subr.bf16.mxu0 %v11084_v14  ;;  %3317 = vmatprep.subr.bf16.mxu1 %v11087_v15  ;;  %v11174_v14 = vld [vmem:[%s12106_s29 + $0x764] ss:$16 sps:$4 sm:$0xff]   ;;  %v11177_v15 = vld [vmem:[%s12106_s29 + $0x76c] ss:$16 sps:$4 sm:$0xff]  }
 0x191   : > { %3275 = vmatpush2.bf16.xpose.msra.mxu0 %v11082_v16  ;;  %3318 = vmatpush2.bf16.xpose.msra.mxu1 %v11085_v17  ;;  %v11172_v16 = vld [vmem:[%s12106_s29 + $0x760] ss:$16 sps:$4 sm:$0xff]   ;;  %v11175_v17 = vld [vmem:[%s12106_s29 + $0x768] ss:$16 sps:$4 sm:$0xff]  }
 0x192   : > { %3276 = vmatprep.subr.bf16.mxu0 %v11090_v18  ;;  %3319 = vmatprep.subr.bf16.mxu1 %v11093_v19  ;;  %v11180_v18 = vld [vmem:[%s12106_s29 + $0x744] ss:$16 sps:$4 sm:$0xff]   ;;  %v11183_v19 = vld [vmem:[%s12106_s29 + $0x74c] ss:$16 sps:$4 sm:$0xff]  }
 0x199   : > { %3277 = vmatpush2.bf16.xpose.msra.mxu0 %v11088_v20  ;;  %3320 = vmatpush2.bf16.xpose.msra.mxu1 %v11091_v21  ;;  %v11178_v20 = vld [vmem:[%s12106_s29 + $0x740] ss:$16 sps:$4 sm:$0xff]   ;;  %v11181_v21 = vld [vmem:[%s12106_s29 + $0x748] ss:$16 sps:$4 sm:$0xff]  }
 0x19a   : > { %3278 = vmatprep.subr.bf16.mxu0 %v11096_v24  ;;  %3321 = vmatprep.subr.bf16.mxu1 %v11099_v25  ;;  %v11186_v24 = vld [vmem:[%s12106_s29 + $0x724] ss:$16 sps:$4 sm:$0xff]   ;;  %v11189_v25 = vld [vmem:[%s12106_s29 + $0x72c] ss:$16 sps:$4 sm:$0xff]  }
 0x1a1   : > { %3279 = vmatpush2.bf16.xpose.msra.mxu0 %v11094_v26  ;;  %3322 = vmatpush2.bf16.xpose.msra.mxu1 %v11097_v27  ;;  %v11184_v26 = vld [vmem:[%s12106_s29 + $0x720] ss:$16 sps:$4 sm:$0xff]   ;;  %v11187_v27 = vld [vmem:[%s12106_s29 + $0x728] ss:$16 sps:$4 sm:$0xff]  }
 0x1a2   : > { %3334 = vmatprep.subr.bf16.mxu0 %v11102_v28  ;;  %3377 = vmatprep.subr.bf16.mxu1 %v11105_v29  ;;  %v11192_v28 = vld [vmem:[%s12106_s29 + $0x704] ss:$16 sps:$4 sm:$0xff]   ;;  %v11195_v29 = vld [vmem:[%s12106_s29 + $0x70c] ss:$16 sps:$4 sm:$0xff]  }
 0x1a8   : > { %3281 = vmatmul.mubr.bf16.vlgmr.msra.gmra.mxu0 %v12253_v22  ;;  %3324 = vmatmul.mubr.bf16.vlgmr.msra.gmra.mxu1 %v12255_v23 }
 0x1a9   : > { %3335 = vmatpush1.bf16.xpose.msra.mxu0 %v11100_v30  ;;  %3378 = vmatpush1.bf16.xpose.msra.mxu1 %v11103_v31  ;;  %v11190_v30 = vld [vmem:[%s12106_s29 + $0x700] ss:$16 sps:$4 sm:$0xff]   ;;  %v11193_v31 = vld [vmem:[%s12106_s29 + $0x708] ss:$16 sps:$4 sm:$0xff]  }
 0x1aa   : > { %3336 = vmatprep.subr.bf16.mxu0 %v11108_v32  ;;  %3379 = vmatprep.subr.bf16.mxu1 %v11111_v33  ;;  %v11198_v32 = vld [vmem:[%s12106_s29 + $0x8e4] ss:$16 sps:$4 sm:$0xff]   ;;  %v11201_v33 = vld [vmem:[%s12106_s29 + $0x8ec] ss:$16 sps:$4 sm:$0xff]  }
 0x1ab   : > { %3366 = vmatprep.mubr.bf16.mxu0 %v12205_v38  ;;  %3409 = vmatprep.mubr.bf16.mxu1 %v12207_v39 }
 0x1b1   : > { %3337 = vmatpush1.bf16.xpose.msra.mxu0 %v11106_v34  ;;  %3380 = vmatpush1.bf16.xpose.msra.mxu1 %v11109_v35  ;;  %v11196_v34 = vld [vmem:[%s12106_s29 + $0x8e0] ss:$16 sps:$4 sm:$0xff]   ;;  %v11199_v35 = vld [vmem:[%s12106_s29 + $0x8e8] ss:$16 sps:$4 sm:$0xff]  }
 0x1b2   : > { %3338 = vmatprep.subr.bf16.mxu0 %v11114_v36  ;;  %3381 = vmatprep.subr.bf16.mxu1 %v11117_v37  ;;  %v11204_v36 = vld [vmem:[%s12106_s29 + $0x8c4] ss:$16 sps:$4 sm:$0xff]   ;;  %v11207_v37 = vld [vmem:[%s12106_s29 + $0x8cc] ss:$16 sps:$4 sm:$0xff]  }
 0x1b9   : > { %3339 = vmatpush1.bf16.xpose.msra.mxu0 %v11112_v40  ;;  %3382 = vmatpush1.bf16.xpose.msra.mxu1 %v11115_v41  ;;  %v11202_v40 = vld [vmem:[%s12106_s29 + $0x8c0] ss:$16 sps:$4 sm:$0xff]   ;;  %v11205_v41 = vld [vmem:[%s12106_s29 + $0x8c8] ss:$16 sps:$4 sm:$0xff]  }
 0x1ba   : > { %3340 = vmatprep.subr.bf16.mxu0 %v11120_v42  ;;  %3383 = vmatprep.subr.bf16.mxu1 %v11123_v43  ;;  %v11210_v42 = vld [vmem:[%s12106_s29 + $0x8a4] ss:$16 sps:$4 sm:$0xff]   ;;  %v11213_v43 = vld [vmem:[%s12106_s29 + $0x8ac] ss:$16 sps:$4 sm:$0xff]  }
 0x1c1   : > { %3341 = vmatpush1.bf16.xpose.msra.mxu0 %v11118_v44  ;;  %3384 = vmatpush1.bf16.xpose.msra.mxu1 %v11121_v45  ;;  %v11208_v44 = vld [vmem:[%s12106_s29 + $0x8a0] ss:$16 sps:$4 sm:$0xff]   ;;  %v11211_v45 = vld [vmem:[%s12106_s29 + $0x8a8] ss:$16 sps:$4 sm:$0xff]  }
 0x1c2   : > { %3342 = vmatprep.subr.bf16.mxu0 %v11126_v46  ;;  %3385 = vmatprep.subr.bf16.mxu1 %v11129_v47  ;;  %v11216_v46 = vld [vmem:[%s12106_s29 + $0x884] ss:$16 sps:$4 sm:$0xff]   ;;  %v11219_v47 = vld [vmem:[%s12106_s29 + $0x88c] ss:$16 sps:$4 sm:$0xff]  }
 0x1c9   : > { %3343 = vmatpush1.bf16.xpose.msra.mxu0 %v11124_v48  ;;  %3386 = vmatpush1.bf16.xpose.msra.mxu1 %v11127_v49  ;;  %v11214_v48 = vld [vmem:[%s12106_s29 + $0x880] ss:$16 sps:$4 sm:$0xff]   ;;  %v11217_v49 = vld [vmem:[%s12106_s29 + $0x888] ss:$16 sps:$4 sm:$0xff]  }
 0x1ca   : > { %3344 = vmatprep.subr.bf16.mxu0 %v11132_v50  ;;  %3387 = vmatprep.subr.bf16.mxu1 %v11135_v51  ;;  %v11222_v50 = vld [vmem:[%s12106_s29 + $0x864] ss:$16 sps:$4 sm:$0xff]   ;;  %v11225_v51 = vld [vmem:[%s12106_s29 + $0x86c] ss:$16 sps:$4 sm:$0xff]  }
 0x1d1   : > { %3345 = vmatpush1.bf16.xpose.msra.mxu0 %v11130_v52  ;;  %3388 = vmatpush1.bf16.xpose.msra.mxu1 %v11133_v53  ;;  %v11220_v52 = vld [vmem:[%s12106_s29 + $0x860] ss:$16 sps:$4 sm:$0xff]   ;;  %v11223_v53 = vld [vmem:[%s12106_s29 + $0x868] ss:$16 sps:$4 sm:$0xff]  }
 0x1d2   : > { %3346 = vmatprep.subr.bf16.mxu0 %v11138_v54  ;;  %3389 = vmatprep.subr.bf16.mxu1 %v11141_v55  ;;  %v11228_v54 = vld [vmem:[%s12106_s29 + $0x844] ss:$16 sps:$4 sm:$0xff]   ;;  %v11231_v55 = vld [vmem:[%s12106_s29 + $0x84c] ss:$16 sps:$4 sm:$0xff]  }
 0x1d9   : > { %3347 = vmatpush1.bf16.xpose.msra.mxu0 %v11136_v56  ;;  %3390 = vmatpush1.bf16.xpose.msra.mxu1 %v11139_v57  ;;  %v11226_v56 = vld [vmem:[%s12106_s29 + $0x840] ss:$16 sps:$4 sm:$0xff]   ;;  %v11229_v57 = vld [vmem:[%s12106_s29 + $0x848] ss:$16 sps:$4 sm:$0xff]  }
 0x1da   : > { %3348 = vmatprep.subr.bf16.mxu0 %v11144_v58  ;;  %3391 = vmatprep.subr.bf16.mxu1 %v11147_v59  ;;  %v11234_v58 = vld [vmem:[%s12106_s29 + $0x824] ss:$16 sps:$4 sm:$0xff]   ;;  %v11237_v59 = vld [vmem:[%s12106_s29 + $0x82c] ss:$16 sps:$4 sm:$0xff]  }
 0x1e1   : > { %3349 = vmatpush1.bf16.xpose.msra.mxu0 %v11142_v60  ;;  %3392 = vmatpush1.bf16.xpose.msra.mxu1 %v11145_v61  ;;  %v11232_v60 = vld [vmem:[%s12106_s29 + $0x820] ss:$16 sps:$4 sm:$0xff]   ;;  %v11235_v61 = vld [vmem:[%s12106_s29 + $0x828] ss:$16 sps:$4 sm:$0xff]  }
 0x1e2   : > { %3350 = vmatprep.subr.bf16.mxu0 %v11150_v62  ;;  %3393 = vmatprep.subr.bf16.mxu1 %v11153_v63  ;;  %v11240_v62 = vld [vmem:[%s12106_s29 + $0x804] ss:$16 sps:$4 sm:$0xff]   ;;  %v11243_v63 = vld [vmem:[%s12106_s29 + $0x80c] ss:$16 sps:$4 sm:$0xff]  }
 0x1e9   : > { %3351 = vmatpush2.bf16.xpose.msra.mxu0 %v11148_v0  ;;  %3394 = vmatpush2.bf16.xpose.msra.mxu1 %v11151_v1  ;;  %v11238_v0 = vld [vmem:[%s12106_s29 + $0x800] ss:$16 sps:$4 sm:$0xff]   ;;  %v11241_v1 = vld [vmem:[%s12106_s29 + $0x808] ss:$16 sps:$4 sm:$0xff]  }
 0x1ea   : > { %3352 = vmatprep.subr.bf16.mxu0 %v11156_v2  ;;  %3395 = vmatprep.subr.bf16.mxu1 %v11159_v3  ;;  %v11246_v2 = vld [vmem:[%s12106_s29 + $0x9e4] ss:$16 sps:$4 sm:$0xff]   ;;  %v11249_v3 = vld [vmem:[%s12106_s29 + $0x9ec] ss:$16 sps:$4 sm:$0xff]  }
 0x1f1   : > { %3353 = vmatpush2.bf16.xpose.msra.mxu0 %v11154_v4  ;;  %3396 = vmatpush2.bf16.xpose.msra.mxu1 %v11157_v5  ;;  %v11244_v4 = vld [vmem:[%s12106_s29 + $0x9e0] ss:$16 sps:$4 sm:$0xff]   ;;  %v11247_v5 = vld [vmem:[%s12106_s29 + $0x9e8] ss:$16 sps:$4 sm:$0xff]  }
 0x1f2   : > { %3354 = vmatprep.subr.bf16.mxu0 %v11162_v6  ;;  %3397 = vmatprep.subr.bf16.mxu1 %v11165_v7  ;;  %v11252_v6 = vld [vmem:[%s12106_s29 + $0x9c4] ss:$16 sps:$4 sm:$0xff]   ;;  %v11255_v7 = vld [vmem:[%s12106_s29 + $0x9cc] ss:$16 sps:$4 sm:$0xff]  }
 0x1f9   : > { %3355 = vmatpush2.bf16.xpose.msra.mxu0 %v11160_v8  ;;  %3398 = vmatpush2.bf16.xpose.msra.mxu1 %v11163_v9  ;;  %v11250_v8 = vld [vmem:[%s12106_s29 + $0x9c0] ss:$16 sps:$4 sm:$0xff]   ;;  %v11253_v9 = vld [vmem:[%s12106_s29 + $0x9c8] ss:$16 sps:$4 sm:$0xff]  }
 0x1fa   : > { %3356 = vmatprep.subr.bf16.mxu0 %v11168_v10  ;;  %3399 = vmatprep.subr.bf16.mxu1 %v11171_v11  ;;  %v11258_v10 = vld [vmem:[%s12106_s29 + $0x9a4] ss:$16 sps:$4 sm:$0xff]   ;;  %v11261_v11 = vld [vmem:[%s12106_s29 + $0x9ac] ss:$16 sps:$4 sm:$0xff]  }
 0x201   : > { %3357 = vmatpush2.bf16.xpose.msra.mxu0 %v11166_v12  ;;  %3400 = vmatpush2.bf16.xpose.msra.mxu1 %v11169_v13  ;;  %v11256_v12 = vld [vmem:[%s12106_s29 + $0x9a0] ss:$16 sps:$4 sm:$0xff]   ;;  %v11259_v13 = vld [vmem:[%s12106_s29 + $0x9a8] ss:$16 sps:$4 sm:$0xff]  }
 0x202   : > { %3358 = vmatprep.subr.bf16.mxu0 %v11174_v14  ;;  %3401 = vmatprep.subr.bf16.mxu1 %v11177_v15  ;;  %v11264_v14 = vld [vmem:[%s12106_s29 + $0x984] ss:$16 sps:$4 sm:$0xff]   ;;  %v11267_v15 = vld [vmem:[%s12106_s29 + $0x98c] ss:$16 sps:$4 sm:$0xff]  }
 0x209   : > { %3359 = vmatpush2.bf16.xpose.msra.mxu0 %v11172_v16  ;;  %3402 = vmatpush2.bf16.xpose.msra.mxu1 %v11175_v17  ;;  %v11262_v16 = vld [vmem:[%s12106_s29 + $0x980] ss:$16 sps:$4 sm:$0xff]   ;;  %v11265_v17 = vld [vmem:[%s12106_s29 + $0x988] ss:$16 sps:$4 sm:$0xff]  }
 0x20a   : > { %3360 = vmatprep.subr.bf16.mxu0 %v11180_v18  ;;  %3403 = vmatprep.subr.bf16.mxu1 %v11183_v19  ;;  %v11270_v18 = vld [vmem:[%s12106_s29 + $0x964] ss:$16 sps:$4 sm:$0xff]   ;;  %v11273_v19 = vld [vmem:[%s12106_s29 + $0x96c] ss:$16 sps:$4 sm:$0xff]  }
 0x211   : > { %3361 = vmatpush2.bf16.xpose.msra.mxu0 %v11178_v20  ;;  %3404 = vmatpush2.bf16.xpose.msra.mxu1 %v11181_v21  ;;  %v11268_v20 = vld [vmem:[%s12106_s29 + $0x960] ss:$16 sps:$4 sm:$0xff]   ;;  %v11271_v21 = vld [vmem:[%s12106_s29 + $0x968] ss:$16 sps:$4 sm:$0xff]  }
 0x212   : > { %3362 = vmatprep.subr.bf16.mxu0 %v11186_v24  ;;  %3405 = vmatprep.subr.bf16.mxu1 %v11189_v25  ;;  %v11276_v24 = vld [vmem:[%s12106_s29 + $0x944] ss:$16 sps:$4 sm:$0xff]   ;;  %v11279_v25 = vld [vmem:[%s12106_s29 + $0x94c] ss:$16 sps:$4 sm:$0xff]  }
 0x219   : > { %3363 = vmatpush2.bf16.xpose.msra.mxu0 %v11184_v26  ;;  %3406 = vmatpush2.bf16.xpose.msra.mxu1 %v11187_v27  ;;  %v11274_v26 = vld [vmem:[%s12106_s29 + $0x940] ss:$16 sps:$4 sm:$0xff]   ;;  %v11277_v27 = vld [vmem:[%s12106_s29 + $0x948] ss:$16 sps:$4 sm:$0xff]  }
 0x21a   : > { %3364 = vmatprep.subr.bf16.mxu0 %v11192_v28  ;;  %3407 = vmatprep.subr.bf16.mxu1 %v11195_v29  ;;  %v11282_v28 = vld [vmem:[%s12106_s29 + $0x924] ss:$16 sps:$4 sm:$0xff]   ;;  %v11285_v29 = vld [vmem:[%s12106_s29 + $0x92c] ss:$16 sps:$4 sm:$0xff]  }
 0x221   : > { %3365 = vmatpush2.bf16.xpose.msra.mxu0 %v11190_v30  ;;  %3408 = vmatpush2.bf16.xpose.msra.mxu1 %v11193_v31  ;;  %v11280_v30 = vld [vmem:[%s12106_s29 + $0x920] ss:$16 sps:$4 sm:$0xff]   ;;  %v11283_v31 = vld [vmem:[%s12106_s29 + $0x928] ss:$16 sps:$4 sm:$0xff]  }
 0x222   : > { %3420 = vmatprep.subr.bf16.mxu0 %v11198_v32  ;;  %3463 = vmatprep.subr.bf16.mxu1 %v11201_v33  ;;  %v11288_v32 = vld [vmem:[%s12106_s29 + $0x904] ss:$16 sps:$4 sm:$0xff]   ;;  %v11291_v33 = vld [vmem:[%s12106_s29 + $0x90c] ss:$16 sps:$4 sm:$0xff]  }
 0x228   : > { %3367 = vmatmul.mubr.bf16.vlgmr.msra.gmra.mxu0 %v12253_v22  ;;  %3410 = vmatmul.mubr.bf16.vlgmr.msra.gmra.mxu1 %v12255_v23 }
 0x229   : > { %3421 = vmatpush1.bf16.xpose.msra.mxu0 %v11196_v34  ;;  %3464 = vmatpush1.bf16.xpose.msra.mxu1 %v11199_v35  ;;  %v11286_v34 = vld [vmem:[%s12106_s29 + $0x900] ss:$16 sps:$4 sm:$0xff]   ;;  %v11289_v35 = vld [vmem:[%s12106_s29 + $0x908] ss:$16 sps:$4 sm:$0xff]  }
 0x22a   : > { %3422 = vmatprep.subr.bf16.mxu0 %v11204_v36  ;;  %3465 = vmatprep.subr.bf16.mxu1 %v11207_v37  ;;  %v11294_v36 = vld [vmem:[%s12106_s29 + $0xae4] ss:$16 sps:$4 sm:$0xff]   ;;  %v11297_v37 = vld [vmem:[%s12106_s29 + $0xaec] ss:$16 sps:$4 sm:$0xff]  }
 0x22b   : > { %3452 = vmatprep.mubr.bf16.mxu0 %v12205_v38  ;;  %3495 = vmatprep.mubr.bf16.mxu1 %v12207_v39 }
 0x231   : > { %3423 = vmatpush1.bf16.xpose.msra.mxu0 %v11202_v40  ;;  %3466 = vmatpush1.bf16.xpose.msra.mxu1 %v11205_v41  ;;  %v11292_v40 = vld [vmem:[%s12106_s29 + $0xae0] ss:$16 sps:$4 sm:$0xff]   ;;  %v11295_v41 = vld [vmem:[%s12106_s29 + $0xae8] ss:$16 sps:$4 sm:$0xff]  }
 0x232   : > { %3424 = vmatprep.subr.bf16.mxu0 %v11210_v42  ;;  %3467 = vmatprep.subr.bf16.mxu1 %v11213_v43  ;;  %v11300_v42 = vld [vmem:[%s12106_s29 + $0xac4] ss:$16 sps:$4 sm:$0xff]   ;;  %v11303_v43 = vld [vmem:[%s12106_s29 + $0xacc] ss:$16 sps:$4 sm:$0xff]  }
 0x239   : > { %3425 = vmatpush1.bf16.xpose.msra.mxu0 %v11208_v44  ;;  %3468 = vmatpush1.bf16.xpose.msra.mxu1 %v11211_v45  ;;  %v11298_v44 = vld [vmem:[%s12106_s29 + $0xac0] ss:$16 sps:$4 sm:$0xff]   ;;  %v11301_v45 = vld [vmem:[%s12106_s29 + $0xac8] ss:$16 sps:$4 sm:$0xff]  }
 0x23a   : > { %3426 = vmatprep.subr.bf16.mxu0 %v11216_v46  ;;  %3469 = vmatprep.subr.bf16.mxu1 %v11219_v47  ;;  %v11306_v46 = vld [vmem:[%s12106_s29 + $0xaa4] ss:$16 sps:$4 sm:$0xff]   ;;  %v11309_v47 = vld [vmem:[%s12106_s29 + $0xaac] ss:$16 sps:$4 sm:$0xff]  }
 0x241   : > { %3427 = vmatpush1.bf16.xpose.msra.mxu0 %v11214_v48  ;;  %3470 = vmatpush1.bf16.xpose.msra.mxu1 %v11217_v49  ;;  %v11304_v48 = vld [vmem:[%s12106_s29 + $0xaa0] ss:$16 sps:$4 sm:$0xff]   ;;  %v11307_v49 = vld [vmem:[%s12106_s29 + $0xaa8] ss:$16 sps:$4 sm:$0xff]  }
 0x242   : > { %3428 = vmatprep.subr.bf16.mxu0 %v11222_v50  ;;  %3471 = vmatprep.subr.bf16.mxu1 %v11225_v51  ;;  %v11312_v50 = vld [vmem:[%s12106_s29 + $0xa84] ss:$16 sps:$4 sm:$0xff]   ;;  %v11313_v51 = vld [vmem:[%s12106_s29 + $0xa88] ss:$16 sps:$4 sm:$0xff]  }
 0x249   : > { %3429 = vmatpush1.bf16.xpose.msra.mxu0 %v11220_v52  ;;  %3472 = vmatpush1.bf16.xpose.msra.mxu1 %v11223_v53  ;;  %v11318_v52 = vld [vmem:[%s12106_s29 + $0xa64] ss:$16 sps:$4 sm:$0xff]   ;;  %v11321_v53 = vld [vmem:[%s12106_s29 + $0xa6c] ss:$16 sps:$4 sm:$0xff]  }
 0x24a   : > { %3430 = vmatprep.subr.bf16.mxu0 %v11228_v54  ;;  %3473 = vmatprep.subr.bf16.mxu1 %v11231_v55  ;;  %v11316_v54 = vld [vmem:[%s12106_s29 + $0xa60] ss:$16 sps:$4 sm:$0xff]   ;;  %v11319_v55 = vld [vmem:[%s12106_s29 + $0xa68] ss:$16 sps:$4 sm:$0xff]  }
 0x251   : > { %3431 = vmatpush1.bf16.xpose.msra.mxu0 %v11226_v56  ;;  %3474 = vmatpush1.bf16.xpose.msra.mxu1 %v11229_v57  ;;  %v11324_v56 = vld [vmem:[%s12106_s29 + $0xa44] ss:$16 sps:$4 sm:$0xff]   ;;  %v11327_v57 = vld [vmem:[%s12106_s29 + $0xa4c] ss:$16 sps:$4 sm:$0xff]  }
 0x252   : > { %3432 = vmatprep.subr.bf16.mxu0 %v11234_v58  ;;  %3475 = vmatprep.subr.bf16.mxu1 %v11237_v59  ;;  %v11322_v58 = vld [vmem:[%s12106_s29 + $0xa40] ss:$16 sps:$4 sm:$0xff]   ;;  %v11325_v59 = vld [vmem:[%s12106_s29 + $0xa48] ss:$16 sps:$4 sm:$0xff]  }
 0x259   : > { %3433 = vmatpush1.bf16.xpose.msra.mxu0 %v11232_v60  ;;  %3476 = vmatpush1.bf16.xpose.msra.mxu1 %v11235_v61  ;;  %v11330_v60 = vld [vmem:[%s12106_s29 + $0xa24] ss:$16 sps:$4 sm:$0xff]   ;;  %v11333_v61 = vld [vmem:[%s12106_s29 + $0xa2c] ss:$16 sps:$4 sm:$0xff]  }
 0x25a   : > { %3434 = vmatprep.subr.bf16.mxu0 %v11240_v62  ;;  %3477 = vmatprep.subr.bf16.mxu1 %v11243_v63  ;;  %v11328_v62 = vld [vmem:[%s12106_s29 + $0xa20] ss:$16 sps:$4 sm:$0xff]   ;;  %v11331_v63 = vld [vmem:[%s12106_s29 + $0xa28] ss:$16 sps:$4 sm:$0xff]  }
 0x261   : > { %3435 = vmatpush1.bf16.xpose.msra.mxu0 %v11238_v0  ;;  %3478 = vmatpush1.bf16.xpose.msra.mxu1 %v11241_v1  ;;  %v11336_v0 = vld [vmem:[%s12106_s29 + $0xa04] ss:$16 sps:$4 sm:$0xff]   ;;  %v11339_v1 = vld [vmem:[%s12106_s29 + $0xa0c] ss:$16 sps:$4 sm:$0xff]  }
 0x262   : > { %3436 = vmatprep.subr.bf16.mxu0 %v11246_v2  ;;  %3479 = vmatprep.subr.bf16.mxu1 %v11249_v3  ;;  %v11334_v2 = vld [vmem:[%s12106_s29 + $0xa00] ss:$16 sps:$4 sm:$0xff]   ;;  %v11337_v3 = vld [vmem:[%s12106_s29 + $0xa08] ss:$16 sps:$4 sm:$0xff]  }
 0x269   : > { %3437 = vmatpush2.bf16.xpose.msra.mxu0 %v11244_v4  ;;  %3480 = vmatpush2.bf16.xpose.msra.mxu1 %v11247_v5  ;;  %v11342_v4 = vld [vmem:[%s12106_s29 + $0xbe4] ss:$16 sps:$4 sm:$0xff]   ;;  %v11345_v5 = vld [vmem:[%s12106_s29 + $0xbec] ss:$16 sps:$4 sm:$0xff]  }
 0x26a   : > { %3438 = vmatprep.subr.bf16.mxu0 %v11252_v6  ;;  %3481 = vmatprep.subr.bf16.mxu1 %v11255_v7  ;;  %v11340_v6 = vld [vmem:[%s12106_s29 + $0xbe0] ss:$16 sps:$4 sm:$0xff]   ;;  %v11343_v7 = vld [vmem:[%s12106_s29 + $0xbe8] ss:$16 sps:$4 sm:$0xff]  }
 0x271   : > { %3439 = vmatpush2.bf16.xpose.msra.mxu0 %v11250_v8  ;;  %3482 = vmatpush2.bf16.xpose.msra.mxu1 %v11253_v9  ;;  %v11348_v8 = vld [vmem:[%s12106_s29 + $0xbc4] ss:$16 sps:$4 sm:$0xff]   ;;  %v11351_v9 = vld [vmem:[%s12106_s29 + $0xbcc] ss:$16 sps:$4 sm:$0xff]  }
 0x272   : > { %3440 = vmatprep.subr.bf16.mxu0 %v11258_v10  ;;  %3483 = vmatprep.subr.bf16.mxu1 %v11261_v11  ;;  %v12567_v10 = vpop.f32.mrf.mxu0  ;;  %v11346_v11 = vld [vmem:[%s12106_s29 + $0xbc0] ss:$16 sps:$4 sm:$0xff]  }
 0x279   : > { %3441 = vmatpush2.bf16.xpose.msra.mxu0 %v11256_v12  ;;  %3484 = vmatpush2.bf16.xpose.msra.mxu1 %v11259_v13  ;;  %v11349_v12 = vld [vmem:[%s12106_s29 + $0xbc8] ss:$16 sps:$4 sm:$0xff]   ;;  %v11354_v13 = vld [vmem:[%s12106_s29 + $0xba4] ss:$16 sps:$4 sm:$0xff]  }
 0x27a   : > { %3442 = vmatprep.subr.bf16.mxu0 %v11264_v14  ;;  %3485 = vmatprep.subr.bf16.mxu1 %v11267_v15  ;;  %v11357_v14 = vld [vmem:[%s12106_s29 + $0xbac] ss:$16 sps:$4 sm:$0xff]   ;;  %v12573_v15 = vpop.f32.mrf.mxu0 }
 0x281   : > { %3443 = vmatpush2.bf16.xpose.msra.mxu0 %v11262_v16  ;;  %3486 = vmatpush2.bf16.xpose.msra.mxu1 %v11265_v17  ;;  %v12575_v16 = vpop.f32.mrf.mxu1  ;;  %v12577_v17 = vpop.f32.mrf.mxu0 }
 0x282   : > { %3444 = vmatprep.subr.bf16.mxu0 %v11270_v18  ;;  %3487 = vmatprep.subr.bf16.mxu1 %v11273_v19  ;;  %v11352_v19 = vld [vmem:[%s12106_s29 + $0xba0] ss:$16 sps:$4 sm:$0xff]  }
 0x283   : > { %v12579_v18 = vpop.f32.mrf.mxu1 }
 0x289   : > { %3445 = vmatpush2.bf16.xpose.msra.mxu0 %v11268_v20  ;;  %3488 = vmatpush2.bf16.xpose.msra.mxu1 %v11271_v21  ;;  %v11355_v20 = vld [vmem:[%s12106_s29 + $0xba8] ss:$16 sps:$4 sm:$0xff]   ;;  %v11360_v21 = vld [vmem:[%s12106_s29 + $0xb84] ss:$16 sps:$4 sm:$0xff]  }
 0x28a   : > { %3446 = vmatprep.subr.bf16.mxu0 %v11276_v24  ;;  %3489 = vmatprep.subr.bf16.mxu1 %v11279_v25  ;;  %v11363_v24 = vld [vmem:[%s12106_s29 + $0xb8c] ss:$16 sps:$4 sm:$0xff]   ;;  %v12585_v25 = vpop.f32.mrf.mxu0 }
 0x291   : > { %3447 = vmatpush2.bf16.xpose.msra.mxu0 %v11274_v26  ;;  %3490 = vmatpush2.bf16.xpose.msra.mxu1 %v11277_v27  ;;  %v12587_v26 = vpop.f32.mrf.mxu1  ;;  %v12589_v27 = vpop.f32.mrf.mxu0 }
 0x292   : > { %3448 = vmatprep.subr.bf16.mxu0 %v11282_v28  ;;  %3491 = vmatprep.subr.bf16.mxu1 %v11285_v29 }
 0x293   : > { %v12591_v28 = vpop.f32.mrf.mxu1  ;;  %v12593_v29 = vpop.f32.mrf.mxu0 }
 0x299   : > { %3449 = vmatpush2.bf16.xpose.msra.mxu0 %v11280_v30  ;;  %3492 = vmatpush2.bf16.xpose.msra.mxu1 %v11283_v31  ;;  %v11358_v30 = vld [vmem:[%s12106_s29 + $0xb80] ss:$16 sps:$4 sm:$0xff]   ;;  %v11361_v31 = vld [vmem:[%s12106_s29 + $0xb88] ss:$16 sps:$4 sm:$0xff]  }
 0x29a   : > { %3450 = vmatprep.subr.bf16.mxu0 %v11288_v32  ;;  %3493 = vmatprep.subr.bf16.mxu1 %v11291_v33  ;;  %v11366_v32 = vld [vmem:[%s12106_s29 + $0xb64] ss:$16 sps:$4 sm:$0xff]   ;;  %v11369_v33 = vld [vmem:[%s12106_s29 + $0xb6c] ss:$16 sps:$4 sm:$0xff]  }
 0x2a1   : > { %3451 = vmatpush2.bf16.xpose.msra.mxu0 %v11286_v34  ;;  %3494 = vmatpush2.bf16.xpose.msra.mxu1 %v11289_v35  ;;  %v12599_v34 = vpop.f32.mrf.mxu1  ;;  %v12601_v35 = vpop.f32.mrf.mxu0 }
 0x2a2   : > { %3506 = vmatprep.subr.bf16.mxu0 %v11294_v36  ;;  %3549 = vmatprep.subr.bf16.mxu1 %v11297_v37 }
 0x2a3   : > { %v12603_v36 = vpop.f32.mrf.mxu1  ;;  %v12605_v37 = vpop.f32.mrf.mxu0 }
 0x2a8   : > { %3453 = vmatmul.mubr.bf16.vlgmr.msra.gmra.mxu0 %v12253_v22  ;;  %3496 = vmatmul.mubr.bf16.vlgmr.msra.gmra.mxu1 %v12255_v23 }
 0x2a9   : > { %3507 = vmatpush1.bf16.xpose.msra.mxu0 %v11292_v40  ;;  %3550 = vmatpush1.bf16.xpose.msra.mxu1 %v11295_v41  ;;  %v11364_v40 = vld [vmem:[%s12106_s29 + $0xb60] ss:$16 sps:$4 sm:$0xff]   ;;  %v11367_v41 = vld [vmem:[%s12106_s29 + $0xb68] ss:$16 sps:$4 sm:$0xff]  }
 0x2aa   : > { %3508 = vmatprep.subr.bf16.mxu0 %v11300_v42  ;;  %3551 = vmatprep.subr.bf16.mxu1 %v11303_v43  ;;  %v11372_v42 = vld [vmem:[%s12106_s29 + $0xb44] ss:$16 sps:$4 sm:$0xff]   ;;  %v11375_v43 = vld [vmem:[%s12106_s29 + $0xb4c] ss:$16 sps:$4 sm:$0xff]  }
 0x2ab   : > { %3538 = vmatprep.mubr.bf16.mxu0 %v12205_v38  ;;  %3581 = vmatprep.mubr.bf16.mxu1 %v12207_v39  ;;  %v11315_v38 = vld [vmem:[%s12106_s29 + $0xa8c] ss:$16 sps:$4 sm:$0xff]   ;;  %v11310_v39 = vld [vmem:[%s12106_s29 + $0xa80] ss:$16 sps:$4 sm:$0xff]  }
 0x2b1   : > { %3509 = vmatpush1.bf16.xpose.msra.mxu0 %v11298_v44  ;;  %3552 = vmatpush1.bf16.xpose.msra.mxu1 %v11301_v45  ;;  %v12611_v44 = vpop.f32.mrf.mxu1  ;;  %v12613_v45 = vpop.f32.mrf.mxu0 }
 0x2b2   : > { %3510 = vmatprep.subr.bf16.mxu0 %v11306_v46  ;;  %3553 = vmatprep.subr.bf16.mxu1 %v11309_v47 }
 0x2b3   : > { %v12615_v46 = vpop.f32.mrf.mxu1  ;;  %v3284_v47 = vpop.f32.mrf.mxu0 }
 0x2b9   : > { %3511 = vmatpush1.bf16.xpose.msra.mxu0 %v11304_v48  ;;  %3554 = vmatpush1.bf16.xpose.msra.mxu1 %v11307_v49  ;;  %v12617_v48 = vpop.f32.mrf.mxu1  ;;  %v11370_v49 = vld [vmem:[%s12106_s29 + $0xb40] ss:$16 sps:$4 sm:$0xff]  }
 0x2ba   : > { %3512 = vmatprep.subr.bf16.mxu0 %v11312_v50  ;;  %3555 = vmatprep.subr.bf16.mxu1 %v11315_v38  ;;  %v11373_v50 = vld [vmem:[%s12106_s29 + $0xb48] ss:$16 sps:$4 sm:$0xff]   ;;  %v1096_v38 = vlaneseq }
 0x2c1   : > { %3513 = vmatpush1.bf16.xpose.msra.mxu0 %v11310_v39  ;;  %3556 = vmatpush1.bf16.xpose.msra.mxu1 %v11313_v51  ;;  %v11378_v39 = vld [vmem:[%s12106_s29 + $0xb24] ss:$16 sps:$4 sm:$0xff]   ;;  %v11381_v51 = vld [vmem:[%s12106_s29 + $0xb2c] ss:$16 sps:$4 sm:$0xff]  }
 0x2c2   : > { %3514 = vmatprep.subr.bf16.mxu0 %v11318_v52  ;;  %3557 = vmatprep.subr.bf16.mxu1 %v11321_v53  ;;  %v12623_v52 = vpop.f32.mrf.mxu0  ;;  %v3327_v53 = vpop.f32.mrf.mxu1 }
 0x2c9   : > { %3515 = vmatpush1.bf16.xpose.msra.mxu0 %v11316_v54  ;;  %3558 = vmatpush1.bf16.xpose.msra.mxu1 %v11319_v55  ;;  %v12625_v54 = vshrl.u32 %v1096_v38, 7  ;;  %v3288_v55 = vpop.f32.mrf.mxu0 }
 0x2ca   : > { %3516 = vmatprep.subr.bf16.mxu0 %v11324_v56  ;;  %3559 = vmatprep.subr.bf16.mxu1 %v11327_v57 }
 0x2cb   : > { %v1118_v56 = vsub.s32 5, %v12625_v54  ;;  %v1126_v57 = vsub.s32 7, %v12625_v54 }
 0x2d1   : > { %3517 = vmatpush1.bf16.xpose.msra.mxu0 %v11322_v58  ;;  %3560 = vmatpush1.bf16.xpose.msra.mxu1 %v11325_v59  ;;  %v12629_v58 = vpop.f32.mrf.mxu1 }
 0x2d2   : > { %3518 = vmatprep.subr.bf16.mxu0 %v11330_v60  ;;  %3561 = vmatprep.subr.bf16.mxu1 %v11333_v61  ;;  %v11376_v60 = vld [vmem:[%s12106_s29 + $0xb20] ss:$16 sps:$4 sm:$0xff]   ;;  %v11379_v61 = vld [vmem:[%s12106_s29 + $0xb28] ss:$16 sps:$4 sm:$0xff]  }
 0x2d9   : > { %3519 = vmatpush1.bf16.xpose.msra.mxu0 %v11328_v62  ;;  %3562 = vmatpush1.bf16.xpose.msra.mxu1 %v11331_v63  ;;  %v11384_v62 = vld [vmem:[%s12106_s29 + $0xb04] ss:$16 sps:$4 sm:$0xff]   ;;  %v11387_v63 = vld [vmem:[%s12106_s29 + $0xb0c] ss:$16 sps:$4 sm:$0xff]  }
 0x2da   : > { %3520 = vmatprep.subr.bf16.mxu0 %v11336_v0  ;;  %3563 = vmatprep.subr.bf16.mxu1 %v11339_v1  ;;  %v1088_v0 = vld [vmem:[%s12113_s18] sm:$0xff]  ;;  %v12637_v1 = vsub.s32 1, %v12625_v54 }
 0x2e1   : > { %3521 = vmatpush1.bf16.xpose.msra.mxu0 %v11334_v2  ;;  %3564 = vmatpush1.bf16.xpose.msra.mxu1 %v11337_v3  ;;  %v12640_v2 = vsub.s32 3, %v12625_v54  ;;  %v1119_v3 = vrot.slane %v1088_v0, %v1118_v56 }
 0x2e2   : > { %3522 = vmatprep.subr.bf16.mxu0 %v11342_v4  ;;  %3565 = vmatprep.subr.bf16.mxu1 %v11345_v5  ;;  %v1127_v4 = vrot.slane %v1088_v0, %v1126_v57  ;;  %v3331_v5 = vpop.f32.mrf.mxu1 }
 0x2e8   : > { %v3368_v59 = vpop.f32.mrf.mxu0 }
 0x2e9   : > { %3523 = vmatpush2.bf16.xpose.msra.mxu0 %v11340_v6  ;;  %3566 = vmatpush2.bf16.xpose.msra.mxu1 %v11343_v7  ;;  %v1103_v7 = vrot.slane %v1088_v0, %v12637_v1 }
 0x2ea   : > { %3524 = vmatprep.subr.bf16.mxu0 %v11348_v8  ;;  %3567 = vmatprep.subr.bf16.mxu1 %v11351_v9  ;;  %v3370_v6 = vpop.f32.mrf.mxu0  ;;  %v1114_v8 = vsub.s32 4, %v12625_v54  ;;  %v3411_v9 = vpop.f32.mrf.mxu1 }
 0x2f1   : > { %3525 = vmatpush2.bf16.xpose.msra.mxu0 %v11346_v11  ;;  %3568 = vmatpush2.bf16.xpose.msra.mxu1 %v11349_v12  ;;  %v1111_v11 = vrot.slane %v1088_v0, %v12640_v2  ;;  %v3285_v12 = vadd.f32 %v3284_v47, %v1119_v3 }
 0x2f2   : > { %3526 = vmatprep.subr.bf16.mxu0 %v11354_v13  ;;  %3569 = vmatprep.subr.bf16.mxu1 %v11357_v14  ;;  %v1122_v13 = vsub.s32 6, %v12625_v54  ;;  %v3371_v14 = vadd.f32 %v3370_v6, %v1127_v4  ;;  %v3117_v6 = vadd.f32 %v12585_v25, %v1103_v7 }
 0x2f9   : > { %3527 = vmatpush2.bf16.xpose.msra.mxu0 %v11352_v19  ;;  %3570 = vmatpush2.bf16.xpose.msra.mxu1 %v11355_v20  ;;  %v12651_v19 = vsub.s32 0, %v12625_v54  ;;  %v11382_v20 = vld [vmem:[%s12106_s29 + $0xb00] ss:$16 sps:$4 sm:$0xff]  }
 0x2fa   : > { %3528 = vmatprep.subr.bf16.mxu0 %v11360_v21  ;;  %3571 = vmatprep.subr.bf16.mxu1 %v11363_v24  ;;  %v11385_v21 = vld [vmem:[%s12106_s29 + $0xb08] ss:$16 sps:$4 sm:$0xff]   ;;  %v12656_v24 = vsub.s32 2, %v12625_v54 }
 0x2fb   : > { %v1099_v47 = vrot.slane %v1088_v0, %v12651_v19 }
 0x301   : > { %3529 = vmatpush2.bf16.xpose.msra.mxu0 %v11358_v30  ;;  %3572 = vmatpush2.bf16.xpose.msra.mxu1 %v11361_v31  ;;  %v3372_v30 = vpop.f32.mrf.mxu0  ;;  %v3113_v31 = vadd.f32 %v12573_v15, %v1103_v7 }
 0x302   : > { %3530 = vmatprep.subr.bf16.mxu0 %v11366_v32  ;;  %3573 = vmatprep.subr.bf16.mxu1 %v11369_v33  ;;  %v1115_v32 = vrot.slane %v1088_v0, %v1114_v8  ;;  %v3413_v33 = vpop.f32.mrf.mxu1 }
 0x303   : > { %v3156_v15 = vadd.f32 %v12579_v18, %v3113_v31  ;;  %v3203_v18 = vadd.f32 %v12605_v37, %v1111_v11 }
 0x304   : > { %v3283_v38 = vadd.f32 %v12613_v45, %v1115_v32  ;;  %v3287_v37 = vadd.f32 %v12623_v52, %v1115_v32 }
 0x309   : > { %3531 = vmatpush2.bf16.xpose.msra.mxu0 %v11364_v40  ;;  %3574 = vmatpush2.bf16.xpose.msra.mxu1 %v11367_v41  ;;  %v3199_v40 = vadd.f32 %v12593_v29, %v1111_v11  ;;  %v3328_v41 = vadd.f32 %v3327_v53, %v3285_v12  ;;  %v3111_v53 = vadd.f32 %v12567_v10, %v1099_v47 }
 0x30a   : > { %3532 = vmatprep.subr.bf16.mxu0 %v11372_v42  ;;  %3575 = vmatprep.subr.bf16.mxu1 %v11375_v43  ;;  %v1123_v42 = vrot.slane %v1088_v0, %v1122_v13  ;;  %v3414_v43 = vadd.f32 %v3413_v33, %v3371_v14 }
 0x30b   : > { %v3242_v29 = vadd.f32 %v12603_v36, %v3199_v40  ;;  %v3154_v10 = vadd.f32 %v12575_v16, %v3111_v53 }
 0x30d   : > { %v3595_v12 = vmul.f32 0.0625, %v3242_v29  ;;  %v3592_v16 = vmul.f32 0.0625, %v3154_v10 }
 0x311   : > { %3533 = vmatpush2.bf16.xpose.msra.mxu0 %v11370_v49  ;;  %3576 = vmatpush2.bf16.xpose.msra.mxu1 %v11373_v50  ;;  %v1107_v49 = vrot.slane %v1088_v0, %v12656_v24  ;;  %v3374_v50 = vpop.f32.mrf.mxu0  ;;  %v3326_v0 = vadd.f32 %v12617_v48, %v3283_v38 }
 0x312   : > { %3534 = vmatprep.subr.bf16.mxu0 %v11378_v39  ;;  %3577 = vmatprep.subr.bf16.mxu1 %v11381_v51  ;;  %v3369_v39 = vadd.f32 %v3368_v59, %v1123_v42  ;;  %v3415_v51 = vpop.f32.mrf.mxu1  ;;  %v3373_v59 = vadd.f32 %v3372_v30, %v1123_v42 }
 0x313   : > { %v3201_v25 = vadd.f32 %v12601_v35, %v1107_v49 }
 0x314   : > { %v3412_v14 = vadd.f32 %v3411_v9, %v3369_v39  ;;  %v3417_v45 = vpop.f32.mrf.mxu1  ;;  %v3416_v35 = vadd.f32 %v3415_v51, %v3373_v59 }
 0x319   : > { %3535 = vmatpush2.bf16.xpose.msra.mxu0 %v11376_v60  ;;  %3578 = vmatpush2.bf16.xpose.msra.mxu1 %v11379_v61  ;;  %v3289_v60 = vadd.f32 %v3288_v55, %v1119_v3  ;;  %v3375_v61 = vadd.f32 %v3374_v50, %v1127_v4 }
 0x31a   : > { %3536 = vmatprep.subr.bf16.mxu0 %v11384_v62  ;;  %3579 = vmatprep.subr.bf16.mxu1 %v11387_v63  ;;  %v3197_v62 = vadd.f32 %v12589_v27, %v1107_v49  ;;  %v3593_v63 = vmul.f32 0.0625, %v3156_v15  ;;  %v3115_v27 = vadd.f32 %v12577_v17, %v1099_v47  ;;  %v3244_v17 = vadd.f32 %v12611_v44, %v3201_v25 }
 0x31b   : > { %v3332_v36 = vadd.f32 %v3331_v5, %v3289_v60  ;;  %v3418_v55 = vadd.f32 %v3417_v45, %v3375_v61 }
 0x31c   : > { %v3240_v48 = vadd.f32 %v12599_v34, %v3197_v62  ;;  %v3158_v3 = vadd.f32 %v12587_v26, %v3115_v27  ;;  %v3330_v34 = vadd.f32 %v12629_v58, %v3287_v37  ;;  %v1089_v26 = vld [vmem:[%s12113_s18 + $0x8] sm:$0xf]  ;;  %s13896_s18 = sld [smem:[#allocation4_spill]] }
 0x31d   : > { %v1135_v44 = vrot.slane %v1089_v26, %v12637_v1  ;;  %v1139_v15 = vrot.slane %v1089_v26, %v12656_v24  ;;  %v1143_v38 = vrot.slane %v1089_v26, %v12640_v2 }
 0x31e   : > { %v3594_v4 = vmul.f32 0.0625, %v3240_v48  ;;  %v3596_v52 = vmul.f32 0.0625, %v3158_v3 }
 0x321   : > { %3537 = vmatpush2.bf16.xpose.msra.mxu0 %v11382_v20  ;;  %3580 = vmatpush2.bf16.xpose.msra.mxu1 %v11385_v21 }
 0x322   : > { %3630 = vmatprep.subr.mxu0 %v3328_v41  ;;  %3700 = vmatprep.subr.mxu1 %v3414_v43 }
 0x328   : > { %3539 = vmatmul.mubr.bf16.vlgmr.msra.gmra.mxu0 %v12253_v22  ;;  %3582 = vmatmul.mubr.bf16.vlgmr.msra.gmra.mxu1 %v12255_v23  ;;  %v3160_v22 = vadd.f32 %v12591_v28, %v3117_v6  ;;  %v3246_v23 = vadd.f32 %v12615_v46, %v3203_v18  ;;  %v3598_v28 = vmul.f32 0.0625, %v3244_v17  ;;  %v1131_v46 = vrot.slane %v1089_v26, %v12651_v19 }
 0x329   : > { %3631 = vmatpush1.xpose.msra.mxu0 %v3326_v0  ;;  %3664 = vmatprep.mubr.f32.mxu0 %v3593_v63 }
 0x32a   : > { %3701 = vmatpush1.xpose.msra.mxu1 %v3412_v14  ;;  %3734 = vmatprep.mubr.f32.mxu1 %v3595_v12  ;;  %v3597_v5 = vmul.f32 0.0625, %v3160_v22  ;;  %v3599_v7 = vmul.f32 0.0625, %v3246_v23 }
 0x32b   : > { %3770 = vmatprep.subr.mxu0 %v3332_v36  ;;  %3840 = vmatprep.subr.mxu1 %v3418_v55 }
 0x330   : > { %3665 = vmatmul.mubr.f32.vlgmr.msra.gmra.mxu0 %v3592_v16  ;;  %3735 = vmatmul.mubr.f32.vlgmr.msra.gmra.mxu1 %v3594_v4 }
 0x331   : > { %3771 = vmatpush1.xpose.msra.mxu0 %v3330_v34  ;;  %3841 = vmatpush1.xpose.msra.mxu1 %v3416_v35 }
 0x332   : > { %3804 = vmatprep.mubr.f32.mxu0 %v3597_v5  ;;  %3874 = vmatprep.mubr.f32.mxu1 %v3599_v7 }
 0x334   : > { %3805 = vmatmul.mubr.f32.vlgmr.msra.gmra.mxu0 %v3596_v52  ;;  %3875 = vmatmul.mubr.f32.vlgmr.msra.gmra.mxu1 %v3598_v28 }
 0x368   : > { %v3454_v9 = vpop.f32.mrf.mxu0  ;;  %v3497_v58 = vpop.f32.mrf.mxu1 }
 0x369   : > { %v3455_v11 = vadd.f32 %v3454_v9, %v1131_v46 }
 0x36a   : > { %v3456_v20 = vpop.f32.mrf.mxu0  ;;  %v3499_v21 = vpop.f32.mrf.mxu1 }
 0x36b   : > { %v3457_v30 = vadd.f32 %v3456_v20, %v1135_v44  ;;  %v3498_v41 = vadd.f32 %v3497_v58, %v3455_v11 }
 0x36c   : > { %v3458_v31 = vpop.f32.mrf.mxu0  ;;  %v3501_v32 = vpop.f32.mrf.mxu1 }
 0x36d   : > { %v3500_v33 = vadd.f32 %v3499_v21, %v3457_v30  ;;  %v3459_v40 = vadd.f32 %v3458_v31, %v1131_v46 }
 0x36e   : > { %v3460_v42 = vpop.f32.mrf.mxu0  ;;  %v3503_v49 = vpop.f32.mrf.mxu1 }
 0x36f   : > { %v12689_v43 = vadd.f32 %v3501_v32, %v3459_v40  ;;  %v3461_v47 = vadd.f32 %v3460_v42, %v1135_v44  ;;  %3958 = vmatprep.subr.mxu0 %v3500_v33  ;;  %v12005_v42 = vmov 0.0  }
 0x370   : > { %3959 = vmatpush1.msra.mxu0 %v3498_v41  ;;  %3992 = vmatprep.mubr.f32.mxu0 %v12005_v42 }
 0x371   : > { %v3504_v50 = vadd.f32 %v3503_v49, %v3461_v47  ;;  %4066 = vmatprep.mubr.f32.mxu1 %v12005_v42 }
 0x373   : > { %4106 = vmatprep.subr.mxu0 %v3504_v50 }
 0x3e8   : > { %v3540_v29 = vpop.f32.mrf.mxu0  ;;  %v3583_v39 = vpop.f32.mrf.mxu1 }
 0x3e9   : > { %v3541_v51 = vadd.f32 %v3540_v29, %v1139_v15 }
 0x3ea   : > { %v3542_v53 = vpop.f32.mrf.mxu0  ;;  %v3585_v60 = vpop.f32.mrf.mxu1 }
 0x3eb   : > { %v3543_v61 = vadd.f32 %v3542_v53, %v1143_v38  ;;  %v3584_v12 = vadd.f32 %v3583_v39, %v3541_v51  ;;  %v11390_v39 = vld [vmem:[%s13896_s18 + $0xe4] ss:$16 sps:$4 sm:$0xff]  }
 0x3ec   : > { %v3544_v62 = vpop.f32.mrf.mxu0  ;;  %v3587_v63 = vpop.f32.mrf.mxu1 }
 0x3ed   : > { %v3586_v0 = vadd.f32 %v3585_v60, %v3543_v61  ;;  %v3545_v6 = vadd.f32 %v3544_v62, %v1139_v15  ;;  %v11388_v61 = vld [vmem:[%s13896_s18 + $0xe0] ss:$16 sps:$4 sm:$0xff]  }
 0x3ee   : > { %v3546_v18 = vpop.f32.mrf.mxu0  ;;  %v3589_v14 = vpop.f32.mrf.mxu1 }
 0x3ef   : > { %v12693_v45 = vadd.f32 %v3587_v63, %v3545_v6  ;;  %v3547_v10 = vadd.f32 %v3546_v18, %v1143_v38  ;;  %4032 = vmatprep.subr.mxu1 %v3586_v0  ;;  %v11393_v63 = vld [vmem:[%s13896_s18 + $0xec] ss:$16 sps:$4 sm:$0xff]   ;;  %v11396_v0 = vld [vmem:[%s13896_s18 + $0xc4] ss:$16 sps:$4 sm:$0xff]  }
 0x3f0   : > { %v3666_v36 = vpop.f32.mrf.mxu0  ;;  %v3736_v55 = vpop.f32.mrf.mxu1  ;;  %4033 = vmatpush1.msra.mxu1 %v3584_v12  ;;  %v11399_v18 = vld [vmem:[%s13896_s18 + $0xcc] ss:$16 sps:$4 sm:$0xff]  }
 0x3f1   : > { %v3590_v27 = vadd.f32 %v3589_v14, %v3547_v10  ;;  %v3881_v48 = vsel %vm3880_vm0, %v3666_v36, -inf  ;;  %v3884_v23 = vsel %vm3880_vm0, %v3736_v55, -inf  ;;  %v11394_v14 = vld [vmem:[%s13896_s18 + $0xc0] ss:$16 sps:$4 sm:$0xff]   ;;  %v11402_v10 = vld [vmem:[%s13896_s18 + $0xa4] ss:$16 sps:$4 sm:$0xff]  }
 0x3f2   : > { %v3738_v25 = vpop.f32.mrf.mxu1  ;;  %3882 = vmax.xlane.f32.xlu0 %v3881_v48  ;;  %v3668_v37 = vpop.f32.mrf.mxu0  ;;  %v11403_v48 = vld [vmem:[%s13896_s18 + $0xa8] ss:$16 sps:$4 sm:$0xff]  }
 0x3f3   : > { %4180 = vmatprep.subr.mxu1 %v3590_v27  ;;  %v11408_v27 = vld [vmem:[%s13896_s18 + $0x84] ss:$16 sps:$4 sm:$0xff]   ;;  %v11411_v25 = vld [vmem:[%s13896_s18 + $0x8c] ss:$16 sps:$4 sm:$0xff]   ;;  %v11406_v37 = vld [vmem:[%s13896_s18 + $0x80] ss:$16 sps:$4 sm:$0xff]  }
 0x3f4   : > { %v3806_v59 = vpop.f32.mrf.mxu0  ;;  %v3876_v22 = vpop.f32.mrf.mxu1 }
 0x3f5   : > { %v3887_v16 = vsel %vm3880_vm0, %v3806_v59, -inf  ;;  %v3890_v17 = vsel %vm3880_vm0, %v3876_v22, -inf }
 0x3f6   : > { %v3878_v3 = vpop.f32.mrf.mxu1  ;;  %3885 = vmax.xlane.f32.xlu0 %v3884_v23  ;;  %3888 = vmax.xlane.f32.xlu1 %v3887_v16  ;;  %v3808_v4 = vpop.f32.mrf.mxu0  ;;  %v11417_v23 = vld [vmem:[%s13896_s18 + $0x6c] ss:$16 sps:$4 sm:$0xff]   ;;  %v11412_v16 = vld [vmem:[%s13896_s18 + $0x60] ss:$16 sps:$4 sm:$0xff]  }
 0x3f7   : > { %v11420_v3 = vld [vmem:[%s13896_s18 + $0x44] ss:$16 sps:$4 sm:$0xff]   ;;  %v11415_v4 = vld [vmem:[%s13896_s18 + $0x68] ss:$16 sps:$4 sm:$0xff]  }
 0x3fa   : > { %3891 = vmax.xlane.f32.xlu1 %v3890_v17  ;;  %v11423_v17 = vld [vmem:[%s13896_s18 + $0x4c] ss:$16 sps:$4 sm:$0xff]  }
 0x47b   : > { %v3883_v34 = vpop.xlane.xlu0 %3882 }
 0x47c   : > { %v3893_v35 = vsub.f32 %v3666_v36, %v3883_v34  ;;  %v11405_v36 = vld [vmem:[%s13896_s18 + $0xac] ss:$16 sps:$4 sm:$0xff]   ;;  %v11418_v34 = vld [vmem:[%s13896_s18 + $0x40] ss:$16 sps:$4 sm:$0xff]  }
 0x47e   : > { %v3897_v5 = vmul.f32 1.442695, %v3893_v35  ;;  %v11426_v35 = vld [vmem:[%s13896_s18 + $0x24] ss:$16 sps:$4 sm:$0xff]  }
 0x47f   : > { %v3886_v7 = vpop.xlane.xlu0 %3885  ;;  %v3889_v52 = vpop.xlane.xlu1 %3888 }
 0x480   : > { %11964 = vpow2.f32 %v3897_v5  ;;  %v3894_v28 = vsub.f32 %v3736_v55, %v3886_v7  ;;  %v3895_v26 = vsub.f32 %v3806_v59, %v3889_v52  ;;  %v11400_v55 = vld [vmem:[%s13896_s18 + $0xa0] ss:$16 sps:$4 sm:$0xff]   ;;  %v11414_v59 = vld [vmem:[%s13896_s18 + $0x64] ss:$16 sps:$4 sm:$0xff]   ;;  %v11421_v5 = vld [vmem:[%s13896_s18 + $0x48] ss:$16 sps:$4 sm:$0xff]  }
 0x481   : > { %v11429_v7 = vld [vmem:[%s13896_s18 + $0x2c] ss:$16 sps:$4 sm:$0xff]   ;;  %v11424_v52 = vld [vmem:[%s13896_s18 + $0x20] ss:$16 sps:$4 sm:$0xff]  }
 0x482   : > { %v3899_v46 = vmul.f32 1.442695, %v3894_v28  ;;  %v3901_v44 = vmul.f32 1.442695, %v3895_v26  ;;  %v11432_v28 = vld [vmem:[%s13896_s18 + $0x4] ss:$16 sps:$4 sm:$0xff]  }
 0x483   : > { %v3892_v9 = vpop.xlane.xlu1 %3891  ;;  %v11427_v26 = vld [vmem:[%s13896_s18 + $0x28] ss:$16 sps:$4 sm:$0xff]  }
 0x484   : > { %11966 = vpow2.f32 %v3899_v46  ;;  %v3896_v58 = vsub.f32 %v3876_v22, %v3892_v9  ;;  %v11409_v22 = vld [vmem:[%s13896_s18 + $0x88] ss:$16 sps:$4 sm:$0xff]   ;;  %v11435_v46 = vld [vmem:[%s13896_s18 + $0xc] ss:$16 sps:$4 sm:$0xff]   ;;  %v11438_v9 = vld [vmem:[%s13896_s18 + $0x1e4] ss:$16 sps:$4 sm:$0xff]  }
 0x485   : > { %11968 = vpow2.f32 %v3901_v44  ;;  %v11430_v44 = vld [vmem:[%s13896_s18] ss:$16 sps:$4 sm:$0xff]  }
 0x486   : > { %v3903_v11 = vmul.f32 1.442695, %v3896_v58  ;;  %v11433_v58 = vld [vmem:[%s13896_s18 + $0x8] ss:$16 sps:$4 sm:$0xff]  }
 0x488   : > { %11970 = vpow2.f32 %v3903_v11  ;;  %v11441_v11 = vld [vmem:[%s13896_s18 + $0x1ec] ss:$16 sps:$4 sm:$0xff]  }
 0x48d   : > { %v11965_v20 = vpop.eup %11964 }
 0x48e   : > { %v3905_v21 = vsel %vm3880_vm0, %v11965_v20, 0.0 }
 0x48f   : > { %3906 = vadd.xlane.f32.xlu0 %v3905_v21  ;;  %v11444_v21 = vld [vmem:[%s13896_s18 + $0x1c4] ss:$16 sps:$4 sm:$0xff]  }
 0x491   : > { %v11967_v30 = vpop.eup %11966 }
 0x492   : > { %v11969_v31 = vpop.eup %11968  ;;  %v3908_v32 = vsel %vm3880_vm0, %v11967_v30, 0.0 }
 0x493   : > { %3909 = vadd.xlane.f32.xlu1 %v3908_v32  ;;  %v3911_v33 = vsel %vm3880_vm0, %v11969_v31, 0.0  ;;  %v11442_v32 = vld [vmem:[%s13896_s18 + $0x1c0] ss:$16 sps:$4 sm:$0xff]  }
 0x494   : > { %3912 = vadd.xlane.f32.xlu0 %v3911_v33  ;;  %v11450_v33 = vld [vmem:[%s13896_s18 + $0x1a4] ss:$16 sps:$4 sm:$0xff]  }
 0x495   : > { %v11971_v40 = vpop.eup %11970 }
 0x496   : > { %v3914_v41 = vsel %vm3880_vm0, %v11971_v40, 0.0 }
 0x497   : > { %3915 = vadd.xlane.f32.xlu1 %v3914_v41  ;;  %v11453_v41 = vld [vmem:[%s13896_s18 + $0x1ac] ss:$16 sps:$4 sm:$0xff]  }
 0x518   : > { %v3907_v47 = vpop.xlane.xlu0 %3906 }
 0x519   : > { %11972 = vrcp.f32 %v3907_v47  ;;  %v11456_v47 = vld [vmem:[%s13896_s18 + $0x184] ss:$16 sps:$4 sm:$0xff]  }
 0x51c   : > { %v3910_v49 = vpop.xlane.xlu1 %3909 }
 0x51d   : > { %v3913_v50 = vpop.xlane.xlu0 %3912  ;;  %11974 = vrcp.f32 %v3910_v49  ;;  %v11451_v49 = vld [vmem:[%s13896_s18 + $0x1a8] ss:$16 sps:$4 sm:$0xff]  }
 0x51e   : > { %11976 = vrcp.f32 %v3913_v50  ;;  %v11459_v50 = vld [vmem:[%s13896_s18 + $0x18c] ss:$16 sps:$4 sm:$0xff]  }
 0x520   : > { %v3916_v15 = vpop.xlane.xlu1 %3915 }
 0x521   : > { %11978 = vrcp.f32 %v3916_v15  ;;  %v11454_v15 = vld [vmem:[%s13896_s18 + $0x180] ss:$16 sps:$4 sm:$0xff]  }
 0x526   : > { %v11973_v38 = vpop.eup %11972 }
 0x527   : > { %v3921_v29 = vmul.f32 %v11973_v38, %v11965_v20  ;;  %v11436_v20 = vld [vmem:[%s13896_s18 + $0x1e0] ss:$16 sps:$4 sm:$0xff]   ;;  %v11462_v38 = vld [vmem:[%s13896_s18 + $0x164] ss:$16 sps:$4 sm:$0xff]  }
 0x529   : > { %10151 = vmatmul.mubr.msk.f32.vlgmr.msra.gmra.mxu0 %vm3880_vm0, %v3921_v29  ;;  %v11457_v29 = vld [vmem:[%s13896_s18 + $0x188] ss:$16 sps:$4 sm:$0xff]  }
 0x52a   : > { %v11975_v51 = vpop.eup %11974  ;;  %4107 = vmatpush1.msra.mxu0 %v12689_v43  ;;  %4140 = vmatprep.mubr.f32.mxu0 %v12005_v42  ;;  %v11391_v43 = vld [vmem:[%s13896_s18 + $0xe8] ss:$16 sps:$4 sm:$0xff]  }
 0x52b   : > { %v11977_v53 = vpop.eup %11976  ;;  %v3922_v60 = vmul.f32 %v11975_v51, %v11967_v30  ;;  %5015 = vmatprep.subr.bf16.mxu0 %v11390_v39  ;;  %v11439_v30 = vld [vmem:[%s13896_s18 + $0x1e8] ss:$16 sps:$4 sm:$0xff]   ;;  %v11465_v39 = vld [vmem:[%s13896_s18 + $0x16c] ss:$16 sps:$4 sm:$0xff]   ;;  %v11460_v51 = vld [vmem:[%s13896_s18 + $0x160] ss:$16 sps:$4 sm:$0xff]  }
 0x52c   : > { %v3923_v62 = vmul.f32 %v11977_v53, %v11969_v31  ;;  %v11447_v31 = vld [vmem:[%s13896_s18 + $0x1cc] ss:$16 sps:$4 sm:$0xff]   ;;  %v11468_v53 = vld [vmem:[%s13896_s18 + $0x144] ss:$16 sps:$4 sm:$0xff]  }
 0x52d   : > { %10152 = vmatmul.mubr.msk.f32.vlgmr.msra.gmra.mxu1 %vm3880_vm0, %v3922_v60  ;;  %v11463_v60 = vld [vmem:[%s13896_s18 + $0x168] ss:$16 sps:$4 sm:$0xff]  }
 0x52e   : > { %v11979_v6 = vpop.eup %11978  ;;  %10153 = vmatmul.mubr.msk.f32.vlgmr.msra.gmra.mxu0 %vm3880_vm0, %v3923_v62  ;;  %4181 = vmatpush1.msra.mxu1 %v12693_v45  ;;  %v11397_v45 = vld [vmem:[%s13896_s18 + $0xc8] ss:$16 sps:$4 sm:$0xff]   ;;  %v11466_v62 = vld [vmem:[%s13896_s18 + $0x140] ss:$16 sps:$4 sm:$0xff]  }
 0x52f   : > { %4214 = vmatprep.mubr.f32.mxu1 %v12005_v42  ;;  %v3924_v12 = vmul.f32 %v11979_v6, %v11971_v40  ;;  %5016 = vmatpush1.bf16.xpose.msra.mxu0 %v11388_v61  ;;  %v11445_v40 = vld [vmem:[%s13896_s18 + $0x1c8] ss:$16 sps:$4 sm:$0xff]   ;;  %v11448_v42 = vld [vmem:[%s13896_s18 + $0x1a0] ss:$16 sps:$4 sm:$0xff]   ;;  %v11471_v61 = vld [vmem:[%s13896_s18 + $0x14c] ss:$16 sps:$4 sm:$0xff]  }
 0x530   : > { %5058 = vmatprep.subr.bf16.mxu1 %v11393_v63  ;;  %5017 = vmatprep.subr.bf16.mxu0 %v11396_v0  ;;  %v11474_v63 = vld [vmem:[%s13896_s18 + $0x124] ss:$16 sps:$4 sm:$0xff]   ;;  %v11469_v0 = vld [vmem:[%s13896_s18 + $0x148] ss:$16 sps:$4 sm:$0xff]   ;;  %v11477_v6 = vld [vmem:[%s13896_s18 + $0x12c] ss:$16 sps:$4 sm:$0xff]  }
 0x531   : > { %10154 = vmatmul.mubr.msk.f32.vlgmr.msra.gmra.mxu1 %vm3880_vm0, %v3924_v12  ;;  %v11480_v12 = vld [vmem:[%s13896_s18 + $0x104] ss:$16 sps:$4 sm:$0xff]  }
 0x532   : > { %5059 = vmatpush1.bf16.xpose.msra.mxu1 %v11391_v43  ;;  %v11472_v43 = vld [vmem:[%s13896_s18 + $0x120] ss:$16 sps:$4 sm:$0xff]  }
 0x533   : > { %5060 = vmatprep.subr.bf16.mxu1 %v11399_v18  ;;  %v11475_v18 = vld [vmem:[%s13896_s18 + $0x128] ss:$16 sps:$4 sm:$0xff]  }
 0x537   : > { %5018 = vmatpush1.bf16.xpose.msra.mxu0 %v11394_v14  ;;  %v11483_v14 = vld [vmem:[%s13896_s18 + $0x10c] ss:$16 sps:$4 sm:$0xff]  }
 0x538   : > { %5019 = vmatprep.subr.bf16.mxu0 %v11402_v10  ;;  %v11478_v10 = vld [vmem:[%s13896_s18 + $0x100] ss:$16 sps:$4 sm:$0xff]  }
 0x53a   : > { %5061 = vmatpush1.bf16.xpose.msra.mxu1 %v11397_v45  ;;  %v11486_v45 = vld [vmem:[%s13896_s18 + $0x2e4] ss:$16 sps:$4 sm:$0xff]  }
 0x53b   : > { %5062 = vmatprep.subr.bf16.mxu1 %v11405_v36  ;;  %v11481_v36 = vld [vmem:[%s13896_s18 + $0x108] ss:$16 sps:$4 sm:$0xff]  }
 0x53f   : > { %5020 = vmatpush1.bf16.xpose.msra.mxu0 %v11400_v55  ;;  %v11489_v55 = vld [vmem:[%s13896_s18 + $0x2ec] ss:$16 sps:$4 sm:$0xff]  }
 0x540   : > { %5021 = vmatprep.subr.bf16.mxu0 %v11408_v27 }
 0x542   : > { %5063 = vmatpush1.bf16.xpose.msra.mxu1 %v11403_v48 }
 0x543   : > { %5064 = vmatprep.subr.bf16.mxu1 %v11411_v25 }
 0x547   : > { %5022 = vmatpush1.bf16.xpose.msra.mxu0 %v11406_v37 }
 0x548   : > { %5023 = vmatprep.subr.bf16.mxu0 %v11414_v59 }
 0x54a   : > { %5065 = vmatpush1.bf16.xpose.msra.mxu1 %v11409_v22 }
 0x54b   : > { %5066 = vmatprep.subr.bf16.mxu1 %v11417_v23 }
 0x54f   : > { %5024 = vmatpush1.bf16.xpose.msra.mxu0 %v11412_v16 }
 0x550   : > { %5025 = vmatprep.subr.bf16.mxu0 %v11420_v3  ;;  %v11484_v3 = vld [vmem:[%s13896_s18 + $0x2e0] ss:$16 sps:$4 sm:$0xff]  }
 0x552   : > { %5067 = vmatpush1.bf16.xpose.msra.mxu1 %v11415_v4 }
 0x553   : > { %5068 = vmatprep.subr.bf16.mxu1 %v11423_v17  ;;  %v11492_v17 = vld [vmem:[%s13896_s18 + $0x2c4] ss:$16 sps:$4 sm:$0xff]  }
 0x557   : > { %5026 = vmatpush1.bf16.xpose.msra.mxu0 %v11418_v34 }
 0x558   : > { %5027 = vmatprep.subr.bf16.mxu0 %v11426_v35 }
 0x55a   : > { %5069 = vmatpush1.bf16.xpose.msra.mxu1 %v11421_v5  ;;  %v11487_v5 = vld [vmem:[%s13896_s18 + $0x2e8] ss:$16 sps:$4 sm:$0xff]  }
 0x55b   : > { %5070 = vmatprep.subr.bf16.mxu1 %v11429_v7 }
 0x55f   : > { %5028 = vmatpush1.bf16.xpose.msra.mxu0 %v11424_v52  ;;  %v11495_v52 = vld [vmem:[%s13896_s18 + $0x2cc] ss:$16 sps:$4 sm:$0xff]  }
 0x560   : > { %5029 = vmatprep.subr.bf16.mxu0 %v11432_v28  ;;  %v11490_v28 = vld [vmem:[%s13896_s18 + $0x2c0] ss:$16 sps:$4 sm:$0xff]  }
 0x562   : > { %5071 = vmatpush1.bf16.xpose.msra.mxu1 %v11427_v26  ;;  %v11498_v26 = vld [vmem:[%s13896_s18 + $0x2a4] ss:$16 sps:$4 sm:$0xff]  }
 0x563   : > { %5072 = vmatprep.subr.bf16.mxu1 %v11435_v46  ;;  %v11493_v46 = vld [vmem:[%s13896_s18 + $0x2c8] ss:$16 sps:$4 sm:$0xff]  }
 0x567   : > { %5030 = vmatpush1.bf16.xpose.msra.mxu0 %v11430_v44  ;;  %v11501_v44 = vld [vmem:[%s13896_s18 + $0x2ac] ss:$16 sps:$4 sm:$0xff]  }
 0x568   : > { %5031 = vmatprep.subr.bf16.mxu0 %v11438_v9  ;;  %v11496_v9 = vld [vmem:[%s13896_s18 + $0x2a0] ss:$16 sps:$4 sm:$0xff]  }
 0x56a   : > { %5073 = vmatpush1.bf16.xpose.msra.mxu1 %v11433_v58  ;;  %v11504_v58 = vld [vmem:[%s13896_s18 + $0x284] ss:$16 sps:$4 sm:$0xff]  }
 0x56b   : > { %5074 = vmatprep.subr.bf16.mxu1 %v11441_v11  ;;  %v11499_v11 = vld [vmem:[%s13896_s18 + $0x2a8] ss:$16 sps:$4 sm:$0xff]  }
 0x56f   : > { %5032 = vmatpush2.bf16.xpose.msra.mxu0 %v11436_v20  ;;  %v11507_v20 = vld [vmem:[%s13896_s18 + $0x28c] ss:$16 sps:$4 sm:$0xff]  }
 0x570   : > { %5033 = vmatprep.subr.bf16.mxu0 %v11444_v21  ;;  %v11502_v21 = vld [vmem:[%s13896_s18 + $0x280] ss:$16 sps:$4 sm:$0xff]  }
 0x572   : > { %5075 = vmatpush2.bf16.xpose.msra.mxu1 %v11439_v30  ;;  %v11510_v30 = vld [vmem:[%s13896_s18 + $0x264] ss:$16 sps:$4 sm:$0xff]  }
 0x573   : > { %5076 = vmatprep.subr.bf16.mxu1 %v11447_v31  ;;  %v11505_v31 = vld [vmem:[%s13896_s18 + $0x288] ss:$16 sps:$4 sm:$0xff]  }
 0x577   : > { %5034 = vmatpush2.bf16.xpose.msra.mxu0 %v11442_v32  ;;  %v11513_v32 = vld [vmem:[%s13896_s18 + $0x26c] ss:$16 sps:$4 sm:$0xff]  }
 0x578   : > { %5035 = vmatprep.subr.bf16.mxu0 %v11450_v33  ;;  %v11508_v33 = vld [vmem:[%s13896_s18 + $0x260] ss:$16 sps:$4 sm:$0xff]  }
 0x57a   : > { %5077 = vmatpush2.bf16.xpose.msra.mxu1 %v11445_v40  ;;  %v11516_v40 = vld [vmem:[%s13896_s18 + $0x244] ss:$16 sps:$4 sm:$0xff]  }
 0x57b   : > { %5078 = vmatprep.subr.bf16.mxu1 %v11453_v41  ;;  %v11511_v41 = vld [vmem:[%s13896_s18 + $0x268] ss:$16 sps:$4 sm:$0xff]  }
 0x57f   : > { %5036 = vmatpush2.bf16.xpose.msra.mxu0 %v11448_v42  ;;  %v11519_v42 = vld [vmem:[%s13896_s18 + $0x24c] ss:$16 sps:$4 sm:$0xff]  }
 0x580   : > { %5037 = vmatprep.subr.bf16.mxu0 %v11456_v47  ;;  %v11514_v47 = vld [vmem:[%s13896_s18 + $0x240] ss:$16 sps:$4 sm:$0xff]  }
 0x582   : > { %5079 = vmatpush2.bf16.xpose.msra.mxu1 %v11451_v49  ;;  %v11522_v49 = vld [vmem:[%s13896_s18 + $0x224] ss:$16 sps:$4 sm:$0xff]  }
 0x583   : > { %5080 = vmatprep.subr.bf16.mxu1 %v11459_v50  ;;  %v11517_v50 = vld [vmem:[%s13896_s18 + $0x248] ss:$16 sps:$4 sm:$0xff]  }
 0x587   : > { %5038 = vmatpush2.bf16.xpose.msra.mxu0 %v11454_v15  ;;  %v11525_v15 = vld [vmem:[%s13896_s18 + $0x22c] ss:$16 sps:$4 sm:$0xff]  }
 0x588   : > { %5039 = vmatprep.subr.bf16.mxu0 %v11462_v38  ;;  %v11520_v38 = vld [vmem:[%s13896_s18 + $0x220] ss:$16 sps:$4 sm:$0xff]  }
 0x58a   : > { %5081 = vmatpush2.bf16.xpose.msra.mxu1 %v11457_v29  ;;  %v11528_v29 = vld [vmem:[%s13896_s18 + $0x204] ss:$16 sps:$4 sm:$0xff]  }
 0x58b   : > { %5082 = vmatprep.subr.bf16.mxu1 %v11465_v39  ;;  %v11523_v39 = vld [vmem:[%s13896_s18 + $0x228] ss:$16 sps:$4 sm:$0xff]  }
 0x58f   : > { %5040 = vmatpush2.bf16.xpose.msra.mxu0 %v11460_v51  ;;  %v11531_v51 = vld [vmem:[%s13896_s18 + $0x20c] ss:$16 sps:$4 sm:$0xff]  }
 0x590   : > { %5041 = vmatprep.subr.bf16.mxu0 %v11468_v53  ;;  %v11526_v53 = vld [vmem:[%s13896_s18 + $0x200] ss:$16 sps:$4 sm:$0xff]  }
 0x592   : > { %5083 = vmatpush2.bf16.xpose.msra.mxu1 %v11463_v60  ;;  %v11534_v60 = vld [vmem:[%s13896_s18 + $0x3e4] ss:$16 sps:$4 sm:$0xff]  }
 0x593   : > { %5084 = vmatprep.subr.bf16.mxu1 %v11471_v61  ;;  %v11529_v61 = vld [vmem:[%s13896_s18 + $0x208] ss:$16 sps:$4 sm:$0xff]  }
 0x597   : > { %5042 = vmatpush2.bf16.xpose.msra.mxu0 %v11466_v62  ;;  %v11537_v62 = vld [vmem:[%s13896_s18 + $0x3ec] ss:$16 sps:$4 sm:$0xff]  }
 0x598   : > { %5043 = vmatprep.subr.bf16.mxu0 %v11474_v63  ;;  %v11532_v63 = vld [vmem:[%s13896_s18 + $0x3e0] ss:$16 sps:$4 sm:$0xff]  }
 0x59a   : > { %5085 = vmatpush2.bf16.xpose.msra.mxu1 %v11469_v0  ;;  %v11540_v0 = vld [vmem:[%s13896_s18 + $0x3c4] ss:$16 sps:$4 sm:$0xff]  }
 0x59b   : > { %5086 = vmatprep.subr.bf16.mxu1 %v11477_v6  ;;  %v11535_v6 = vld [vmem:[%s13896_s18 + $0x3e8] ss:$16 sps:$4 sm:$0xff]  }
 0x59f   : > { %5044 = vmatpush2.bf16.xpose.msra.mxu0 %v11472_v43  ;;  %v11543_v43 = vld [vmem:[%s13896_s18 + $0x3cc] ss:$16 sps:$4 sm:$0xff]  }
 0x5a0   : > { %5045 = vmatprep.subr.bf16.mxu0 %v11480_v12  ;;  %v11538_v12 = vld [vmem:[%s13896_s18 + $0x3c0] ss:$16 sps:$4 sm:$0xff]  }
 0x5a2   : > { %5087 = vmatpush2.bf16.xpose.msra.mxu1 %v11475_v18  ;;  %v11546_v18 = vld [vmem:[%s13896_s18 + $0x3a4] ss:$16 sps:$4 sm:$0xff]  }
 0x5a3   : > { %5088 = vmatprep.subr.bf16.mxu1 %v11483_v14  ;;  %v11541_v14 = vld [vmem:[%s13896_s18 + $0x3c8] ss:$16 sps:$4 sm:$0xff]  }
 0x5a7   : > { %5046 = vmatpush2.bf16.xpose.msra.mxu0 %v11478_v10  ;;  %v11549_v10 = vld [vmem:[%s13896_s18 + $0x3ac] ss:$16 sps:$4 sm:$0xff]  }
 0x5a8   : > { %5101 = vmatprep.subr.bf16.mxu0 %v11486_v45  ;;  %v11544_v45 = vld [vmem:[%s13896_s18 + $0x3a0] ss:$16 sps:$4 sm:$0xff]  }
 0x5aa   : > { %5089 = vmatpush2.bf16.xpose.msra.mxu1 %v11481_v36  ;;  %v11552_v36 = vld [vmem:[%s13896_s18 + $0x384] ss:$16 sps:$4 sm:$0xff]  }
 0x5ab   : > { %5144 = vmatprep.subr.bf16.mxu1 %v11489_v55  ;;  %v11547_v55 = vld [vmem:[%s13896_s18 + $0x3a8] ss:$16 sps:$4 sm:$0xff]  }
 0x5e9   : > { %v3994_v27 = vpop.f32.mrf.mxu0 }
 0x5eb   : > { %v3996_v48 = vpop.f32.mrf.mxu0 }
 0x5ed   : > { %v4068_v25 = vpop.f32.mrf.mxu1 }
 0x5ee   : > { %v4142_v37 = vpop.f32.mrf.mxu0 }
 0x5ef   : > { %v4070_v59 = vpop.f32.mrf.mxu1  ;;  %v12776_v4 = vpack.c.bf16 %v4142_v37, %v3994_v27  ;;  %v11555_v27 = vld [vmem:[%s13896_s18 + $0x38c] ss:$16 sps:$4 sm:$0xff]   ;;  %v11553_v37 = vld [vmem:[%s13896_s18 + $0x388] ss:$16 sps:$4 sm:$0xff]  }
 0x5f0   : > { %v4144_v22 = vpop.f32.mrf.mxu0 }
 0x5f1   : > { %v4351_v23 = vpack.c.bf16 %v4144_v22, %v3996_v48  ;;  %v4216_v16 = vpop.f32.mrf.mxu1  ;;  %v11550_v48 = vld [vmem:[%s13896_s18 + $0x380] ss:$16 sps:$4 sm:$0xff]  }
 0x5f2   : > { %v12781_v7 = vpack.c.bf16 %v4216_v16, %v4068_v25  ;;  %v11558_v25 = vld [vmem:[%s13896_s18 + $0x364] ss:$16 sps:$4 sm:$0xff]   ;;  %v11556_v22 = vld [vmem:[%s13896_s18 + $0x360] ss:$16 sps:$4 sm:$0xff]   ;;  %v11559_v16 = vld [vmem:[%s13896_s18 + $0x368] ss:$16 sps:$4 sm:$0xff]  }
 0x5f3   : > { %5047 = vmatprep.mubr.bf16.mxu0 %v4351_v23  ;;  %v4218_v34 = vpop.f32.mrf.mxu1 }
 0x5f4   : > { %v4353_v35 = vpack.c.bf16 %v4218_v34, %v4070_v59  ;;  %5048 = vmatmul.mubr.bf16.vlgmr.msra.gmra.mxu0 %v12776_v4  ;;  %v11561_v59 = vld [vmem:[%s13896_s18 + $0x36c] ss:$16 sps:$4 sm:$0xff]   ;;  %v11570_v34 = vld [vmem:[%s13896_s18 + $0x324] ss:$16 sps:$4 sm:$0xff]  }
 0x5f5   : > { %5102 = vmatpush1.bf16.xpose.msra.mxu0 %v11484_v3  ;;  %5133 = vmatprep.mubr.bf16.mxu0 %v4351_v23  ;;  %v11564_v23 = vld [vmem:[%s13896_s18 + $0x344] ss:$16 sps:$4 sm:$0xff]   ;;  %v11567_v3 = vld [vmem:[%s13896_s18 + $0x34c] ss:$16 sps:$4 sm:$0xff]  }
 0x5f6   : > { %5090 = vmatprep.mubr.bf16.mxu1 %v4353_v35  ;;  %5103 = vmatprep.subr.bf16.mxu0 %v11492_v17  ;;  %v11562_v17 = vld [vmem:[%s13896_s18 + $0x340] ss:$16 sps:$4 sm:$0xff]  }
 0x5f7   : > { %5091 = vmatmul.mubr.bf16.vlgmr.msra.gmra.mxu1 %v12781_v7 }
 0x5f8   : > { %5145 = vmatpush1.bf16.xpose.msra.mxu1 %v11487_v5  ;;  %5176 = vmatprep.mubr.bf16.mxu1 %v4353_v35  ;;  %v11565_v35 = vld [vmem:[%s13896_s18 + $0x348] ss:$16 sps:$4 sm:$0xff]   ;;  %v11573_v5 = vld [vmem:[%s13896_s18 + $0x32c] ss:$16 sps:$4 sm:$0xff]  }
 0x5f9   : > { %5146 = vmatprep.subr.bf16.mxu1 %v11495_v52  ;;  %v11568_v52 = vld [vmem:[%s13896_s18 + $0x320] ss:$16 sps:$4 sm:$0xff]  }
 0x5fd   : > { %5104 = vmatpush1.bf16.xpose.msra.mxu0 %v11490_v28  ;;  %v11576_v28 = vld [vmem:[%s13896_s18 + $0x304] ss:$16 sps:$4 sm:$0xff]  }
 0x5fe   : > { %5105 = vmatprep.subr.bf16.mxu0 %v11498_v26  ;;  %v11571_v26 = vld [vmem:[%s13896_s18 + $0x328] ss:$16 sps:$4 sm:$0xff]  }
 0x600   : > { %5147 = vmatpush1.bf16.xpose.msra.mxu1 %v11493_v46  ;;  %v11579_v46 = vld [vmem:[%s13896_s18 + $0x30c] ss:$16 sps:$4 sm:$0xff]  }
 0x601   : > { %5148 = vmatprep.subr.bf16.mxu1 %v11501_v44  ;;  %v11574_v44 = vld [vmem:[%s13896_s18 + $0x300] ss:$16 sps:$4 sm:$0xff]  }
 0x605   : > { %5106 = vmatpush1.bf16.xpose.msra.mxu0 %v11496_v9  ;;  %v11577_v9 = vld [vmem:[%s13896_s18 + $0x308] ss:$16 sps:$4 sm:$0xff]   ;;  %s13901_s18 = sld [smem:[#allocation10_spill]] (!%p10795_p5) }
 0x606   : > { %5107 = vmatprep.subr.bf16.mxu0 %v11504_v58 }
 0x608   : > { %5149 = vmatpush1.bf16.xpose.msra.mxu1 %v11499_v11 }
 0x609   : > { %5150 = vmatprep.subr.bf16.mxu1 %v11507_v20 }
 0x60d   : > { %5108 = vmatpush1.bf16.xpose.msra.mxu0 %v11502_v21  ;;  %v4349_v21 = vld [vmem:[%s13897_s24] sm:$0xf] }
 0x60e   : > { %5109 = vmatprep.subr.bf16.mxu0 %v11510_v30  ;;  %v4362_v30 = vrot.slane %v4349_v21, %v12637_v1 }
 0x610   : > { %5151 = vmatpush1.bf16.xpose.msra.mxu1 %v11505_v31 }
 0x611   : > { %5152 = vmatprep.subr.bf16.mxu1 %v11513_v32  ;;  %v4358_v32 = vrot.slane %v4349_v21, %v12651_v19 }
 0x615   : > { %5110 = vmatpush1.bf16.xpose.msra.mxu0 %v11508_v33 }
 0x616   : > { %5111 = vmatprep.subr.bf16.mxu0 %v11516_v40 }
 0x618   : > { %5153 = vmatpush1.bf16.xpose.msra.mxu1 %v11511_v41 }
 0x619   : > { %5154 = vmatprep.subr.bf16.mxu1 %v11519_v42 }
 0x61d   : > { %5112 = vmatpush1.bf16.xpose.msra.mxu0 %v11514_v47 }
 0x61e   : > { %5113 = vmatprep.subr.bf16.mxu0 %v11522_v49 }
 0x620   : > { %5155 = vmatpush1.bf16.xpose.msra.mxu1 %v11517_v50 }
 0x621   : > { %5156 = vmatprep.subr.bf16.mxu1 %v11525_v15 }
 0x625   : > { %5114 = vmatpush1.bf16.xpose.msra.mxu0 %v11520_v38 }
 0x626   : > { %5115 = vmatprep.subr.bf16.mxu0 %v11528_v29  ;;  %v4370_v29 = vrot.slane %v4349_v21, %v12640_v2 }
 0x628   : > { %5157 = vmatpush1.bf16.xpose.msra.mxu1 %v11523_v39 }
 0x629   : > { %5158 = vmatprep.subr.bf16.mxu1 %v11531_v51  ;;  %v11988_v51 = vld [vmem:[#allocation2] sm:$0xff] }
 0x62d   : > { %5116 = vmatpush1.bf16.xpose.msra.mxu0 %v11526_v53 }
 0x62e   : > { %5117 = vmatprep.subr.bf16.mxu0 %v11534_v60 }
 0x630   : > { %5159 = vmatpush1.bf16.xpose.msra.mxu1 %v11529_v61 }
 0x631   : > { %5160 = vmatprep.subr.bf16.mxu1 %v11537_v62 }
 0x635   : > { %5118 = vmatpush2.bf16.xpose.msra.mxu0 %v11532_v63  ;;  %v11989_v63 = vld [vmem:[#allocation2 + $0x30] sm:$0xff] }
 0x636   : > { %5119 = vmatprep.subr.bf16.mxu0 %v11540_v0 }
 0x638   : > { %5161 = vmatpush2.bf16.xpose.msra.mxu1 %v11535_v6 }
 0x639   : > { %5162 = vmatprep.subr.bf16.mxu1 %v11543_v43 }
 0x63d   : > { %5120 = vmatpush2.bf16.xpose.msra.mxu0 %v11538_v12 }
 0x63e   : > { %5121 = vmatprep.subr.bf16.mxu0 %v11546_v18 }
 0x640   : > { %5163 = vmatpush2.bf16.xpose.msra.mxu1 %v11541_v14 }
 0x641   : > { %5164 = vmatprep.subr.bf16.mxu1 %v11549_v10 }
 0x645   : > { %5122 = vmatpush2.bf16.xpose.msra.mxu0 %v11544_v45 }
 0x646   : > { %5123 = vmatprep.subr.bf16.mxu0 %v11552_v36  ;;  %v11990_v36 = vld [vmem:[#allocation2 + $0x20] sm:$0xff] }
 0x648   : > { %5165 = vmatpush2.bf16.xpose.msra.mxu1 %v11547_v55 }
 0x649   : > { %5166 = vmatprep.subr.bf16.mxu1 %v11555_v27 }
 0x64d   : > { %5124 = vmatpush2.bf16.xpose.msra.mxu0 %v11550_v48  ;;  %v11991_v48 = vld [vmem:[#allocation2 + $0x18] sm:$0xff] }
 0x64e   : > { %5125 = vmatprep.subr.bf16.mxu0 %v11558_v25 }
 0x650   : > { %5167 = vmatpush2.bf16.xpose.msra.mxu1 %v11553_v37 }
 0x651   : > { %5168 = vmatprep.subr.bf16.mxu1 %v11561_v59 }
 0x655   : > { %5126 = vmatpush2.bf16.xpose.msra.mxu0 %v11556_v22  ;;  %v11992_v22 = vld [vmem:[#allocation2 + $0x8] sm:$0xff] }
 0x656   : > { %5127 = vmatprep.subr.bf16.mxu0 %v11564_v23 }
 0x658   : > { %5169 = vmatpush2.bf16.xpose.msra.mxu1 %v11559_v16 }
 0x659   : > { %5170 = vmatprep.subr.bf16.mxu1 %v11567_v3 }
 0x65d   : > { %5128 = vmatpush2.bf16.xpose.msra.mxu0 %v11562_v17  ;;  %v11993_v17 = vld [vmem:[#allocation2 + $0x10] sm:$0xff] }
 0x65e   : > { %5129 = vmatprep.subr.bf16.mxu0 %v11570_v34 }
 0x660   : > { %5171 = vmatpush2.bf16.xpose.msra.mxu1 %v11565_v35 }
 0x661   : > { %5172 = vmatprep.subr.bf16.mxu1 %v11573_v5 }
 0x665   : > { %5130 = vmatpush2.bf16.xpose.msra.mxu0 %v11568_v52 }
 0x666   : > { %5131 = vmatprep.subr.bf16.mxu0 %v11576_v28 }
 0x668   : > { %5173 = vmatpush2.bf16.xpose.msra.mxu1 %v11571_v26  ;;  %v11994_v26 = vld [vmem:[#allocation2 + $0x28] sm:$0xff] }
 0x669   : > { %5174 = vmatprep.subr.bf16.mxu1 %v11579_v46 }
 0x66d   : > { %5132 = vmatpush2.bf16.xpose.msra.mxu0 %v11574_v44 }
 0x670   : > { %5175 = vmatpush2.bf16.xpose.msra.mxu1 %v11577_v9 }
 0x674   : > { %5134 = vmatmul.mubr.bf16.vlgmr.msra.gmra.mxu0 %v12776_v4 }
 0x677   : > { %5177 = vmatmul.mubr.bf16.vlgmr.msra.gmra.mxu1 %v12781_v7  ;;  %v4366_v7 = vrot.slane %v4349_v21, %v12656_v24 }
 0x6b4   : > { %v5049_v58 = vpop.f32.mrf.mxu0 }
 0x6b5   : > { %v5050_v42 = vadd.f32 %v5049_v58, %v4358_v32  ;;  %v11995_v58 = vld [vmem:[#allocation2 + $0x38] sm:$0xff] }
 0x6b6   : > { %v5051_v20 = vpop.f32.mrf.mxu0 }
 0x6b7   : > { %v5092_v11 = vpop.f32.mrf.mxu1  ;;  %v5052_v40 = vadd.f32 %v5051_v20, %v4362_v30 }
 0x6b8   : > { %v5053_v33 = vpop.f32.mrf.mxu0  ;;  %v5093_v49 = vadd.f32 %v5092_v11, %v5050_v42  ;;  %v11586_v42 = vld [vmem:[%s12130_s26 + $0xc0] ss:$16 sps:$4 sm:$0xff]  }
 0x6b9   : > { %v5094_v31 = vpop.f32.mrf.mxu1  ;;  %v5054_v39 = vadd.f32 %v5053_v33, %v4358_v32  ;;  %v11583_v32 = vld [vmem:[%s12130_s26 + $0xe8] ss:$16 sps:$4 sm:$0xff]   ;;  %v11585_v33 = vld [vmem:[%s12130_s26 + $0xec] ss:$16 sps:$4 sm:$0xff]  }
 0x6ba   : > { %v5055_v4 = vpop.f32.mrf.mxu0  ;;  %v5095_v47 = vadd.f32 %v5094_v31, %v5052_v40  ;;  %v12856_v0 = vadd.f32 %v11989_v63, %v5093_v49  ;;  %v11582_v31 = vld [vmem:[%s12130_s26 + $0xe4] ss:$16 sps:$4 sm:$0xff]   ;;  %6933 = vmatprep.subr.bf16.mxu1 %v11585_v33  ;;  %v11592_v49 = vld [vmem:[%s12130_s26 + $0xa0] ss:$16 sps:$4 sm:$0xff]  }
 0x6bb   : > { %v5096_v41 = vpop.f32.mrf.mxu1  ;;  %v5056_v15 = vadd.f32 %v5055_v4, %v4362_v30  ;;  %v11580_v30 = vld [vmem:[%s12130_s26 + $0xe0] ss:$16 sps:$4 sm:$0xff]   ;;  %v11588_v40 = vld [vmem:[%s12130_s26 + $0xc4] ss:$16 sps:$4 sm:$0xff]   ;;  %6890 = vmatprep.subr.bf16.mxu0 %v11582_v31  ;;  %6934 = vmatpush1.bf16.xpose.msra.mxu1 %v11583_v32  ;;  %v11589_v4 = vld [vmem:[%s12130_s26 + $0xc8] ss:$16 sps:$4 sm:$0xff]  }
 0x6bc   : > { %v12854_v53 = vadd.f32 %v11988_v51, %v5095_v47  ;;  %v5097_v6 = vadd.f32 %v5096_v41, %v5054_v39  ;;  %v11591_v41 = vld [vmem:[%s12130_s26 + $0xcc] ss:$16 sps:$4 sm:$0xff]   ;;  %6891 = vmatpush1.bf16.xpose.msra.mxu0 %v11580_v30  ;;  %v11594_v47 = vld [vmem:[%s12130_s26 + $0xa4] ss:$16 sps:$4 sm:$0xff]   ;;  %v11601_v39 = vld [vmem:[%s12130_s26 + $0x88] ss:$16 sps:$4 sm:$0xff]  }
 0x6bd   : > { %v5098_v50 = vpop.f32.mrf.mxu1  ;;  %6892 = vmatprep.subr.bf16.mxu0 %v11588_v40  ;;  %6935 = vmatprep.subr.bf16.mxu1 %v11591_v41  ;;  %v11606_v51 = vld [vmem:[%s12130_s26 + $0x64] ss:$16 sps:$4 sm:$0xff]   ;;  %v11649_v30 = vld [vmem:[%s12130_s26 + $0x188] ss:$16 sps:$4 sm:$0xff]   ;;  %v11657_v32 = vld [vmem:[%s12130_s26 + $0x16c] ss:$16 sps:$4 sm:$0xff]  }
 0x6be   : > { %v5099_v60 = vadd.f32 %v5098_v50, %v5056_v15  ;;  %v5197_v10 = vadd.f32 %v12854_v53, %v12856_v0  ;;  %v12864_v23 = vadd.f32 %v11992_v22, %v5097_v6  ;;  %v11595_v50 = vld [vmem:[%s12130_s26 + $0xa8] ss:$16 sps:$4 sm:$0xff]   ;;  %v11600_v15 = vld [vmem:[%s12130_s26 + $0x84] ss:$16 sps:$4 sm:$0xff]   ;;  %v11615_v6 = vld [vmem:[%s12130_s26 + $0x4c] ss:$16 sps:$4 sm:$0xff]  }
 0x6bf   : > { %v11612_v63 = vld [vmem:[%s12130_s26 + $0x44] ss:$16 sps:$4 sm:$0xff]   ;;  %v11633_v22 = vld [vmem:[%s12130_s26 + $0x1ec] ss:$16 sps:$4 sm:$0xff]   ;;  %v11652_v33 = vld [vmem:[%s12130_s26 + $0x160] ss:$16 sps:$4 sm:$0xff]  }
 0x6c0   : > { %v12860_v55 = vadd.f32 %v11990_v36, %v5099_v60  ;;  %v11609_v60 = vld [vmem:[%s12130_s26 + $0x6c] ss:$16 sps:$4 sm:$0xff]   ;;  %v11624_v36 = vld [vmem:[%s12130_s26 + $0x4] ss:$16 sps:$4 sm:$0xff]   ;;  %v11655_v40 = vld [vmem:[%s12130_s26 + $0x168] ss:$16 sps:$4 sm:$0xff]  }
 0x6c1   : > { %v11654_v31 = vld [vmem:[%s12130_s26 + $0x164] ss:$16 sps:$4 sm:$0xff]  }
 0x6c2   : > { %v5202_v28 = vadd.f32 %v12860_v55, %v12864_v23 }
 0x6c3   : > { %6936 = vmatpush1.bf16.xpose.msra.mxu1 %v11589_v4 }
 0x6c4   : > { %6893 = vmatpush1.bf16.xpose.msra.mxu0 %v11586_v42 }
 0x6c5   : > { %6894 = vmatprep.subr.bf16.mxu0 %v11594_v47 }
 0x6cc   : > { %6895 = vmatpush1.bf16.xpose.msra.mxu0 %v11592_v49 }
 0x6cd   : > { %6896 = vmatprep.subr.bf16.mxu0 %v11600_v15 }
 0x734   : > { %v5135_v38 = vpop.f32.mrf.mxu0 }
 0x735   : > { %v5136_v61 = vadd.f32 %v5135_v38, %v4366_v7  ;;  %v11603_v38 = vld [vmem:[%s12130_s26 + $0x8c] ss:$16 sps:$4 sm:$0xff]  }
 0x736   : > { %v5137_v62 = vpop.f32.mrf.mxu0 }
 0x737   : > { %v5178_v43 = vpop.f32.mrf.mxu1  ;;  %v5138_v12 = vadd.f32 %v5137_v62, %v4370_v29  ;;  %v11607_v62 = vld [vmem:[%s12130_s26 + $0x68] ss:$16 sps:$4 sm:$0xff]  }
 0x738   : > { %v5139_v18 = vpop.f32.mrf.mxu0  ;;  %v5179_v14 = vadd.f32 %v5178_v43, %v5136_v61  ;;  %v11604_v61 = vld [vmem:[%s12130_s26 + $0x60] ss:$16 sps:$4 sm:$0xff]  }
 0x739   : > { %v5180_v45 = vpop.f32.mrf.mxu1  ;;  %v5140_v27 = vadd.f32 %v5139_v18, %v4366_v7  ;;  %v11597_v7 = vld [vmem:[%s12130_s26 + $0xac] ss:$16 sps:$4 sm:$0xff]   ;;  %v11610_v43 = vld [vmem:[%s12130_s26 + $0x40] ss:$16 sps:$4 sm:$0xff]   ;;  %v11618_v18 = vld [vmem:[%s12130_s26 + $0x24] ss:$16 sps:$4 sm:$0xff]  }
 0x73a   : > { %v12862_v25 = vadd.f32 %v11991_v48, %v5179_v14  ;;  %v5141_v37 = vpop.f32.mrf.mxu0  ;;  %v5181_v59 = vadd.f32 %v5180_v45, %v5138_v12  ;;  %6937 = vmatprep.subr.bf16.mxu1 %v11597_v7  ;;  %v11613_v12 = vld [vmem:[%s12130_s26 + $0x48] ss:$16 sps:$4 sm:$0xff]   ;;  %v11621_v14 = vld [vmem:[%s12130_s26 + $0x2c] ss:$16 sps:$4 sm:$0xff]   ;;  %v11622_v48 = vld [vmem:[%s12130_s26] ss:$16 sps:$4 sm:$0xff]  }
 0x73b   : > { %v5182_v16 = vpop.f32.mrf.mxu1  ;;  %v5142_v3 = vadd.f32 %v5141_v37, %v4370_v29  ;;  %6938 = vmatpush1.bf16.xpose.msra.mxu1 %v11595_v50  ;;  %v11598_v29 = vld [vmem:[%s12130_s26 + $0x80] ss:$16 sps:$4 sm:$0xff]   ;;  %v11619_v45 = vld [vmem:[%s12130_s26 + $0x28] ss:$16 sps:$4 sm:$0xff]  }
 0x73c   : > { %v12866_v34 = vadd.f32 %v11993_v17, %v5181_v59  ;;  %v5183_v35 = vadd.f32 %v5182_v16, %v5140_v27  ;;  %v5198_v5 = vadd.f32 %v5197_v10, %v12862_v25  ;;  %6939 = vmatprep.subr.bf16.mxu1 %v11603_v38  ;;  %6897 = vmatpush1.bf16.xpose.msra.mxu0 %v11598_v29  ;;  %v11616_v10 = vld [vmem:[%s12130_s26 + $0x20] ss:$16 sps:$4 sm:$0xff]   ;;  %v11627_v27 = vld [vmem:[%s12130_s26 + $0xc] ss:$16 sps:$4 sm:$0xff]   ;;  %v11625_v37 = vld [vmem:[%s12130_s26 + $0x8] ss:$16 sps:$4 sm:$0xff]  }
 0x73d   : > { %v5184_v52 = vpop.f32.mrf.mxu1  ;;  %6898 = vmatprep.subr.bf16.mxu0 %v11606_v51  ;;  %v11630_v59 = vld [vmem:[%s12130_s26 + $0x1e4] ss:$16 sps:$4 sm:$0xff]   ;;  %v11628_v16 = vld [vmem:[%s12130_s26 + $0x1e0] ss:$16 sps:$4 sm:$0xff]  }
 0x73e   : > { %v12871_v46 = vadd.f32 %v11994_v26, %v5183_v35  ;;  %v5185_v44 = vadd.f32 %v5184_v52, %v5142_v3  ;;  %v5199_v9 = vadd.f32 %v5198_v5, %v12866_v34  ;;  %v11631_v3 = vld [vmem:[%s12130_s26 + $0x1e8] ss:$16 sps:$4 sm:$0xff]   ;;  %v11636_v17 = vld [vmem:[%s12130_s26 + $0x1c4] ss:$16 sps:$4 sm:$0xff]   ;;  %v11639_v35 = vld [vmem:[%s12130_s26 + $0x1cc] ss:$16 sps:$4 sm:$0xff]  }
 0x73f   : > { %v11634_v5 = vld [vmem:[%s12130_s26 + $0x1c0] ss:$16 sps:$4 sm:$0xff]   ;;  %v11637_v52 = vld [vmem:[%s12130_s26 + $0x1c8] ss:$16 sps:$4 sm:$0xff]   ;;  %v11645_v26 = vld [vmem:[%s12130_s26 + $0x1ac] ss:$16 sps:$4 sm:$0xff]  }
 0x740   : > { %v12874_v11 = vadd.f32 %v11995_v58, %v5185_v44  ;;  %5200 = vadd.xlane.f32.xlu0 %v5199_v9  ;;  %v5203_v20 = vadd.f32 %v5202_v28, %v12871_v46  ;;  %v11642_v28 = vld [vmem:[%s12130_s26 + $0x1a4] ss:$16 sps:$4 sm:$0xff]   ;;  %v11640_v44 = vld [vmem:[%s12130_s26 + $0x1a0] ss:$16 sps:$4 sm:$0xff]   ;;  %v11643_v9 = vld [vmem:[%s12130_s26 + $0x1a8] ss:$16 sps:$4 sm:$0xff]  }
 0x741   : > { %v11648_v58 = vld [vmem:[%s12130_s26 + $0x184] ss:$16 sps:$4 sm:$0xff]  }
 0x742   : > { %v5204_v21 = vadd.f32 %v5203_v20, %v12874_v11  ;;  %v11651_v20 = vld [vmem:[%s12130_s26 + $0x18c] ss:$16 sps:$4 sm:$0xff]  }
 0x743   : > { %6940 = vmatpush1.bf16.xpose.msra.mxu1 %v11601_v39 }
 0x744   : > { %5205 = vadd.xlane.f32.xlu1 %v5204_v21  ;;  %6941 = vmatprep.subr.bf16.mxu1 %v11609_v60  ;;  %v11646_v21 = vld [vmem:[%s12130_s26 + $0x180] ss:$16 sps:$4 sm:$0xff]  }
 0x745   : > { %6899 = vmatpush1.bf16.xpose.msra.mxu0 %v11604_v61 }
 0x746   : > { %6900 = vmatprep.subr.bf16.mxu0 %v11612_v63 }
 0x74b   : > { %6942 = vmatpush1.bf16.xpose.msra.mxu1 %v11607_v62 }
 0x74c   : > { %6943 = vmatprep.subr.bf16.mxu1 %v11615_v6 }
 0x74d   : > { %6901 = vmatpush1.bf16.xpose.msra.mxu0 %v11610_v43 }
 0x74e   : > { %6902 = vmatprep.subr.bf16.mxu0 %v11618_v18  ;;  %v11663_v18 = vld [vmem:[%s12130_s26 + $0x14c] ss:$16 sps:$4 sm:$0xff]  }
 0x753   : > { %6944 = vmatpush1.bf16.xpose.msra.mxu1 %v11613_v12  ;;  %v11660_v12 = vld [vmem:[%s12130_s26 + $0x144] ss:$16 sps:$4 sm:$0xff]  }
 0x754   : > { %6945 = vmatprep.subr.bf16.mxu1 %v11621_v14  ;;  %v11658_v14 = vld [vmem:[%s12130_s26 + $0x140] ss:$16 sps:$4 sm:$0xff]  }
 0x755   : > { %6903 = vmatpush1.bf16.xpose.msra.mxu0 %v11616_v10  ;;  %v11661_v10 = vld [vmem:[%s12130_s26 + $0x148] ss:$16 sps:$4 sm:$0xff]  }
 0x756   : > { %6904 = vmatprep.subr.bf16.mxu0 %v11624_v36  ;;  %v11669_v36 = vld [vmem:[%s12130_s26 + $0x12c] ss:$16 sps:$4 sm:$0xff]  }
 0x75b   : > { %6946 = vmatpush1.bf16.xpose.msra.mxu1 %v11619_v45  ;;  %v11666_v45 = vld [vmem:[%s12130_s26 + $0x124] ss:$16 sps:$4 sm:$0xff]  }
 0x75c   : > { %6947 = vmatprep.subr.bf16.mxu1 %v11627_v27  ;;  %v11664_v27 = vld [vmem:[%s12130_s26 + $0x120] ss:$16 sps:$4 sm:$0xff]  }
 0x75d   : > { %6905 = vmatpush1.bf16.xpose.msra.mxu0 %v11622_v48  ;;  %v11667_v48 = vld [vmem:[%s12130_s26 + $0x128] ss:$16 sps:$4 sm:$0xff]  }
 0x75e   : > { %6906 = vmatprep.subr.bf16.mxu0 %v11630_v59  ;;  %v11675_v59 = vld [vmem:[%s12130_s26 + $0x10c] ss:$16 sps:$4 sm:$0xff]  }
 0x763   : > { %6948 = vmatpush1.bf16.xpose.msra.mxu1 %v11625_v37  ;;  %v11672_v37 = vld [vmem:[%s12130_s26 + $0x104] ss:$16 sps:$4 sm:$0xff]  }
 0x764   : > { %6949 = vmatprep.subr.bf16.mxu1 %v11633_v22  ;;  %v11670_v22 = vld [vmem:[%s12130_s26 + $0x100] ss:$16 sps:$4 sm:$0xff]  }
 0x765   : > { %6907 = vmatpush2.bf16.xpose.msra.mxu0 %v11628_v16  ;;  %v11673_v16 = vld [vmem:[%s12130_s26 + $0x108] ss:$16 sps:$4 sm:$0xff]  }
 0x766   : > { %6908 = vmatprep.subr.bf16.mxu0 %v11636_v17  ;;  %v11681_v17 = vld [vmem:[%s12130_s26 + $0x2ec] ss:$16 sps:$4 sm:$0xff]  }
 0x76b   : > { %6950 = vmatpush2.bf16.xpose.msra.mxu1 %v11631_v3  ;;  %v11678_v3 = vld [vmem:[%s12130_s26 + $0x2e4] ss:$16 sps:$4 sm:$0xff]  }
 0x76c   : > { %6951 = vmatprep.subr.bf16.mxu1 %v11639_v35 }
 0x76d   : > { %6909 = vmatpush2.bf16.xpose.msra.mxu0 %v11634_v5 }
 0x76e   : > { %6910 = vmatprep.subr.bf16.mxu0 %v11642_v28 }
 0x773   : > { %6952 = vmatpush2.bf16.xpose.msra.mxu1 %v11637_v52 }
 0x774   : > { %6953 = vmatprep.subr.bf16.mxu1 %v11645_v26 }
 0x775   : > { %6911 = vmatpush2.bf16.xpose.msra.mxu0 %v11640_v44 }
 0x776   : > { %6912 = vmatprep.subr.bf16.mxu0 %v11648_v58 }
 0x77b   : > { %6954 = vmatpush2.bf16.xpose.msra.mxu1 %v11643_v9  ;;  %v5195_v9 = vld [vmem:[%s13898_s21] sm:$0xf] }
 0x77c   : > { %6955 = vmatprep.subr.bf16.mxu1 %v11651_v20  ;;  %v5196_v20 = vld [vmem:[%s13899_s14] sm:$0xf] }
 0x77d   : > { %6913 = vmatpush2.bf16.xpose.msra.mxu0 %v11646_v21 }
 0x77e   : > { %6914 = vmatprep.subr.bf16.mxu0 %v11654_v31 }
 0x783   : > { %6956 = vmatpush2.bf16.xpose.msra.mxu1 %v11649_v30  ;;  %v5258_v30 = vrot.slane %v5195_v9, %v12637_v1 }
 0x784   : > { %6957 = vmatprep.subr.bf16.mxu1 %v11657_v32  ;;  %v5266_v32 = vrot.slane %v5195_v9, %v12640_v2 }
 0x785   : > { %6915 = vmatpush2.bf16.xpose.msra.mxu0 %v11652_v33 }
 0x786   : > { %6916 = vmatprep.subr.bf16.mxu0 %v11660_v12 }
 0x78b   : > { %6958 = vmatpush2.bf16.xpose.msra.mxu1 %v11655_v40  ;;  %v5254_v40 = vrot.slane %v5195_v9, %v12651_v19 }
 0x78c   : > { %6959 = vmatprep.subr.bf16.mxu1 %v11663_v18 }
 0x78d   : > { %6917 = vmatpush2.bf16.xpose.msra.mxu0 %v11658_v14 }
 0x78e   : > { %6918 = vmatprep.subr.bf16.mxu0 %v11666_v45  ;;  %v11679_v45 = vld [vmem:[%s12130_s26 + $0x2e8] ss:$16 sps:$4 sm:$0xff]  }
 0x793   : > { %6960 = vmatpush2.bf16.xpose.msra.mxu1 %v11661_v10  ;;  %v11676_v10 = vld [vmem:[%s12130_s26 + $0x2e0] ss:$16 sps:$4 sm:$0xff]  }
 0x794   : > { %6961 = vmatprep.subr.bf16.mxu1 %v11669_v36 }
 0x795   : > { %6919 = vmatpush2.bf16.xpose.msra.mxu0 %v11664_v27 }
 0x796   : > { %6920 = vmatprep.subr.bf16.mxu0 %v11672_v37  ;;  %v11687_v37 = vld [vmem:[%s12130_s26 + $0x2cc] ss:$16 sps:$4 sm:$0xff]  }
 0x79b   : > { %6962 = vmatpush2.bf16.xpose.msra.mxu1 %v11667_v48  ;;  %v11684_v48 = vld [vmem:[%s12130_s26 + $0x2c4] ss:$16 sps:$4 sm:$0xff]  }
 0x79c   : > { %6963 = vmatprep.subr.bf16.mxu1 %v11675_v59  ;;  %v11682_v59 = vld [vmem:[%s12130_s26 + $0x2c0] ss:$16 sps:$4 sm:$0xff]  }
 0x79d   : > { %6921 = vmatpush2.bf16.xpose.msra.mxu0 %v11670_v22  ;;  %v11685_v22 = vld [vmem:[%s12130_s26 + $0x2c8] ss:$16 sps:$4 sm:$0xff]  }
 0x79e   : > { %6976 = vmatprep.subr.bf16.mxu0 %v11678_v3  ;;  %v11693_v3 = vld [vmem:[%s12130_s26 + $0x2ac] ss:$16 sps:$4 sm:$0xff]  }
 0x7a3   : > { %6964 = vmatpush2.bf16.xpose.msra.mxu1 %v11673_v16  ;;  %v11690_v16 = vld [vmem:[%s12130_s26 + $0x2a4] ss:$16 sps:$4 sm:$0xff]  }
 0x7a4   : > { %7019 = vmatprep.subr.bf16.mxu1 %v11681_v17  ;;  %v11688_v17 = vld [vmem:[%s12130_s26 + $0x2a0] ss:$16 sps:$4 sm:$0xff]  }
 0x7c9   : > { %v5201_v41 = vpop.xlane.xlu0 %5200 }
 0x7ca   : > { %v5208_v42 = vmul.f32 0.001953125, %v5201_v41 }
 0x7cc   : > { %v12931_v4 = vsub.f32 %v12856_v0, %v5208_v42  ;;  %v12934_v47 = vsub.f32 %v12854_v53, %v5208_v42  ;;  %v12937_v7 = vsub.f32 %v12862_v25, %v5208_v42  ;;  %v12940_v50 = vsub.f32 %v12866_v34, %v5208_v42 }
 0x7cd   : > { %v5206_v49 = vpop.xlane.xlu1 %5205  ;;  %v5262_v42 = vrot.slane %v5195_v9, %v12656_v24  ;;  %v11705_v9 = vld [vmem:[%s12130_s26 + $0x26c] ss:$16 sps:$4 sm:$0xff]  }
 0x7ce   : > { %v5209_v15 = vmul.f32 0.001953125, %v5206_v49  ;;  %v5218_v38 = vmul.f32 %v12931_v4, %v12931_v4  ;;  %v5219_v29 = vmul.f32 %v12934_v47, %v12934_v47  ;;  %v5220_v0 = vmul.f32 %v12937_v7, %v12937_v7 }
 0x7cf   : > { %v5221_v51 = vmul.f32 %v12940_v50, %v12940_v50 }
 0x7d0   : > { %v12949_v53 = vsub.f32 %v12864_v23, %v5209_v15  ;;  %v12952_v25 = vsub.f32 %v12860_v55, %v5209_v15  ;;  %v5226_v39 = vadd.f32 %v5219_v29, %v5218_v38  ;;  %v12955_v34 = vsub.f32 %v12871_v46, %v5209_v15 }
 0x7d1   : > { %v12960_v61 = vsub.f32 %v12874_v11, %v5209_v15  ;;  %v5287_v15 = vrot.slane %v5196_v20, %v12637_v1  ;;  %v5295_v38 = vrot.slane %v5196_v20, %v12640_v2  ;;  %v5291_v29 = vrot.slane %v5196_v20, %v12656_v24 }
 0x7d2   : > { %v5227_v60 = vadd.f32 %v5226_v39, %v5220_v0  ;;  %v5222_v23 = vmul.f32 %v12949_v53, %v12949_v53  ;;  %v5223_v55 = vmul.f32 %v12952_v25, %v12952_v25  ;;  %v5224_v46 = vmul.f32 %v12955_v34, %v12955_v34 }
 0x7d3   : > { %v5225_v6 = vmul.f32 %v12960_v61, %v12960_v61 }
 0x7d4   : > { %v5228_v62 = vadd.f32 %v5227_v60, %v5221_v51  ;;  %v5231_v63 = vadd.f32 %v5223_v55, %v5222_v23 }
 0x7d6   : > { %5229 = vadd.xlane.f32.xlu0 %v5228_v62  ;;  %v5232_v11 = vadd.f32 %v5231_v63, %v5224_v46 }
 0x7d8   : > { %v5233_v43 = vadd.f32 %v5232_v11, %v5225_v6 }
 0x7da   : > { %5234 = vadd.xlane.f32.xlu1 %v5233_v43 }
 0x85f   : > { %v5230_v35 = vpop.xlane.xlu0 %5229 }
 0x860   : > { %v5236_v5 = vmul.f32 0.001953125, %v5230_v35  ;;  %v11691_v35 = vld [vmem:[%s12130_s26 + $0x2a8] ss:$16 sps:$4 sm:$0xff]  }
 0x862   : > { %v5238_v52 = vadd.f32 1e-05, %v5236_v5  ;;  %v11696_v5 = vld [vmem:[%s12130_s26 + $0x284] ss:$16 sps:$4 sm:$0xff]  }
 0x863   : > { %v5235_v28 = vpop.xlane.xlu1 %5234 }
 0x864   : > { %11980 = vrsqrt.f32 %v5238_v52  ;;  %v5237_v26 = vmul.f32 0.001953125, %v5235_v28  ;;  %v11699_v52 = vld [vmem:[%s12130_s26 + $0x28c] ss:$16 sps:$4 sm:$0xff]   ;;  %v11694_v28 = vld [vmem:[%s12130_s26 + $0x280] ss:$16 sps:$4 sm:$0xff]  }
 0x866   : > { %v5239_v44 = vadd.f32 1e-05, %v5237_v26  ;;  %v11697_v26 = vld [vmem:[%s12130_s26 + $0x288] ss:$16 sps:$4 sm:$0xff]  }
 0x868   : > { %11982 = vrsqrt.f32 %v5239_v44  ;;  %v11702_v44 = vld [vmem:[%s12130_s26 + $0x264] ss:$16 sps:$4 sm:$0xff]  }
 0x871   : > { %v11981_v58 = vpop.eup %11980 }
 0x872   : > { %v5243_v21 = vmul.f32 %v11981_v58, %v12934_v47  ;;  %v5245_v31 = vmul.f32 %v11981_v58, %v12940_v50  ;;  %v5242_v33 = vmul.f32 %v11981_v58, %v12931_v4  ;;  %v5244_v41 = vmul.f32 %v11981_v58, %v12937_v7  ;;  %v11700_v58 = vld [vmem:[%s12130_s26 + $0x260] ss:$16 sps:$4 sm:$0xff]  }
 0x873   : > { %v5283_v47 = vrot.slane %v5196_v20, %v12651_v19  ;;  %v11703_v20 = vld [vmem:[%s12130_s26 + $0x268] ss:$16 sps:$4 sm:$0xff]  }
 0x874   : > { %v5272_v0 = vmul.f32 %v5258_v30, %v5243_v21  ;;  %v5274_v39 = vmul.f32 %v5266_v32, %v5245_v31  ;;  %v5271_v7 = vmul.f32 %v5254_v40, %v5242_v33  ;;  %v5273_v23 = vmul.f32 %v5262_v42, %v5244_v41  ;;  %v11708_v21 = vld [vmem:[%s12130_s26 + $0x244] ss:$16 sps:$4 sm:$0xff]   ;;  %v11706_v31 = vld [vmem:[%s12130_s26 + $0x240] ss:$16 sps:$4 sm:$0xff]  }
 0x875   : > { %v11983_v49 = vpop.eup %11982  ;;  %v11714_v33 = vld [vmem:[%s12130_s26 + $0x224] ss:$16 sps:$4 sm:$0xff]   ;;  %v11712_v41 = vld [vmem:[%s12130_s26 + $0x220] ss:$16 sps:$4 sm:$0xff]  }
 0x876   : > { %v5247_v50 = vmul.f32 %v11983_v49, %v12952_v25  ;;  %v5249_v4 = vmul.f32 %v11983_v49, %v12960_v61  ;;  %v5246_v51 = vmul.f32 %v11983_v49, %v12949_v53  ;;  %v5248_v60 = vmul.f32 %v11983_v49, %v12955_v34  ;;  %v11720_v49 = vld [vmem:[%s12130_s26 + $0x204] ss:$16 sps:$4 sm:$0xff]  }
 0x877   : > { %v13010_v6 = vadd.f32 %v5287_v15, %v5272_v0  ;;  %v13014_v61 = vadd.f32 %v5295_v38, %v5274_v39  ;;  %v13018_v53 = vadd.f32 %v5283_v47, %v5271_v7  ;;  %v13022_v43 = vadd.f32 %v5291_v29, %v5273_v23  ;;  %v11724_v0 = vld [vmem:[%s12130_s26 + $0x3e0] ss:$16 sps:$4 sm:$0xff]   ;;  %v11732_v39 = vld [vmem:[%s12130_s26 + $0x3c4] ss:$16 sps:$4 sm:$0xff]  }
 0x878   : > { %v5276_v55 = vmul.f32 %v5258_v30, %v5247_v50  ;;  %v5278_v62 = vmul.f32 %v5266_v32, %v5249_v4  ;;  %v5275_v46 = vmul.f32 %v5254_v40, %v5246_v51  ;;  %v5277_v63 = vmul.f32 %v5262_v42, %v5248_v60  ;;  %v11711_v30 = vld [vmem:[%s12130_s26 + $0x24c] ss:$16 sps:$4 sm:$0xff]   ;;  %v11709_v32 = vld [vmem:[%s12130_s26 + $0x248] ss:$16 sps:$4 sm:$0xff]   ;;  %v11730_v7 = vld [vmem:[%s12130_s26 + $0x3c0] ss:$16 sps:$4 sm:$0xff]  }
 0x879   : > { %v11717_v40 = vld [vmem:[%s12130_s26 + $0x22c] ss:$16 sps:$4 sm:$0xff]   ;;  %v11715_v42 = vld [vmem:[%s12130_s26 + $0x228] ss:$16 sps:$4 sm:$0xff]   ;;  %v11738_v23 = vld [vmem:[%s12130_s26 + $0x3a4] ss:$16 sps:$4 sm:$0xff]  }
 0x87a   : > { %v13012_v25 = vadd.f32 %v5287_v15, %v5276_v55  ;;  %v13016_v11 = vadd.f32 %v5295_v38, %v5278_v62  ;;  %v13020_v34 = vadd.f32 %v5283_v47, %v5275_v46  ;;  %v13024_v12 = vadd.f32 %v5291_v29, %v5277_v63  ;;  %v11723_v15 = vld [vmem:[%s12130_s26 + $0x20c] ss:$16 sps:$4 sm:$0xff]   ;;  %v11718_v38 = vld [vmem:[%s12130_s26 + $0x200] ss:$16 sps:$4 sm:$0xff]   ;;  %v11721_v47 = vld [vmem:[%s12130_s26 + $0x208] ss:$16 sps:$4 sm:$0xff]  }
 0x87b   : > { %v11726_v29 = vld [vmem:[%s12130_s26 + $0x3e4] ss:$16 sps:$4 sm:$0xff]   ;;  %v11729_v50 = vld [vmem:[%s12130_s26 + $0x3ec] ss:$16 sps:$4 sm:$0xff]   ;;  %v11727_v4 = vld [vmem:[%s12130_s26 + $0x3e8] ss:$16 sps:$4 sm:$0xff]  }
 0x87c   : > { %v13028_v18 = vpack.c.bf16 %v13012_v25, %v13010_v6  ;;  %v13032_v14 = vpack.c.bf16 %v13016_v11, %v13014_v61  ;;  %v13038_v36 = vpack.c.bf16 %v13020_v34, %v13018_v53  ;;  %v13042_v27 = vpack.c.bf16 %v13024_v12, %v13022_v43  ;;  %v11735_v51 = vld [vmem:[%s12130_s26 + $0x3cc] ss:$16 sps:$4 sm:$0xff]   ;;  %v11733_v60 = vld [vmem:[%s12130_s26 + $0x3c8] ss:$16 sps:$4 sm:$0xff]   ;;  %v11736_v62 = vld [vmem:[%s12130_s26 + $0x3a0] ss:$16 sps:$4 sm:$0xff]  }
 0x87d   : > { %v11741_v55 = vld [vmem:[%s12130_s26 + $0x3ac] ss:$16 sps:$4 sm:$0xff]   ;;  %v11739_v46 = vld [vmem:[%s12130_s26 + $0x3a8] ss:$16 sps:$4 sm:$0xff]   ;;  %v11744_v63 = vld [vmem:[%s12130_s26 + $0x384] ss:$16 sps:$4 sm:$0xff]  }
 0x87e   : > { %6922 = vmatprep.mubr.bf16.mxu0 %v13028_v18  ;;  %6965 = vmatprep.mubr.bf16.mxu1 %v13032_v14 }
 0x87f   : > { %6923 = vmatmul.mubr.bf16.vlgmr.msra.gmra.mxu0 %v13038_v36  ;;  %6966 = vmatmul.mubr.bf16.vlgmr.msra.gmra.mxu1 %v13042_v27 }
 0x880   : > { %6977 = vmatpush1.bf16.xpose.msra.mxu0 %v11676_v10  ;;  %7020 = vmatpush1.bf16.xpose.msra.mxu1 %v11679_v45  ;;  %v11747_v10 = vld [vmem:[%s12130_s26 + $0x38c] ss:$16 sps:$4 sm:$0xff]   ;;  %v11742_v45 = vld [vmem:[%s12130_s26 + $0x380] ss:$16 sps:$4 sm:$0xff]  }
 0x881   : > { %7008 = vmatprep.mubr.bf16.mxu0 %v13028_v18  ;;  %7051 = vmatprep.mubr.bf16.mxu1 %v13032_v14 }
 0x882   : > { %6978 = vmatprep.subr.bf16.mxu0 %v11684_v48  ;;  %7021 = vmatprep.subr.bf16.mxu1 %v11687_v37  ;;  %v11745_v48 = vld [vmem:[%s12130_s26 + $0x388] ss:$16 sps:$4 sm:$0xff]   ;;  %v11750_v37 = vld [vmem:[%s12130_s26 + $0x364] ss:$16 sps:$4 sm:$0xff]  }
 0x888   : > { %6979 = vmatpush1.bf16.xpose.msra.mxu0 %v11682_v59  ;;  %7022 = vmatpush1.bf16.xpose.msra.mxu1 %v11685_v22  ;;  %v11753_v59 = vld [vmem:[%s12130_s26 + $0x36c] ss:$16 sps:$4 sm:$0xff]   ;;  %v11748_v22 = vld [vmem:[%s12130_s26 + $0x360] ss:$16 sps:$4 sm:$0xff]  }
 0x889   : > { %6980 = vmatprep.subr.bf16.mxu0 %v11690_v16  ;;  %7023 = vmatprep.subr.bf16.mxu1 %v11693_v3  ;;  %v11751_v16 = vld [vmem:[%s12130_s26 + $0x368] ss:$16 sps:$4 sm:$0xff]   ;;  %v11756_v3 = vld [vmem:[%s12130_s26 + $0x344] ss:$16 sps:$4 sm:$0xff]  }
 0x890   : > { %6981 = vmatpush1.bf16.xpose.msra.mxu0 %v11688_v17  ;;  %7024 = vmatpush1.bf16.xpose.msra.mxu1 %v11691_v35  ;;  %v11759_v17 = vld [vmem:[%s12130_s26 + $0x34c] ss:$16 sps:$4 sm:$0xff]   ;;  %v11754_v35 = vld [vmem:[%s12130_s26 + $0x340] ss:$16 sps:$4 sm:$0xff]  }
 0x891   : > { %6982 = vmatprep.subr.bf16.mxu0 %v11696_v5  ;;  %7025 = vmatprep.subr.bf16.mxu1 %v11699_v52  ;;  %v11757_v5 = vld [vmem:[%s12130_s26 + $0x348] ss:$16 sps:$4 sm:$0xff]   ;;  %v11762_v52 = vld [vmem:[%s12130_s26 + $0x324] ss:$16 sps:$4 sm:$0xff]  }
 0x898   : > { %6983 = vmatpush1.bf16.xpose.msra.mxu0 %v11694_v28  ;;  %7026 = vmatpush1.bf16.xpose.msra.mxu1 %v11697_v26  ;;  %v11765_v28 = vld [vmem:[%s12130_s26 + $0x32c] ss:$16 sps:$4 sm:$0xff]   ;;  %v11760_v26 = vld [vmem:[%s12130_s26 + $0x320] ss:$16 sps:$4 sm:$0xff]  }
 0x899   : > { %6984 = vmatprep.subr.bf16.mxu0 %v11702_v44  ;;  %7027 = vmatprep.subr.bf16.mxu1 %v11705_v9  ;;  %v11763_v44 = vld [vmem:[%s12130_s26 + $0x328] ss:$16 sps:$4 sm:$0xff]   ;;  %v11768_v9 = vld [vmem:[%s12130_s26 + $0x304] ss:$16 sps:$4 sm:$0xff]  }
 0x8a0   : > { %6985 = vmatpush1.bf16.xpose.msra.mxu0 %v11700_v58  ;;  %7028 = vmatpush1.bf16.xpose.msra.mxu1 %v11703_v20  ;;  %v11771_v58 = vld [vmem:[%s12130_s26 + $0x30c] ss:$16 sps:$4 sm:$0xff]   ;;  %v11766_v20 = vld [vmem:[%s12130_s26 + $0x300] ss:$16 sps:$4 sm:$0xff]  }
 0x8a1   : > { %6986 = vmatprep.subr.bf16.mxu0 %v11708_v21  ;;  %7029 = vmatprep.subr.bf16.mxu1 %v11711_v30  ;;  %v11769_v21 = vld [vmem:[%s12130_s26 + $0x308] ss:$16 sps:$4 sm:$0xff]   ;;  %v11774_v30 = vld [vmem:[%s12130_s26 + $0x4e4] ss:$16 sps:$4 sm:$0xff]  }
 0x8a8   : > { %6987 = vmatpush1.bf16.xpose.msra.mxu0 %v11706_v31  ;;  %7030 = vmatpush1.bf16.xpose.msra.mxu1 %v11709_v32  ;;  %v11777_v31 = vld [vmem:[%s12130_s26 + $0x4ec] ss:$16 sps:$4 sm:$0xff]   ;;  %v11772_v32 = vld [vmem:[%s12130_s26 + $0x4e0] ss:$16 sps:$4 sm:$0xff]  }
 0x8a9   : > { %6988 = vmatprep.subr.bf16.mxu0 %v11714_v33  ;;  %7031 = vmatprep.subr.bf16.mxu1 %v11717_v40  ;;  %v11775_v33 = vld [vmem:[%s12130_s26 + $0x4e8] ss:$16 sps:$4 sm:$0xff]   ;;  %v11780_v40 = vld [vmem:[%s12130_s26 + $0x4c4] ss:$16 sps:$4 sm:$0xff]  }
 0x8b0   : > { %6989 = vmatpush1.bf16.xpose.msra.mxu0 %v11712_v41  ;;  %7032 = vmatpush1.bf16.xpose.msra.mxu1 %v11715_v42  ;;  %v11783_v41 = vld [vmem:[%s12130_s26 + $0x4cc] ss:$16 sps:$4 sm:$0xff]   ;;  %v11778_v42 = vld [vmem:[%s12130_s26 + $0x4c0] ss:$16 sps:$4 sm:$0xff]  }
 0x8b1   : > { %6990 = vmatprep.subr.bf16.mxu0 %v11720_v49  ;;  %7033 = vmatprep.subr.bf16.mxu1 %v11723_v15  ;;  %v11781_v49 = vld [vmem:[%s12130_s26 + $0x4c8] ss:$16 sps:$4 sm:$0xff]   ;;  %v11786_v15 = vld [vmem:[%s12130_s26 + $0x4a4] ss:$16 sps:$4 sm:$0xff]  }
 0x8b8   : > { %6991 = vmatpush1.bf16.xpose.msra.mxu0 %v11718_v38  ;;  %7034 = vmatpush1.bf16.xpose.msra.mxu1 %v11721_v47  ;;  %v11789_v38 = vld [vmem:[%s12130_s26 + $0x4ac] ss:$16 sps:$4 sm:$0xff]   ;;  %v11784_v47 = vld [vmem:[%s12130_s26 + $0x4a0] ss:$16 sps:$4 sm:$0xff]  }
 0x8b9   : > { %6992 = vmatprep.subr.bf16.mxu0 %v11726_v29  ;;  %7035 = vmatprep.subr.bf16.mxu1 %v11729_v50  ;;  %v11787_v29 = vld [vmem:[%s12130_s26 + $0x4a8] ss:$16 sps:$4 sm:$0xff]   ;;  %v11792_v50 = vld [vmem:[%s12130_s26 + $0x484] ss:$16 sps:$4 sm:$0xff]  }
 0x8c0   : > { %6993 = vmatpush2.bf16.xpose.msra.mxu0 %v11724_v0  ;;  %7036 = vmatpush2.bf16.xpose.msra.mxu1 %v11727_v4  ;;  %v11795_v0 = vld [vmem:[%s12130_s26 + $0x48c] ss:$16 sps:$4 sm:$0xff]   ;;  %v11790_v4 = vld [vmem:[%s12130_s26 + $0x480] ss:$16 sps:$4 sm:$0xff]  }
 0x8c1   : > { %6994 = vmatprep.subr.bf16.mxu0 %v11732_v39  ;;  %7037 = vmatprep.subr.bf16.mxu1 %v11735_v51  ;;  %v11793_v39 = vld [vmem:[%s12130_s26 + $0x488] ss:$16 sps:$4 sm:$0xff]   ;;  %v11798_v51 = vld [vmem:[%s12130_s26 + $0x464] ss:$16 sps:$4 sm:$0xff]  }
 0x8c8   : > { %6995 = vmatpush2.bf16.xpose.msra.mxu0 %v11730_v7  ;;  %7038 = vmatpush2.bf16.xpose.msra.mxu1 %v11733_v60  ;;  %v11801_v7 = vld [vmem:[%s12130_s26 + $0x46c] ss:$16 sps:$4 sm:$0xff]   ;;  %v11796_v60 = vld [vmem:[%s12130_s26 + $0x460] ss:$16 sps:$4 sm:$0xff]  }
 0x8c9   : > { %6996 = vmatprep.subr.bf16.mxu0 %v11738_v23  ;;  %7039 = vmatprep.subr.bf16.mxu1 %v11741_v55  ;;  %v11799_v23 = vld [vmem:[%s12130_s26 + $0x468] ss:$16 sps:$4 sm:$0xff]   ;;  %v11804_v55 = vld [vmem:[%s12130_s26 + $0x444] ss:$16 sps:$4 sm:$0xff]  }
 0x8d0   : > { %6997 = vmatpush2.bf16.xpose.msra.mxu0 %v11736_v62  ;;  %7040 = vmatpush2.bf16.xpose.msra.mxu1 %v11739_v46  ;;  %v11807_v62 = vld [vmem:[%s12130_s26 + $0x44c] ss:$16 sps:$4 sm:$0xff]   ;;  %v11802_v46 = vld [vmem:[%s12130_s26 + $0x440] ss:$16 sps:$4 sm:$0xff]  }
 0x8d1   : > { %6998 = vmatprep.subr.bf16.mxu0 %v11744_v63  ;;  %7041 = vmatprep.subr.bf16.mxu1 %v11747_v10  ;;  %v11805_v63 = vld [vmem:[%s12130_s26 + $0x448] ss:$16 sps:$4 sm:$0xff]   ;;  %v11810_v10 = vld [vmem:[%s12130_s26 + $0x424] ss:$16 sps:$4 sm:$0xff]  }
 0x8d8   : > { %6999 = vmatpush2.bf16.xpose.msra.mxu0 %v11742_v45  ;;  %7042 = vmatpush2.bf16.xpose.msra.mxu1 %v11745_v48  ;;  %v11813_v45 = vld [vmem:[%s12130_s26 + $0x42c] ss:$16 sps:$4 sm:$0xff]   ;;  %v11808_v48 = vld [vmem:[%s12130_s26 + $0x420] ss:$16 sps:$4 sm:$0xff]  }
 0x8d9   : > { %7000 = vmatprep.subr.bf16.mxu0 %v11750_v37  ;;  %7043 = vmatprep.subr.bf16.mxu1 %v11753_v59  ;;  %v11811_v37 = vld [vmem:[%s12130_s26 + $0x428] ss:$16 sps:$4 sm:$0xff]   ;;  %v11816_v59 = vld [vmem:[%s12130_s26 + $0x404] ss:$16 sps:$4 sm:$0xff]  }
 0x8e0   : > { %7001 = vmatpush2.bf16.xpose.msra.mxu0 %v11748_v22  ;;  %7044 = vmatpush2.bf16.xpose.msra.mxu1 %v11751_v16  ;;  %v11819_v22 = vld [vmem:[%s12130_s26 + $0x40c] ss:$16 sps:$4 sm:$0xff]   ;;  %v11814_v16 = vld [vmem:[%s12130_s26 + $0x400] ss:$16 sps:$4 sm:$0xff]  }
 0x8e1   : > { %7002 = vmatprep.subr.bf16.mxu0 %v11756_v3  ;;  %7045 = vmatprep.subr.bf16.mxu1 %v11759_v17  ;;  %v11817_v3 = vld [vmem:[%s12130_s26 + $0x408] ss:$16 sps:$4 sm:$0xff]   ;;  %v11822_v17 = vld [vmem:[%s12130_s26 + $0x5e4] ss:$16 sps:$4 sm:$0xff]  }
 0x8e8   : > { %7003 = vmatpush2.bf16.xpose.msra.mxu0 %v11754_v35  ;;  %7046 = vmatpush2.bf16.xpose.msra.mxu1 %v11757_v5  ;;  %v11825_v35 = vld [vmem:[%s12130_s26 + $0x5ec] ss:$16 sps:$4 sm:$0xff]   ;;  %v13149_v5 = vld [vmem:[%s12135_s22] sm:$0xff] }
 0x8e9   : > { %7004 = vmatprep.subr.bf16.mxu0 %v11762_v52  ;;  %7047 = vmatprep.subr.bf16.mxu1 %v11765_v28  ;;  %v11820_v52 = vld [vmem:[%s12130_s26 + $0x5e0] ss:$16 sps:$4 sm:$0xff]   ;;  %v5573_v28 = vrot.slane %v13149_v5, %v12651_v19 }
 0x8f0   : > { %7005 = vmatpush2.bf16.xpose.msra.mxu0 %v11760_v26  ;;  %7048 = vmatpush2.bf16.xpose.msra.mxu1 %v11763_v44  ;;  %v11823_v26 = vld [vmem:[%s12130_s26 + $0x5e8] ss:$16 sps:$4 sm:$0xff]   ;;  %v11828_v44 = vld [vmem:[%s12130_s26 + $0x5c4] ss:$16 sps:$4 sm:$0xff]  }
 0x8f1   : > { %7006 = vmatprep.subr.bf16.mxu0 %v11768_v9  ;;  %7049 = vmatprep.subr.bf16.mxu1 %v11771_v58  ;;  %v11831_v9 = vld [vmem:[%s12130_s26 + $0x5cc] ss:$16 sps:$4 sm:$0xff]  }
 0x8f8   : > { %7007 = vmatpush2.bf16.xpose.msra.mxu0 %v11766_v20  ;;  %7050 = vmatpush2.bf16.xpose.msra.mxu1 %v11769_v21 }
 0x8f9   : > { %7062 = vmatprep.subr.bf16.mxu0 %v11774_v30  ;;  %7105 = vmatprep.subr.bf16.mxu1 %v11777_v31 }
 0x8ff   : > { %7009 = vmatmul.mubr.bf16.vlgmr.msra.gmra.mxu0 %v13038_v36  ;;  %7052 = vmatmul.mubr.bf16.vlgmr.msra.gmra.mxu1 %v13042_v27 }
 0x900   : > { %7063 = vmatpush1.bf16.xpose.msra.mxu0 %v11772_v32  ;;  %7094 = vmatprep.mubr.bf16.mxu0 %v13028_v18 }
 0x901   : > { %7106 = vmatpush1.bf16.xpose.msra.mxu1 %v11775_v33  ;;  %7137 = vmatprep.mubr.bf16.mxu1 %v13032_v14 }
 0x902   : > { %7064 = vmatprep.subr.bf16.mxu0 %v11780_v40  ;;  %7107 = vmatprep.subr.bf16.mxu1 %v11783_v41  ;;  %v11826_v41 = vld [vmem:[%s12130_s26 + $0x5c0] ss:$16 sps:$4 sm:$0xff]  }
 0x908   : > { %7065 = vmatpush1.bf16.xpose.msra.mxu0 %v11778_v42 }
 0x909   : > { %7108 = vmatpush1.bf16.xpose.msra.mxu1 %v11781_v49  ;;  %7066 = vmatprep.subr.bf16.mxu0 %v11786_v15  ;;  %v11829_v49 = vld [vmem:[%s12130_s26 + $0x5c8] ss:$16 sps:$4 sm:$0xff]   ;;  %v11834_v15 = vld [vmem:[%s12130_s26 + $0x5a4] ss:$16 sps:$4 sm:$0xff]  }
 0x90a   : > { %7109 = vmatprep.subr.bf16.mxu1 %v11789_v38 }
 0x910   : > { %7067 = vmatpush1.bf16.xpose.msra.mxu0 %v11784_v47  ;;  %v11837_v47 = vld [vmem:[%s12130_s26 + $0x5ac] ss:$16 sps:$4 sm:$0xff]  }
 0x911   : > { %7110 = vmatpush1.bf16.xpose.msra.mxu1 %v11787_v29  ;;  %7068 = vmatprep.subr.bf16.mxu0 %v11792_v50 }
 0x912   : > { %7111 = vmatprep.subr.bf16.mxu1 %v11795_v0 }
 0x918   : > { %7069 = vmatpush1.bf16.xpose.msra.mxu0 %v11790_v4  ;;  %v11832_v4 = vld [vmem:[%s12130_s26 + $0x5a0] ss:$16 sps:$4 sm:$0xff]  }
 0x919   : > { %7112 = vmatpush1.bf16.xpose.msra.mxu1 %v11793_v39  ;;  %7070 = vmatprep.subr.bf16.mxu0 %v11798_v51  ;;  %v11835_v39 = vld [vmem:[%s12130_s26 + $0x5a8] ss:$16 sps:$4 sm:$0xff]   ;;  %v11840_v51 = vld [vmem:[%s12130_s26 + $0x584] ss:$16 sps:$4 sm:$0xff]  }
 0x91a   : > { %7113 = vmatprep.subr.bf16.mxu1 %v11801_v7  ;;  %v11843_v7 = vld [vmem:[%s12130_s26 + $0x58c] ss:$16 sps:$4 sm:$0xff]  }
 0x920   : > { %7071 = vmatpush1.bf16.xpose.msra.mxu0 %v11796_v60  ;;  %v11838_v60 = vld [vmem:[%s12130_s26 + $0x580] ss:$16 sps:$4 sm:$0xff]  }
 0x921   : > { %7114 = vmatpush1.bf16.xpose.msra.mxu1 %v11799_v23  ;;  %7072 = vmatprep.subr.bf16.mxu0 %v11804_v55  ;;  %v11841_v23 = vld [vmem:[%s12130_s26 + $0x588] ss:$16 sps:$4 sm:$0xff]   ;;  %v11846_v55 = vld [vmem:[%s12130_s26 + $0x564] ss:$16 sps:$4 sm:$0xff]  }
 0x922   : > { %7115 = vmatprep.subr.bf16.mxu1 %v11807_v62  ;;  %v11849_v62 = vld [vmem:[%s12130_s26 + $0x56c] ss:$16 sps:$4 sm:$0xff]  }
 0x928   : > { %7073 = vmatpush1.bf16.xpose.msra.mxu0 %v11802_v46  ;;  %v11844_v46 = vld [vmem:[%s12130_s26 + $0x560] ss:$16 sps:$4 sm:$0xff]  }
 0x929   : > { %7116 = vmatpush1.bf16.xpose.msra.mxu1 %v11805_v63  ;;  %7074 = vmatprep.subr.bf16.mxu0 %v11810_v10  ;;  %v11847_v63 = vld [vmem:[%s12130_s26 + $0x568] ss:$16 sps:$4 sm:$0xff]   ;;  %v11852_v10 = vld [vmem:[%s12130_s26 + $0x544] ss:$16 sps:$4 sm:$0xff]  }
 0x92a   : > { %7117 = vmatprep.subr.bf16.mxu1 %v11813_v45  ;;  %v11855_v45 = vld [vmem:[%s12130_s26 + $0x54c] ss:$16 sps:$4 sm:$0xff]  }
 0x930   : > { %7075 = vmatpush1.bf16.xpose.msra.mxu0 %v11808_v48  ;;  %v11850_v48 = vld [vmem:[%s12130_s26 + $0x540] ss:$16 sps:$4 sm:$0xff]  }
 0x931   : > { %7118 = vmatpush1.bf16.xpose.msra.mxu1 %v11811_v37  ;;  %7076 = vmatprep.subr.bf16.mxu0 %v11816_v59  ;;  %v11853_v37 = vld [vmem:[%s12130_s26 + $0x548] ss:$16 sps:$4 sm:$0xff]   ;;  %v11858_v59 = vld [vmem:[%s12130_s26 + $0x524] ss:$16 sps:$4 sm:$0xff]  }
 0x932   : > { %7119 = vmatprep.subr.bf16.mxu1 %v11819_v22  ;;  %v11861_v22 = vld [vmem:[%s12130_s26 + $0x52c] ss:$16 sps:$4 sm:$0xff]  }
 0x938   : > { %7077 = vmatpush1.bf16.xpose.msra.mxu0 %v11814_v16  ;;  %v11856_v16 = vld [vmem:[%s12130_s26 + $0x520] ss:$16 sps:$4 sm:$0xff]  }
 0x939   : > { %7120 = vmatpush1.bf16.xpose.msra.mxu1 %v11817_v3  ;;  %7078 = vmatprep.subr.bf16.mxu0 %v11822_v17  ;;  %v11859_v3 = vld [vmem:[%s12130_s26 + $0x528] ss:$16 sps:$4 sm:$0xff]   ;;  %v11864_v17 = vld [vmem:[%s12130_s26 + $0x504] ss:$16 sps:$4 sm:$0xff]  }
 0x93a   : > { %7121 = vmatprep.subr.bf16.mxu1 %v11825_v35  ;;  %v11867_v35 = vld [vmem:[%s12130_s26 + $0x50c] ss:$16 sps:$4 sm:$0xff]  }
 0x93f   : > { %v6924_v58 = vpop.f32.mrf.mxu0  ;;  %v6967_v20 = vpop.f32.mrf.mxu1 }
 0x940   : > { %v6925_v21 = vadd.f32 %v6924_v58, %v5573_v28  ;;  %7079 = vmatpush2.bf16.xpose.msra.mxu0 %v11820_v52  ;;  %v11862_v52 = vld [vmem:[%s12130_s26 + $0x500] ss:$16 sps:$4 sm:$0xff]   ;;  %v11871_v58 = vld [vmem:[%s12130_s26 + $0x6e8] ss:$16 sps:$4 sm:$0xff]  }
 0x941   : > { %7122 = vmatpush2.bf16.xpose.msra.mxu1 %v11823_v26  ;;  %v13157_v30 = vpop.f32.mrf.mxu0  ;;  %v13159_v31 = vpop.f32.mrf.mxu1  ;;  %7080 = vmatprep.subr.bf16.mxu0 %v11828_v44  ;;  %v11870_v26 = vld [vmem:[%s12130_s26 + $0x6e4] ss:$16 sps:$4 sm:$0xff]   ;;  %v11873_v44 = vld [vmem:[%s12130_s26 + $0x6ec] ss:$16 sps:$4 sm:$0xff]  }
 0x942   : > { %v6968_v32 = vadd.f32 %v6967_v20, %v6925_v21  ;;  %7123 = vmatprep.subr.bf16.mxu1 %v11831_v9  ;;  %v11868_v9 = vld [vmem:[%s12130_s26 + $0x6e0] ss:$16 sps:$4 sm:$0xff]   ;;  %v11876_v20 = vld [vmem:[%s12130_s26 + $0x6c4] ss:$16 sps:$4 sm:$0xff]   ;;  %v11879_v21 = vld [vmem:[%s12130_s26 + $0x6cc] ss:$16 sps:$4 sm:$0xff]  }
 0x943   : > { %v6928_v33 = vpop.f32.mrf.mxu0  ;;  %v6971_v42 = vpop.f32.mrf.mxu1 }
 0x944   : > { %v6929_v40 = vadd.f32 %v6928_v33, %v5573_v28  ;;  %v7234_v29 = vmax.f32 %v6968_v32, 0.0  ;;  %v11865_v28 = vld [vmem:[%s12130_s26 + $0x508] ss:$16 sps:$4 sm:$0xff]   ;;  %v11874_v32 = vld [vmem:[%s12130_s26 + $0x6c0] ss:$16 sps:$4 sm:$0xff]  }
 0x945   : > { %v11877_v33 = vld [vmem:[%s12130_s26 + $0x6c8] ss:$16 sps:$4 sm:$0xff]  }
 0x946   : > { %v6972_v38 = vadd.f32 %v6971_v42, %v6929_v40  ;;  %v11882_v40 = vld [vmem:[%s12130_s26 + $0x6a4] ss:$16 sps:$4 sm:$0xff]   ;;  %v11880_v42 = vld [vmem:[%s12130_s26 + $0x6a0] ss:$16 sps:$4 sm:$0xff]  }
 0x948   : > { %v7242_v50 = vmax.f32 %v6972_v38, 0.0  ;;  %7081 = vmatpush2.bf16.xpose.msra.mxu0 %v11826_v41  ;;  %v11885_v41 = vld [vmem:[%s12130_s26 + $0x6ac] ss:$16 sps:$4 sm:$0xff]   ;;  %v11889_v38 = vld [vmem:[%s12130_s26 + $0x688] ss:$16 sps:$4 sm:$0xff]  }
 0x949   : > { %7124 = vmatpush2.bf16.xpose.msra.mxu1 %v11829_v49  ;;  %7082 = vmatprep.subr.bf16.mxu0 %v11834_v15  ;;  %v11888_v49 = vld [vmem:[%s12130_s26 + $0x684] ss:$16 sps:$4 sm:$0xff]   ;;  %v11886_v15 = vld [vmem:[%s12130_s26 + $0x680] ss:$16 sps:$4 sm:$0xff]  }
 0x94a   : > { %v13165_v0 = vpack.c.bf16 %v7242_v50, %v7234_v29  ;;  %7125 = vmatprep.subr.bf16.mxu1 %v11837_v47  ;;  %v11894_v47 = vld [vmem:[%s12130_s26 + $0x664] ss:$16 sps:$4 sm:$0xff]   ;;  %v11897_v29 = vld [vmem:[%s12130_s26 + $0x66c] ss:$16 sps:$4 sm:$0xff]   ;;  %v11892_v50 = vld [vmem:[%s12130_s26 + $0x660] ss:$16 sps:$4 sm:$0xff]  }
 0x950   : > { %7083 = vmatpush2.bf16.xpose.msra.mxu0 %v11832_v4  ;;  %v11895_v4 = vld [vmem:[%s12130_s26 + $0x668] ss:$16 sps:$4 sm:$0xff]  }
 0x951   : > { %7126 = vmatpush2.bf16.xpose.msra.mxu1 %v11835_v39  ;;  %7084 = vmatprep.subr.bf16.mxu0 %v11840_v51  ;;  %v11900_v39 = vld [vmem:[%s12130_s26 + $0x644] ss:$16 sps:$4 sm:$0xff]   ;;  %v11903_v51 = vld [vmem:[%s12130_s26 + $0x64c] ss:$16 sps:$4 sm:$0xff]  }
 0x952   : > { %7127 = vmatprep.subr.bf16.mxu1 %v11843_v7  ;;  %v11898_v7 = vld [vmem:[%s12130_s26 + $0x640] ss:$16 sps:$4 sm:$0xff]  }
 0x958   : > { %7085 = vmatpush2.bf16.xpose.msra.mxu0 %v11838_v60  ;;  %v11901_v60 = vld [vmem:[%s12130_s26 + $0x648] ss:$16 sps:$4 sm:$0xff]  }
 0x959   : > { %7128 = vmatpush2.bf16.xpose.msra.mxu1 %v11841_v23  ;;  %7086 = vmatprep.subr.bf16.mxu0 %v11846_v55  ;;  %v11906_v23 = vld [vmem:[%s12130_s26 + $0x624] ss:$16 sps:$4 sm:$0xff]   ;;  %v11909_v55 = vld [vmem:[%s12130_s26 + $0x62c] ss:$16 sps:$4 sm:$0xff]  }
 0x95a   : > { %7129 = vmatprep.subr.bf16.mxu1 %v11849_v62  ;;  %v11904_v62 = vld [vmem:[%s12130_s26 + $0x620] ss:$16 sps:$4 sm:$0xff]  }
 0x960   : > { %7087 = vmatpush2.bf16.xpose.msra.mxu0 %v11844_v46  ;;  %v11907_v46 = vld [vmem:[%s12130_s26 + $0x628] ss:$16 sps:$4 sm:$0xff]  }
 0x961   : > { %7130 = vmatpush2.bf16.xpose.msra.mxu1 %v11847_v63  ;;  %7088 = vmatprep.subr.bf16.mxu0 %v11852_v10  ;;  %v11912_v63 = vld [vmem:[%s12130_s26 + $0x604] ss:$16 sps:$4 sm:$0xff]   ;;  %v11915_v10 = vld [vmem:[%s12130_s26 + $0x60c] ss:$16 sps:$4 sm:$0xff]  }
 0x962   : > { %7131 = vmatprep.subr.bf16.mxu1 %v11855_v45  ;;  %v11910_v45 = vld [vmem:[%s12130_s26 + $0x600] ss:$16 sps:$4 sm:$0xff]  }
 0x968   : > { %7089 = vmatpush2.bf16.xpose.msra.mxu0 %v11850_v48  ;;  %v11913_v48 = vld [vmem:[%s12130_s26 + $0x608] ss:$16 sps:$4 sm:$0xff]  }
 0x969   : > { %7132 = vmatpush2.bf16.xpose.msra.mxu1 %v11853_v37  ;;  %7090 = vmatprep.subr.bf16.mxu0 %v11858_v59  ;;  %v11918_v37 = vld [vmem:[%s12130_s26 + $0x7e4] ss:$16 sps:$4 sm:$0xff]   ;;  %v11921_v59 = vld [vmem:[%s12130_s26 + $0x7ec] ss:$16 sps:$4 sm:$0xff]  }
 0x96a   : > { %7133 = vmatprep.subr.bf16.mxu1 %v11861_v22  ;;  %v5581_v22 = vrot.slane %v13149_v5, %v12656_v24 }
 0x970   : > { %7091 = vmatpush2.bf16.xpose.msra.mxu0 %v11856_v16  ;;  %v11916_v16 = vld [vmem:[%s12130_s26 + $0x7e0] ss:$16 sps:$4 sm:$0xff]  }
 0x971   : > { %7134 = vmatpush2.bf16.xpose.msra.mxu1 %v11859_v3  ;;  %7092 = vmatprep.subr.bf16.mxu0 %v11864_v17  ;;  %v13230_v3 = vpop.f32.mrf.mxu0  ;;  %v13232_v17 = vpop.f32.mrf.mxu1 }
 0x972   : > { %7135 = vmatprep.subr.bf16.mxu1 %v11867_v35  ;;  %v11919_v35 = vld [vmem:[%s12130_s26 + $0x7e8] ss:$16 sps:$4 sm:$0xff]  }
 0x978   : > { %7093 = vmatpush2.bf16.xpose.msra.mxu0 %v11862_v52  ;;  %v11924_v52 = vld [vmem:[%s12130_s26 + $0x7c4] ss:$16 sps:$4 sm:$0xff]  }
 0x979   : > { %7136 = vmatpush2.bf16.xpose.msra.mxu1 %v11865_v28  ;;  %7148 = vmatprep.subr.bf16.mxu0 %v11870_v26  ;;  %v11927_v28 = vld [vmem:[%s12130_s26 + $0x7cc] ss:$16 sps:$4 sm:$0xff]  }
 0x97a   : > { %7191 = vmatprep.subr.bf16.mxu1 %v11873_v44 }
 0x97f   : > { %7095 = vmatmul.mubr.bf16.vlgmr.msra.gmra.mxu0 %v13038_v36 }
 0x980   : > { %7138 = vmatmul.mubr.bf16.vlgmr.msra.gmra.mxu1 %v13042_v27  ;;  %7149 = vmatpush1.bf16.xpose.msra.mxu0 %v11868_v9 }
 0x981   : > { %7180 = vmatprep.mubr.bf16.mxu0 %v13028_v18  ;;  %7192 = vmatpush1.bf16.xpose.msra.mxu1 %v11871_v58  ;;  %v11883_v18 = vld [vmem:[%s12130_s26 + $0x6a8] ss:$16 sps:$4 sm:$0xff]  }
 0x982   : > { %7223 = vmatprep.mubr.bf16.mxu1 %v13032_v14  ;;  %7150 = vmatprep.subr.bf16.mxu0 %v11876_v20  ;;  %v11891_v14 = vld [vmem:[%s12130_s26 + $0x68c] ss:$16 sps:$4 sm:$0xff]  }
 0x983   : > { %7193 = vmatprep.subr.bf16.mxu1 %v11879_v21 }
 0x988   : > { %7151 = vmatpush1.bf16.xpose.msra.mxu0 %v11874_v32 }
 0x989   : > { %7194 = vmatpush1.bf16.xpose.msra.mxu1 %v11877_v33  ;;  %7152 = vmatprep.subr.bf16.mxu0 %v11882_v40  ;;  %v11922_v40 = vld [vmem:[%s12130_s26 + $0x7c0] ss:$16 sps:$4 sm:$0xff]  }
 0x98a   : > { %7195 = vmatprep.subr.bf16.mxu1 %v11885_v41 }
 0x990   : > { %7153 = vmatpush1.bf16.xpose.msra.mxu0 %v11880_v42  ;;  %v11925_v42 = vld [vmem:[%s12130_s26 + $0x7c8] ss:$16 sps:$4 sm:$0xff]  }
 0x991   : > { %7196 = vmatpush1.bf16.xpose.msra.mxu1 %v11883_v18  ;;  %7154 = vmatprep.subr.bf16.mxu0 %v11888_v49  ;;  %v11930_v18 = vld [vmem:[%s12130_s26 + $0x7a4] ss:$16 sps:$4 sm:$0xff]  }
 0x992   : > { %7197 = vmatprep.subr.bf16.mxu1 %v11891_v14  ;;  %v11933_v14 = vld [vmem:[%s12130_s26 + $0x7ac] ss:$16 sps:$4 sm:$0xff]  }
 0x998   : > { %7155 = vmatpush1.bf16.xpose.msra.mxu0 %v11886_v15 }
 0x999   : > { %7198 = vmatpush1.bf16.xpose.msra.mxu1 %v11889_v38  ;;  %7156 = vmatprep.subr.bf16.mxu0 %v11894_v47 }
 0x99a   : > { %7199 = vmatprep.subr.bf16.mxu1 %v11897_v29  ;;  %v11928_v29 = vld [vmem:[%s12130_s26 + $0x7a0] ss:$16 sps:$4 sm:$0xff]  }
 0x9a0   : > { %7157 = vmatpush1.bf16.xpose.msra.mxu0 %v11892_v50  ;;  %v11931_v50 = vld [vmem:[%s12130_s26 + $0x7a8] ss:$16 sps:$4 sm:$0xff]  }
 0x9a1   : > { %7200 = vmatpush1.bf16.xpose.msra.mxu1 %v11895_v4  ;;  %7158 = vmatprep.subr.bf16.mxu0 %v11900_v39  ;;  %v11936_v4 = vld [vmem:[%s12130_s26 + $0x784] ss:$16 sps:$4 sm:$0xff]   ;;  %v11939_v39 = vld [vmem:[%s12130_s26 + $0x78c] ss:$16 sps:$4 sm:$0xff]  }
 0x9a2   : > { %7201 = vmatprep.subr.bf16.mxu1 %v11903_v51  ;;  %v11934_v51 = vld [vmem:[%s12130_s26 + $0x780] ss:$16 sps:$4 sm:$0xff]  }
 0x9a8   : > { %7159 = vmatpush1.bf16.xpose.msra.mxu0 %v11898_v7  ;;  %v11937_v7 = vld [vmem:[%s12130_s26 + $0x788] ss:$16 sps:$4 sm:$0xff]  }
 0x9a9   : > { %7202 = vmatpush1.bf16.xpose.msra.mxu1 %v11901_v60  ;;  %7160 = vmatprep.subr.bf16.mxu0 %v11906_v23  ;;  %v11942_v60 = vld [vmem:[%s12130_s26 + $0x764] ss:$16 sps:$4 sm:$0xff]   ;;  %v11945_v23 = vld [vmem:[%s12130_s26 + $0x76c] ss:$16 sps:$4 sm:$0xff]  }
 0x9aa   : > { %7203 = vmatprep.subr.bf16.mxu1 %v11909_v55  ;;  %v11940_v55 = vld [vmem:[%s12130_s26 + $0x760] ss:$16 sps:$4 sm:$0xff]  }
 0x9b0   : > { %7161 = vmatpush1.bf16.xpose.msra.mxu0 %v11904_v62  ;;  %v11943_v62 = vld [vmem:[%s12130_s26 + $0x768] ss:$16 sps:$4 sm:$0xff]  }
 0x9b1   : > { %7204 = vmatpush1.bf16.xpose.msra.mxu1 %v11907_v46  ;;  %7162 = vmatprep.subr.bf16.mxu0 %v11912_v63  ;;  %v11948_v46 = vld [vmem:[%s12130_s26 + $0x744] ss:$16 sps:$4 sm:$0xff]   ;;  %v11951_v63 = vld [vmem:[%s12130_s26 + $0x74c] ss:$16 sps:$4 sm:$0xff]  }
 0x9b2   : > { %7205 = vmatprep.subr.bf16.mxu1 %v11915_v10  ;;  %v11946_v10 = vld [vmem:[%s12130_s26 + $0x740] ss:$16 sps:$4 sm:$0xff]  }
 0x9b8   : > { %7163 = vmatpush1.bf16.xpose.msra.mxu0 %v11910_v45  ;;  %v11949_v45 = vld [vmem:[%s12130_s26 + $0x748] ss:$16 sps:$4 sm:$0xff]  }
 0x9b9   : > { %7206 = vmatpush1.bf16.xpose.msra.mxu1 %v11913_v48  ;;  %7164 = vmatprep.subr.bf16.mxu0 %v11918_v37  ;;  %v11954_v48 = vld [vmem:[%s12130_s26 + $0x724] ss:$16 sps:$4 sm:$0xff]   ;;  %v11957_v37 = vld [vmem:[%s12130_s26 + $0x72c] ss:$16 sps:$4 sm:$0xff]  }
 0x9ba   : > { %7207 = vmatprep.subr.bf16.mxu1 %v11921_v59  ;;  %v11952_v59 = vld [vmem:[%s12130_s26 + $0x720] ss:$16 sps:$4 sm:$0xff]  }
 0x9bf   : > { %v7010_v26 = vpop.f32.mrf.mxu0  ;;  %v7053_v44 = vpop.f32.mrf.mxu1 }
 0x9c0   : > { %v7011_v9 = vadd.f32 %v7010_v26, %v5581_v22  ;;  %7165 = vmatpush2.bf16.xpose.msra.mxu0 %v11916_v16  ;;  %v11960_v16 = vld [vmem:[%s12130_s26 + $0x704] ss:$16 sps:$4 sm:$0xff]   ;;  %v5585_v26 = vrot.slane %v13149_v5, %v12640_v2 }
 0x9c1   : > { %7208 = vmatpush2.bf16.xpose.msra.mxu1 %v11919_v35  ;;  %v13237_v58 = vpop.f32.mrf.mxu0  ;;  %v13239_v20 = vpop.f32.mrf.mxu1  ;;  %7166 = vmatprep.subr.bf16.mxu0 %v11924_v52  ;;  %v11963_v35 = vld [vmem:[%s12130_s26 + $0x70c] ss:$16 sps:$4 sm:$0xff]   ;;  %v5577_v52 = vrot.slane %v13149_v5, %v12637_v1 }
 0x9c2   : > { %v7054_v21 = vadd.f32 %v7053_v44, %v7011_v9  ;;  %7209 = vmatprep.subr.bf16.mxu1 %v11927_v28  ;;  %v7306_v44 = vld [vmem:[%s12140_s27 + $0x1c0] sm:$0xff] }
 0x9c3   : > { %v7014_v32 = vpop.f32.mrf.mxu0  ;;  %v7057_v41 = vpop.f32.mrf.mxu1  ;;  %v7310_v9 = vld [vmem:[%s12140_s27 + $0x1e0] sm:$0xff] }
 0x9c4   : > { %v7015_v33 = vadd.f32 %v7014_v32, %v5581_v22  ;;  %v7236_v15 = vmax.f32 %v7054_v21, 0.0  ;;  %v11955_v22 = vld [vmem:[%s12130_s26 + $0x728] ss:$16 sps:$4 sm:$0xff]   ;;  %v6931_v21 = vadd.f32 %v13230_v3, %v5577_v52 }
 0x9c5   : > { %v7016_v28 = vpop.f32.mrf.mxu0  ;;  %v7307_v32 = vld [vmem:[%s12140_s27 + $0x1c8] sm:$0xff] }
 0x9c6   : > { %v7058_v49 = vadd.f32 %v7057_v41, %v7015_v33  ;;  %v7311_v33 = vld [vmem:[%s12140_s27 + $0x1e8] sm:$0xff]  ;;  %v11958_v41 = vld [vmem:[%s12130_s26 + $0x700] ss:$16 sps:$4 sm:$0xff]  }
 0x9c8   : > { %v7244_v38 = vmax.f32 %v7058_v49, 0.0  ;;  %7167 = vmatpush2.bf16.xpose.msra.mxu0 %v11922_v40  ;;  %v7017_v40 = vadd.f32 %v7016_v28, %v5585_v26  ;;  %v10596_v49 = vcombine.high %v7306_v44, %v7310_v9  ;;  %v7287_v28 = vld [vmem:[%s12140_s27 + $0x128] sm:$0xff] }
 0x9c9   : > { %7210 = vmatpush2.bf16.xpose.msra.mxu1 %v11925_v42  ;;  %7168 = vmatprep.subr.bf16.mxu0 %v11930_v18  ;;  %v6927_v42 = vadd.f32 %v13157_v30, %v5577_v52  ;;  %v11961_v18 = vld [vmem:[%s12130_s26 + $0x708] ss:$16 sps:$4 sm:$0xff]  }
 0x9ca   : > { %v13245_v47 = vpack.c.bf16 %v7244_v38, %v7236_v15  ;;  %7211 = vmatprep.subr.bf16.mxu1 %v11933_v14  ;;  %v7013_v14 = vadd.f32 %v13237_v58, %v5585_v26  ;;  %v10598_v15 = vcombine.high %v7307_v32, %v7311_v33  ;;  %v6974_v38 = vadd.f32 %v13232_v17, %v6931_v21  ;;  %v7283_v52 = vld [vmem:[%s12140_s27 + $0x108] sm:$0xff] }
 0x9cb   : > { %v6970_v3 = vadd.f32 %v13159_v31, %v6927_v42  ;;  %v10595_v58 = vcombine.low %v7306_v44, %v7310_v9  ;;  %v10574_v21 = vcombine.high %v7283_v52, %v7287_v28 }
 0x9cc   : > { %v7243_v30 = vmax.f32 %v6974_v38, 0.0  ;;  %v7270_v38 = vld [vmem:[%s12140_s27 + $0xa0] sm:$0xff] }
 0x9cd   : > { %v7235_v17 = vmax.f32 %v6970_v3, 0.0 }
 0x9d0   : > { %7169 = vmatpush2.bf16.xpose.msra.mxu0 %v11928_v29  ;;  %v7059_v29 = vpop.f32.mrf.mxu1 }
 0x9d1   : > { %7212 = vmatpush2.bf16.xpose.msra.mxu1 %v11931_v50  ;;  %7170 = vmatprep.subr.bf16.mxu0 %v11936_v4  ;;  %v7060_v50 = vadd.f32 %v7059_v29, %v7017_v40  ;;  %v7056_v4 = vadd.f32 %v13239_v20, %v7013_v14  ;;  %v7275_v40 = vld [vmem:[%s12140_s27 + $0xc8] sm:$0xff] }
 0x9d2   : > { %7213 = vmatprep.subr.bf16.mxu1 %v11939_v39  ;;  %v7298_v39 = vld [vmem:[%s12140_s27 + $0x180] sm:$0xff]  ;;  %v7267_v29 = vld [vmem:[%s12140_s27 + $0x88] sm:$0xff] }
 0x9d8   : > { %7171 = vmatpush2.bf16.xpose.msra.mxu0 %v11934_v51  ;;  %v7302_v51 = vld [vmem:[%s12140_s27 + $0x1a0] sm:$0xff] }
 0x9d9   : > { %7214 = vmatpush2.bf16.xpose.msra.mxu1 %v11937_v7  ;;  %7172 = vmatprep.subr.bf16.mxu0 %v11942_v60  ;;  %v7245_v7 = vmax.f32 %v7060_v50, 0.0  ;;  %v7299_v60 = vld [vmem:[%s12140_s27 + $0x188] sm:$0xff]  ;;  %v10588_v31 = vcombine.high %v7298_v39, %v7302_v51 }
 0x9da   : > { %7215 = vmatprep.subr.bf16.mxu1 %v11945_v23  ;;  %v7303_v23 = vld [vmem:[%s12140_s27 + $0x1a8] sm:$0xff] }
 0x9db   : > { %v10590_v20 = vcombine.high %v7299_v60, %v7303_v23  ;;  %v7271_v50 = vld [vmem:[%s12140_s27 + $0xa8] sm:$0xff] }
 0x9e0   : > { %7173 = vmatpush2.bf16.xpose.msra.mxu0 %v11940_v55  ;;  %v10597_v55 = vcombine.low %v7307_v32, %v7311_v33  ;;  %v7274_v32 = vld [vmem:[%s12140_s27 + $0xc0] sm:$0xff] }
 0x9e1   : > { %7216 = vmatpush2.bf16.xpose.msra.mxu1 %v11943_v62  ;;  %7174 = vmatprep.subr.bf16.mxu0 %v11948_v46  ;;  %v7237_v62 = vmax.f32 %v7056_v4, 0.0  ;;  %v13287_v46 = vpack.c.bf16 %v7243_v30, %v7235_v17  ;;  %v7278_v33 = vld [vmem:[%s12140_s27 + $0xe0] sm:$0xff]  ;;  %v10557_v17 = vcombine.low %v7267_v29, %v7271_v50 }
 0x9e2   : > { %7217 = vmatprep.subr.bf16.mxu1 %v11951_v63  ;;  %v10563_v3 = vcombine.low %v7274_v32, %v7278_v33 }
 0x9e3   : > { %v13290_v63 = vpack.c.bf16 %v7245_v7, %v7237_v62  ;;  %v7262_v7 = vld [vmem:[%s12140_s27 + $0x60] sm:$0xff] }
 0x9e8   : > { %7175 = vmatpush2.bf16.xpose.msra.mxu0 %v11946_v10  ;;  %v7290_v10 = vld [vmem:[%s12140_s27 + $0x140] sm:$0xff] }
 0x9e9   : > { %7218 = vmatpush2.bf16.xpose.msra.mxu1 %v11949_v45  ;;  %7176 = vmatprep.subr.bf16.mxu0 %v11954_v48  ;;  %v7294_v45 = vld [vmem:[%s12140_s27 + $0x160] sm:$0xff]  ;;  %v7295_v48 = vld [vmem:[%s12140_s27 + $0x168] sm:$0xff] }
 0x9ea   : > { %7219 = vmatprep.subr.bf16.mxu1 %v11957_v37  ;;  %v10587_v37 = vcombine.low %v7298_v39, %v7302_v51  ;;  %v10579_v26 = vcombine.low %v7290_v10, %v7294_v45  ;;  %v10558_v39 = vcombine.high %v7267_v29, %v7271_v50  ;;  %v7258_v51 = vld [vmem:[%s12140_s27 + $0x40] sm:$0xff] }
 0x9f0   : > { %7177 = vmatpush2.bf16.xpose.msra.mxu0 %v11952_v59  ;;  %v10589_v59 = vcombine.low %v7299_v60, %v7303_v23  ;;  %v7263_v60 = vld [vmem:[%s12140_s27 + $0x68] sm:$0xff] }
 0x9f1   : > { %7220 = vmatpush2.bf16.xpose.msra.mxu1 %v11955_v22  ;;  %7178 = vmatprep.subr.bf16.mxu0 %v11960_v16  ;;  %v10580_v22 = vcombine.high %v7290_v10, %v7294_v45  ;;  %v7282_v16 = vld [vmem:[%s12140_s27 + $0x100] sm:$0xff]  ;;  %v7251_v10 = vld [vmem:[%s12140_s27 + $0x8] sm:$0xff] }
 0x9f2   : > { %7221 = vmatprep.subr.bf16.mxu1 %v11963_v35  ;;  %v7286_v35 = vld [vmem:[%s12140_s27 + $0x120] sm:$0xff]  ;;  %v7255_v45 = vld [vmem:[%s12140_s27 + $0x28] sm:$0xff] }
 0x9f3   : > { %v10572_v9 = vcombine.high %v7282_v16, %v7286_v35  ;;  %v10571_v42 = vcombine.low %v7282_v16, %v7286_v35  ;;  %v7371_v16 = vld [vmem:[%s12140_s27 + $0x3c8] sm:$0xff] }
 0x9f4   : > { %v7375_v35 = vld [vmem:[%s12140_s27 + $0x3e8] sm:$0xff] }
 0x9f8   : > { %7179 = vmatpush2.bf16.xpose.msra.mxu0 %v11958_v41  ;;  %v7279_v41 = vld [vmem:[%s12140_s27 + $0xe8] sm:$0xff] }
 0x9f9   : > { %7222 = vmatpush2.bf16.xpose.msra.mxu1 %v11961_v18  ;;  %8816 = vmatprep.subr.bf16.mxu0 %v10596_v49  ;;  %v10573_v18 = vcombine.low %v7283_v52, %v7287_v28  ;;  %v10564_v49 = vcombine.high %v7274_v32, %v7278_v33  ;;  %v10566_v14 = vcombine.high %v7275_v40, %v7279_v41  ;;  %v7363_v32 = vld [vmem:[%s12140_s27 + $0x388] sm:$0xff] }
 0x9fa   : > { %8859 = vmatprep.subr.bf16.mxu1 %v10598_v15  ;;  %v7266_v15 = vld [vmem:[%s12140_s27 + $0x80] sm:$0xff]  ;;  %v10565_v4 = vcombine.low %v7275_v40, %v7279_v41  ;;  %v10541_v28 = vcombine.low %v7251_v10, %v7255_v45  ;;  %v7367_v33 = vld [vmem:[%s12140_s27 + $0x3a8] sm:$0xff]  ;;  %v5589_v40 = vrot.slane %v13149_v5, %v1114_v8 }
 0x9fb   : > { %v10556_v30 = vcombine.high %v7266_v15, %v7270_v38  ;;  %v10555_v23 = vcombine.low %v7266_v15, %v7270_v38  ;;  %v7354_v8 = vld [vmem:[%s12140_s27 + $0x340] sm:$0xff] }
 0x9ff   : > { %7181 = vmatmul.mubr.bf16.vlgmr.msra.gmra.mxu0 %v13038_v36  ;;  %v7291_v36 = vld [vmem:[%s12140_s27 + $0x148] sm:$0xff] }
 0xa00   : > { %7224 = vmatmul.mubr.bf16.vlgmr.msra.gmra.mxu1 %v13042_v27  ;;  %8817 = vmatpush1.bf16.xpose.msra.mxu0 %v10595_v58  ;;  %v10582_v27 = vcombine.high %v7291_v36, %v7295_v48  ;;  %v10581_v44 = vcombine.low %v7291_v36, %v7295_v48  ;;  %v7259_v58 = vld [vmem:[%s12140_s27 + $0x48] sm:$0xff]  ;;  %v10547_v36 = vcombine.low %v7258_v51, %v7262_v7 }
 0xa01   : > { %8848 = vmatprep.mubr.bf16.mxu0 %v13287_v46  ;;  %8860 = vmatpush1.bf16.xpose.msra.mxu1 %v10597_v55  ;;  %v10548_v55 = vcombine.high %v7258_v51, %v7262_v7  ;;  %v10550_v62 = vcombine.high %v7259_v58, %v7263_v60  ;;  %v10549_v48 = vcombine.low %v7259_v58, %v7263_v60  ;;  %v7359_v51 = vld [vmem:[%s12140_s27 + $0x368] sm:$0xff] }
 0xa02   : > { %8891 = vmatprep.mubr.bf16.mxu1 %v13290_v63  ;;  %8818 = vmatprep.subr.bf16.mxu0 %v10588_v31  ;;  %v7250_v31 = vld [vmem:[%s12140_s27] sm:$0xff] }
 0xa03   : > { %8861 = vmatprep.subr.bf16.mxu1 %v10590_v20  ;;  %v7254_v20 = vld [vmem:[%s12140_s27 + $0x20] sm:$0xff] }
 0xa04   : > { %v10539_v52 = vcombine.low %v7250_v31, %v7254_v20 }
 0xa08   : > { %8819 = vmatpush1.bf16.xpose.msra.mxu0 %v10587_v37  ;;  %v10540_v37 = vcombine.high %v7250_v31, %v7254_v20 }
 0xa09   : > { %8862 = vmatpush1.bf16.xpose.msra.mxu1 %v10589_v59  ;;  %8820 = vmatprep.subr.bf16.mxu0 %v10580_v22  ;;  %v10542_v59 = vcombine.high %v7251_v10, %v7255_v45  ;;  %v7370_v22 = vld [vmem:[%s12140_s27 + $0x3c0] sm:$0xff] }
 0xa0a   : > { %8863 = vmatprep.subr.bf16.mxu1 %v10582_v27  ;;  %v7374_v27 = vld [vmem:[%s12140_s27 + $0x3e0] sm:$0xff] }
 0xa0b   : > { %v10659_v41 = vcombine.low %v7370_v22, %v7374_v27  ;;  %v7346_v45 = vld [vmem:[%s12140_s27 + $0x300] sm:$0xff] }
 0xa10   : > { %8821 = vmatpush1.bf16.xpose.msra.mxu0 %v10579_v26  ;;  %v10660_v26 = vcombine.high %v7370_v22, %v7374_v27 }
 0xa11   : > { %8864 = vmatpush1.bf16.xpose.msra.mxu1 %v10581_v44  ;;  %8822 = vmatprep.subr.bf16.mxu0 %v10572_v9  ;;  %v10662_v44 = vcombine.high %v7371_v16, %v7375_v35  ;;  %v7362_v9 = vld [vmem:[%s12140_s27 + $0x380] sm:$0xff] }
 0xa12   : > { %8865 = vmatprep.subr.bf16.mxu1 %v10574_v21  ;;  %v7366_v21 = vld [vmem:[%s12140_s27 + $0x3a0] sm:$0xff] }
 0xa13   : > { %v10651_v58 = vcombine.low %v7362_v9, %v7366_v21 }
 0xa18   : > { %8823 = vmatpush1.bf16.xpose.msra.mxu0 %v10571_v42  ;;  %v10661_v42 = vcombine.low %v7371_v16, %v7375_v35  ;;  %v7338_v35 = vld [vmem:[%s12140_s27 + $0x2c0] sm:$0xff] }
 0xa19   : > { %8866 = vmatpush1.bf16.xpose.msra.mxu1 %v10573_v18  ;;  %8824 = vmatprep.subr.bf16.mxu0 %v10564_v49  ;;  %v10652_v18 = vcombine.high %v7362_v9, %v7366_v21  ;;  %v10654_v49 = vcombine.high %v7363_v32, %v7367_v33 }
 0xa1a   : > { %8867 = vmatprep.subr.bf16.mxu1 %v10566_v14 }
 0xa20   : > { %8825 = vmatpush1.bf16.xpose.msra.mxu0 %v10563_v3 }
 0xa21   : > { %8868 = vmatpush1.bf16.xpose.msra.mxu1 %v10565_v4  ;;  %8826 = vmatprep.subr.bf16.mxu0 %v10556_v30  ;;  %v7358_v4 = vld [vmem:[%s12140_s27 + $0x360] sm:$0xff] }
 0xa22   : > { %8869 = vmatprep.subr.bf16.mxu1 %v10558_v39  ;;  %v7355_v39 = vld [vmem:[%s12140_s27 + $0x348] sm:$0xff] }
 0xa23   : > { %v10645_v22 = vcombine.low %v7355_v39, %v7359_v51 }
 0xa28   : > { %8827 = vmatpush1.bf16.xpose.msra.mxu0 %v10555_v23  ;;  %v10653_v23 = vcombine.low %v7363_v32, %v7367_v33  ;;  %v7330_v33 = vld [vmem:[%s12140_s27 + $0x280] sm:$0xff] }
 0xa29   : > { %8870 = vmatpush1.bf16.xpose.msra.mxu1 %v10557_v17  ;;  %8828 = vmatprep.subr.bf16.mxu0 %v10548_v55  ;;  %v10644_v17 = vcombine.high %v7354_v8, %v7358_v4 }
 0xa2a   : > { %8871 = vmatprep.subr.bf16.mxu1 %v10550_v62  ;;  %v10646_v62 = vcombine.high %v7355_v39, %v7359_v51 }
 0xa30   : > { %8829 = vmatpush1.bf16.xpose.msra.mxu0 %v10547_v36  ;;  %v7350_v36 = vld [vmem:[%s12140_s27 + $0x320] sm:$0xff] }
 0xa31   : > { %8872 = vmatpush1.bf16.xpose.msra.mxu1 %v10549_v48  ;;  %8830 = vmatprep.subr.bf16.mxu0 %v10540_v37  ;;  %v7347_v48 = vld [vmem:[%s12140_s27 + $0x308] sm:$0xff]  ;;  %v10636_v27 = vcombine.high %v7346_v45, %v7350_v36 }
 0xa32   : > { %8873 = vmatprep.subr.bf16.mxu1 %v10542_v59  ;;  %v7351_v37 = vld [vmem:[%s12140_s27 + $0x328] sm:$0xff]  ;;  %v10643_v59 = vcombine.low %v7354_v8, %v7358_v4 }
 0xa33   : > { %v10638_v16 = vcombine.high %v7347_v48, %v7351_v37  ;;  %v10637_v9 = vcombine.low %v7347_v48, %v7351_v37  ;;  %v7323_v8 = vld [vmem:[%s12140_s27 + $0x248] sm:$0xff]  ;;  %v7308_v48 = vld [vmem:[%s12140_s27 + $0x1d0] sm:$0xff] }
 0xa34   : > { %v7327_v4 = vld [vmem:[%s12140_s27 + $0x268] sm:$0xff]  ;;  %v7312_v37 = vld [vmem:[%s12140_s27 + $0x1f0] sm:$0xff] }
 0xa38   : > { %8831 = vmatpush1.bf16.xpose.msra.mxu0 %v10539_v52  ;;  %v7342_v52 = vld [vmem:[%s12140_s27 + $0x2e0] sm:$0xff] }
 0xa39   : > { %8874 = vmatpush1.bf16.xpose.msra.mxu1 %v10541_v28  ;;  %8832 = vmatprep.subr.bf16.mxu0 %v10660_v26  ;;  %v7339_v28 = vld [vmem:[%s12140_s27 + $0x2c8] sm:$0xff]  ;;  %v10628_v21 = vcombine.high %v7338_v35, %v7342_v52 }
 0xa3a   : > { %8875 = vmatprep.subr.bf16.mxu1 %v10662_v44  ;;  %v7343_v26 = vld [vmem:[%s12140_s27 + $0x2e8] sm:$0xff]  ;;  %v10635_v44 = vcombine.low %v7346_v45, %v7350_v36  ;;  %v5593_v36 = vrot.slane %v13149_v5, %v1118_v56 }
 0xa3b   : > { %v10630_v32 = vcombine.high %v7339_v28, %v7343_v26 }
 0xa3f   : > { %v7096_v14 = vpop.f32.mrf.mxu0 }
 0xa40   : > { %v7097_v15 = vadd.f32 %v7096_v14, %v5589_v40  ;;  %v7139_v38 = vpop.f32.mrf.mxu1  ;;  %8833 = vmatpush2.bf16.xpose.msra.mxu0 %v10659_v41  ;;  %v7331_v41 = vld [vmem:[%s12140_s27 + $0x288] sm:$0xff] }
 0xa41   : > { %8876 = vmatpush2.bf16.xpose.msra.mxu1 %v10661_v42  ;;  %v13330_v29 = vpop.f32.mrf.mxu0  ;;  %8834 = vmatprep.subr.bf16.mxu0 %v10652_v18  ;;  %v7335_v42 = vld [vmem:[%s12140_s27 + $0x2a8] sm:$0xff]  ;;  %v10627_v18 = vcombine.low %v7338_v35, %v7342_v52 }
 0xa42   : > { %v7140_v50 = vadd.f32 %v7139_v38, %v7097_v15  ;;  %v13332_v3 = vpop.f32.mrf.mxu1  ;;  %8877 = vmatprep.subr.bf16.mxu1 %v10654_v49  ;;  %v10629_v49 = vcombine.low %v7339_v28, %v7343_v26  ;;  %v10622_v15 = vcombine.high %v7331_v41, %v7335_v42  ;;  %v7322_v38 = vld [vmem:[%s12140_s27 + $0x240] sm:$0xff]  ;;  %v10621_v39 = vcombine.low %v7331_v41, %v7335_v42 }
 0xa43   : > { %v7100_v30 = vpop.f32.mrf.mxu0  ;;  %v7099_v35 = vadd.f32 %v13330_v29, %v5593_v36  ;;  %v10600_v28 = vcombine.high %v7308_v48, %v7312_v37  ;;  %v10599_v29 = vcombine.low %v7308_v48, %v7312_v37 }
 0xa44   : > { %v7101_v7 = vadd.f32 %v7100_v30, %v5589_v40  ;;  %v7143_v60 = vpop.f32.mrf.mxu1  ;;  %v7238_v31 = vmax.f32 %v7140_v50, 0.0  ;;  %v7334_v40 = vld [vmem:[%s12140_s27 + $0x2a0] sm:$0xff] }
 0xa45   : > { %v10620_v14 = vcombine.high %v7330_v33, %v7334_v40  ;;  %v7326_v50 = vld [vmem:[%s12140_s27 + $0x260] sm:$0xff]  ;;  %v10619_v30 = vcombine.low %v7330_v33, %v7334_v40  ;;  %v7102_v45 = vpop.f32.mrf.mxu0  ;;  %v7142_v5 = vadd.f32 %v13332_v3, %v7099_v35  ;;  %v7301_v33 = vld [vmem:[%s12140_s27 + $0x198] sm:$0xff]  ;;  %v7292_v3 = vld [vmem:[%s12140_s27 + $0x150] sm:$0xff] }
 0xa46   : > { %v7144_v55 = vadd.f32 %v7143_v60, %v7101_v7  ;;  %v10612_v51 = vcombine.high %v7322_v38, %v7326_v50  ;;  %v10614_v7 = vcombine.high %v7323_v8, %v7327_v4  ;;  %v7318_v60 = vld [vmem:[%s12140_s27 + $0x220] sm:$0xff]  ;;  %v7145_v26 = vpop.f32.mrf.mxu1  ;;  %v7305_v40 = vld [vmem:[%s12140_s27 + $0x1b8] sm:$0xff] }
 0xa47   : > { %v7239_v41 = vmax.f32 %v7142_v5, 0.0  ;;  %v7269_v35 = vld [vmem:[%s12140_s27 + $0x98] sm:$0xff]  ;;  %v7260_v5 = vld [vmem:[%s12140_s27 + $0x50] sm:$0xff] }
 0xa48   : > { %v7246_v20 = vmax.f32 %v7144_v55, 0.0  ;;  %8835 = vmatpush2.bf16.xpose.msra.mxu0 %v10651_v58  ;;  %v7314_v58 = vld [vmem:[%s12140_s27 + $0x200] sm:$0xff]  ;;  %v10611_v55 = vcombine.low %v7322_v38, %v7326_v50  ;;  %v7293_v38 = vld [vmem:[%s12140_s27 + $0x158] sm:$0xff] }
 0xa49   : > { %8878 = vmatpush2.bf16.xpose.msra.mxu1 %v10653_v23  ;;  %8836 = vmatprep.subr.bf16.mxu0 %v10644_v17  ;;  %v7315_v23 = vld [vmem:[%s12140_s27 + $0x208] sm:$0xff]  ;;  %v7297_v50 = vld [vmem:[%s12140_s27 + $0x178] sm:$0xff] }
 0xa4a   : > { %v13338_v10 = vpack.c.bf16 %v7246_v20, %v7238_v31  ;;  %8879 = vmatprep.subr.bf16.mxu1 %v10646_v62  ;;  %v7319_v17 = vld [vmem:[%s12140_s27 + $0x228] sm:$0xff]  ;;  %v10613_v62 = vcombine.low %v7323_v8, %v7327_v4  ;;  %v10604_v31 = vcombine.high %v7314_v58, %v7318_v60  ;;  %v10593_v4 = vcombine.low %v7301_v33, %v7305_v40 }
 0xa4b   : > { %v10606_v20 = vcombine.high %v7315_v23, %v7319_v17  ;;  %v10605_v52 = vcombine.low %v7315_v23, %v7319_v17  ;;  %v10585_v17 = vcombine.low %v7293_v38, %v7297_v50 }
 0xa50   : > { %8837 = vmatpush2.bf16.xpose.msra.mxu0 %v10643_v59  ;;  %v7103_v59 = vadd.f32 %v7102_v45, %v5593_v36  ;;  %v7277_v45 = vld [vmem:[%s12140_s27 + $0xd8] sm:$0xff] }
 0xa51   : > { %8880 = vmatpush2.bf16.xpose.msra.mxu1 %v10645_v22  ;;  %8838 = vmatprep.subr.bf16.mxu0 %v10636_v27  ;;  %v7309_v22 = vld [vmem:[%s12140_s27 + $0x1d8] sm:$0xff] }
 0xa52   : > { %8881 = vmatprep.subr.bf16.mxu1 %v10638_v16  ;;  %v7313_v27 = vld [vmem:[%s12140_s27 + $0x1f8] sm:$0xff]  ;;  %v10603_v16 = vcombine.low %v7314_v58, %v7318_v60  ;;  %v7146_v56 = vadd.f32 %v7145_v26, %v7103_v59 }
 0xa53   : > { %v10601_v42 = vcombine.low %v7309_v22, %v7313_v27  ;;  %v7285_v58 = vld [vmem:[%s12140_s27 + $0x118] sm:$0xff] }
 0xa54   : > { %v7289_v60 = vld [vmem:[%s12140_s27 + $0x138] sm:$0xff] }
 0xa55   : > { %v7281_v36 = vld [vmem:[%s12140_s27 + $0xf8] sm:$0xff]  ;;  %v10577_v37 = vcombine.low %v7285_v58, %v7289_v60 }
 0xa56   : > { %v10569_v26 = vcombine.low %v7277_v45, %v7281_v36 }
 0xa58   : > { %8839 = vmatpush2.bf16.xpose.msra.mxu0 %v10635_v44  ;;  %v10602_v44 = vcombine.high %v7309_v22, %v7313_v27  ;;  %v10570_v22 = vcombine.high %v7277_v45, %v7281_v36  ;;  %v7268_v27 = vld [vmem:[%s12140_s27 + $0x90] sm:$0xff] }
 0xa59   : > { %8882 = vmatpush2.bf16.xpose.msra.mxu1 %v10637_v9  ;;  %8840 = vmatprep.subr.bf16.mxu0 %v10628_v21  ;;  %v7300_v9 = vld [vmem:[%s12140_s27 + $0x190] sm:$0xff]  ;;  %v7247_v21 = vmax.f32 %v7146_v56, 0.0 }
 0xa5a   : > { %8883 = vmatprep.subr.bf16.mxu1 %v10630_v32  ;;  %v7304_v32 = vld [vmem:[%s12140_s27 + $0x1b0] sm:$0xff] }
 0xa5b   : > { %v10591_v8 = vcombine.low %v7300_v9, %v7304_v32 }
 0xa60   : > { %8841 = vmatpush2.bf16.xpose.msra.mxu0 %v10627_v18  ;;  %v10592_v18 = vcombine.high %v7300_v9, %v7304_v32  ;;  %v7264_v9 = vld [vmem:[%s12140_s27 + $0x70] sm:$0xff]  ;;  %v7265_v32 = vld [vmem:[%s12140_s27 + $0x78] sm:$0xff] }
 0xa61   : > { %8884 = vmatpush2.bf16.xpose.msra.mxu1 %v10629_v49  ;;  %8842 = vmatprep.subr.bf16.mxu0 %v10620_v14  ;;  %v10594_v49 = vcombine.high %v7301_v33, %v7305_v40  ;;  %v13373_v14 = vpack.c.bf16 %v7247_v21, %v7239_v41  ;;  %v7261_v21 = vld [vmem:[%s12140_s27 + $0x58] sm:$0xff] }
 0xa62   : > { %8885 = vmatprep.subr.bf16.mxu1 %v10622_v15  ;;  %v7296_v15 = vld [vmem:[%s12140_s27 + $0x170] sm:$0xff]  ;;  %v10554_v41 = vcombine.high %v7261_v21, %v7265_v32 }
 0xa63   : > { %v10583_v23 = vcombine.low %v7292_v3, %v7296_v15 }
 0xa68   : > { %8843 = vmatpush2.bf16.xpose.msra.mxu0 %v10619_v30  ;;  %v10584_v30 = vcombine.high %v7292_v3, %v7296_v15  ;;  %v7257_v3 = vld [vmem:[%s12140_s27 + $0x38] sm:$0xff]  ;;  %v10551_v15 = vcombine.low %v7260_v5, %v7264_v9 }
 0xa69   : > { %8886 = vmatpush2.bf16.xpose.msra.mxu1 %v10621_v39  ;;  %8844 = vmatprep.subr.bf16.mxu0 %v10612_v51  ;;  %v10586_v39 = vcombine.high %v7293_v38, %v7297_v50  ;;  %v7284_v51 = vld [vmem:[%s12140_s27 + $0x110] sm:$0xff]  ;;  %v10553_v38 = vcombine.low %v7261_v21, %v7265_v32 }
 0xa6a   : > { %8887 = vmatprep.subr.bf16.mxu1 %v10614_v7  ;;  %v7288_v7 = vld [vmem:[%s12140_s27 + $0x130] sm:$0xff] }
 0xa6b   : > { %v10575_v48 = vcombine.low %v7284_v51, %v7288_v7 }
 0xa70   : > { %8845 = vmatpush2.bf16.xpose.msra.mxu0 %v10611_v55  ;;  %v10576_v55 = vcombine.high %v7284_v51, %v7288_v7  ;;  %v7377_v51 = vld [vmem:[%s12140_s27 + $0x3f8] sm:$0xff] }
 0xa71   : > { %8888 = vmatpush2.bf16.xpose.msra.mxu1 %v10613_v62  ;;  %8846 = vmatprep.subr.bf16.mxu0 %v10604_v31  ;;  %v10578_v62 = vcombine.high %v7285_v58, %v7289_v60  ;;  %v7276_v31 = vld [vmem:[%s12140_s27 + $0xd0] sm:$0xff] }
 0xa72   : > { %8889 = vmatprep.subr.bf16.mxu1 %v10606_v20  ;;  %v7280_v20 = vld [vmem:[%s12140_s27 + $0xf0] sm:$0xff] }
 0xa73   : > { %v10568_v59 = vcombine.high %v7276_v31, %v7280_v20 }
 0xa78   : > { %8847 = vmatpush2.bf16.xpose.msra.mxu0 %v10603_v16  ;;  %v7272_v16 = vld [vmem:[%s12140_s27 + $0xb0] sm:$0xff] }
 0xa79   : > { %8890 = vmatpush2.bf16.xpose.msra.mxu1 %v10605_v52  ;;  %8902 = vmatprep.subr.bf16.mxu0 %v10600_v28  ;;  %v7273_v52 = vld [vmem:[%s12140_s27 + $0xb8] sm:$0xff]  ;;  %v10567_v28 = vcombine.low %v7276_v31, %v7280_v20  ;;  %v10559_v33 = vcombine.low %v7268_v27, %v7272_v16 }
 0xa7a   : > { %8945 = vmatprep.subr.bf16.mxu1 %v10602_v44  ;;  %v10560_v44 = vcombine.high %v7268_v27, %v7272_v16  ;;  %v10562_v56 = vcombine.high %v7269_v35, %v7273_v52  ;;  %v10561_v40 = vcombine.low %v7269_v35, %v7273_v52  ;;  %v7369_v31 = vld [vmem:[%s12140_s27 + $0x3b8] sm:$0xff] }
 0xa7f   : > { %8849 = vmatmul.mubr.bf16.vlgmr.msra.gmra.mxu0 %v13165_v0 }
 0xa80   : > { %8892 = vmatmul.mubr.bf16.vlgmr.msra.gmra.mxu1 %v13245_v47  ;;  %8903 = vmatpush1.bf16.xpose.msra.mxu0 %v10599_v29  ;;  %v10552_v29 = vcombine.high %v7260_v5, %v7264_v9  ;;  %v7361_v5 = vld [vmem:[%s12140_s27 + $0x378] sm:$0xff] }
 0xa81   : > { %8934 = vmatprep.mubr.bf16.mxu0 %v13373_v14  ;;  %8946 = vmatpush1.bf16.xpose.msra.mxu1 %v10601_v42  ;;  %v7252_v42 = vld [vmem:[%s12140_s27 + $0x10] sm:$0xff] }
 0xa82   : > { %8904 = vmatprep.subr.bf16.mxu0 %v10592_v18  ;;  %8947 = vmatprep.subr.bf16.mxu1 %v10594_v49  ;;  %v7256_v18 = vld [vmem:[%s12140_s27 + $0x30] sm:$0xff]  ;;  %v7253_v49 = vld [vmem:[%s12140_s27 + $0x18] sm:$0xff] }
 0xa83   : > { %v10544_v50 = vcombine.high %v7252_v42, %v7256_v18  ;;  %v10543_v7 = vcombine.low %v7252_v42, %v7256_v18  ;;  %v10545_v58 = vcombine.low %v7253_v49, %v7257_v3 }
 0xa88   : > { %8905 = vmatpush1.bf16.xpose.msra.mxu0 %v10591_v8  ;;  %v10546_v8 = vcombine.high %v7253_v49, %v7257_v3 }
 0xa89   : > { %8948 = vmatpush1.bf16.xpose.msra.mxu1 %v10593_v4  ;;  %8906 = vmatprep.subr.bf16.mxu0 %v10584_v30  ;;  %v7372_v4 = vld [vmem:[%s12140_s27 + $0x3d0] sm:$0xff] }
 0xa8a   : > { %8949 = vmatprep.subr.bf16.mxu1 %v10586_v39  ;;  %v7376_v30 = vld [vmem:[%s12140_s27 + $0x3f0] sm:$0xff]  ;;  %v7373_v39 = vld [vmem:[%s12140_s27 + $0x3d8] sm:$0xff] }
 0xa8b   : > { %v10664_v60 = vcombine.high %v7372_v4, %v7376_v30  ;;  %v10663_v20 = vcombine.low %v7372_v4, %v7376_v30  ;;  %v10665_v45 = vcombine.low %v7373_v39, %v7377_v51 }
 0xa90   : > { %8907 = vmatpush1.bf16.xpose.msra.mxu0 %v10583_v23  ;;  %v10666_v23 = vcombine.high %v7373_v39, %v7377_v51 }
 0xa91   : > { %8950 = vmatpush1.bf16.xpose.msra.mxu1 %v10585_v17  ;;  %8908 = vmatprep.subr.bf16.mxu0 %v10576_v55  ;;  %v7364_v17 = vld [vmem:[%s12140_s27 + $0x390] sm:$0xff] }
 0xa92   : > { %8951 = vmatprep.subr.bf16.mxu1 %v10578_v62  ;;  %v7368_v55 = vld [vmem:[%s12140_s27 + $0x3b0] sm:$0xff]  ;;  %v7365_v62 = vld [vmem:[%s12140_s27 + $0x398] sm:$0xff] }
 0xa93   : > { %v10656_v36 = vcombine.high %v7364_v17, %v7368_v55  ;;  %v10657_v32 = vcombine.low %v7365_v62, %v7369_v31 }
 0xa98   : > { %8909 = vmatpush1.bf16.xpose.msra.mxu0 %v10575_v48  ;;  %v13411_v48 = vld [vmem:[%s12135_s22] sm:$0xff] }
 0xa99   : > { %8952 = vmatpush1.bf16.xpose.msra.mxu1 %v10577_v37  ;;  %8910 = vmatprep.subr.bf16.mxu0 %v10568_v59  ;;  %v5601_v37 = vrot.slane %v13411_v48, %v1126_v57  ;;  %v10658_v59 = vcombine.high %v7365_v62, %v7369_v31  ;;  %v10655_v57 = vcombine.low %v7364_v17, %v7368_v55  ;;  %v7345_v17 = vld [vmem:[%s12140_s27 + $0x2f8] sm:$0xff] }
 0xa9a   : > { %8953 = vmatprep.subr.bf16.mxu1 %v10570_v22 }
 0xaa0   : > { %8911 = vmatpush1.bf16.xpose.msra.mxu0 %v10567_v28  ;;  %v7356_v28 = vld [vmem:[%s12140_s27 + $0x350] sm:$0xff] }
 0xaa1   : > { %8954 = vmatpush1.bf16.xpose.msra.mxu1 %v10569_v26  ;;  %8912 = vmatprep.subr.bf16.mxu0 %v10560_v44  ;;  %v7360_v26 = vld [vmem:[%s12140_s27 + $0x370] sm:$0xff] }
 0xaa2   : > { %8955 = vmatprep.subr.bf16.mxu1 %v10562_v56  ;;  %v7357_v56 = vld [vmem:[%s12140_s27 + $0x358] sm:$0xff]  ;;  %v10647_v30 = vcombine.low %v7356_v28, %v7360_v26 }
 0xaa3   : > { %v10649_v39 = vcombine.low %v7357_v56, %v7361_v5 }
 0xaa8   : > { %8913 = vmatpush1.bf16.xpose.msra.mxu0 %v10559_v33  ;;  %v10648_v33 = vcombine.high %v7356_v28, %v7360_v26  ;;  %v7324_v26 = vld [vmem:[%s12140_s27 + $0x250] sm:$0xff] }
 0xaa9   : > { %8956 = vmatpush1.bf16.xpose.msra.mxu1 %v10561_v40  ;;  %8914 = vmatprep.subr.bf16.mxu0 %v10552_v29 }
 0xaaa   : > { %8957 = vmatprep.subr.bf16.mxu1 %v10554_v41  ;;  %v10650_v41 = vcombine.high %v7357_v56, %v7361_v5  ;;  %v7328_v56 = vld [vmem:[%s12140_s27 + $0x270] sm:$0xff]  ;;  %v7325_v5 = vld [vmem:[%s12140_s27 + $0x258] sm:$0xff] }
 0xab0   : > { %8915 = vmatpush1.bf16.xpose.msra.mxu0 %v10551_v15  ;;  %v7348_v15 = vld [vmem:[%s12140_s27 + $0x310] sm:$0xff] }
 0xab1   : > { %8958 = vmatpush1.bf16.xpose.msra.mxu1 %v10553_v38  ;;  %8916 = vmatprep.subr.bf16.mxu0 %v10544_v50  ;;  %v7352_v38 = vld [vmem:[%s12140_s27 + $0x330] sm:$0xff]  ;;  %v7349_v50 = vld [vmem:[%s12140_s27 + $0x318] sm:$0xff] }
 0xab2   : > { %8959 = vmatprep.subr.bf16.mxu1 %v10546_v8  ;;  %v7353_v8 = vld [vmem:[%s12140_s27 + $0x338] sm:$0xff]  ;;  %v10640_v51 = vcombine.high %v7348_v15, %v7352_v38  ;;  %v10639_v55 = vcombine.low %v7348_v15, %v7352_v38 }
 0xab3   : > { %v10641_v62 = vcombine.low %v7349_v50, %v7353_v8 }
 0xab8   : > { %8917 = vmatpush1.bf16.xpose.msra.mxu0 %v10543_v7  ;;  %v10642_v7 = vcombine.high %v7349_v50, %v7353_v8  ;;  %v5597_v50 = vrot.slane %v13411_v48, %v1122_v13 }
 0xab9   : > { %8960 = vmatpush1.bf16.xpose.msra.mxu1 %v10545_v58  ;;  %8918 = vmatprep.subr.bf16.mxu0 %v10664_v60  ;;  %v7340_v58 = vld [vmem:[%s12140_s27 + $0x2d0] sm:$0xff] }
 0xaba   : > { %8961 = vmatprep.subr.bf16.mxu1 %v10666_v23  ;;  %v7344_v60 = vld [vmem:[%s12140_s27 + $0x2f0] sm:$0xff]  ;;  %v7341_v23 = vld [vmem:[%s12140_s27 + $0x2d8] sm:$0xff] }
 0xabb   : > { %v10632_v31 = vcombine.high %v7340_v58, %v7344_v60 }
 0xabf   : > { %v13416_v22 = vpop.f32.mrf.mxu0 }
 0xac0   : > { %v13418_v27 = vpop.f32.mrf.mxu1  ;;  %8919 = vmatpush2.bf16.xpose.msra.mxu0 %v10663_v20  ;;  %v10634_v20 = vcombine.high %v7341_v23, %v7345_v17 }
 0xac1   : > { %8962 = vmatpush2.bf16.xpose.msra.mxu1 %v10665_v45  ;;  %v7184_v16 = vpop.f32.mrf.mxu0  ;;  %8920 = vmatprep.subr.bf16.mxu0 %v10656_v36  ;;  %v7332_v45 = vld [vmem:[%s12140_s27 + $0x290] sm:$0xff] }
 0xac2   : > { %v7185_v35 = vadd.f32 %v7184_v16, %v5601_v37  ;;  %v7227_v52 = vpop.f32.mrf.mxu1  ;;  %8963 = vmatprep.subr.bf16.mxu1 %v10658_v59  ;;  %v7336_v36 = vld [vmem:[%s12140_s27 + $0x2b0] sm:$0xff]  ;;  %v7337_v59 = vld [vmem:[%s12140_s27 + $0x2b8] sm:$0xff]  ;;  %v10631_v16 = vcombine.low %v7340_v58, %v7344_v60  ;;  %v7183_v58 = vadd.f32 %v13416_v22, %v5597_v50 }
 0xac3   : > { %v13422_v44 = vpop.f32.mrf.mxu0 }
 0xac4   : > { %v13426_v9 = vpop.f32.mrf.mxu1  ;;  %v7228_v40 = vadd.f32 %v7227_v52, %v7185_v35  ;;  %v10633_v35 = vcombine.low %v7341_v23, %v7345_v17  ;;  %v10624_v52 = vcombine.high %v7332_v45, %v7336_v36  ;;  %v7187_v8 = vadd.f32 %v13422_v44, %v5597_v50 }
 0xac5   : > { %v7188_v21 = vpop.f32.mrf.mxu0  ;;  %v7226_v17 = vadd.f32 %v13418_v27, %v7183_v58 }
 0xac6   : > { %v7189_v29 = vadd.f32 %v7188_v21, %v5601_v37  ;;  %v7231_v42 = vpop.f32.mrf.mxu1  ;;  %v7241_v49 = vmax.f32 %v7228_v40, 0.0  ;;  %v7333_v37 = vld [vmem:[%s12140_s27 + $0x298] sm:$0xff]  ;;  %v10623_v21 = vcombine.low %v7332_v45, %v7336_v36  ;;  %v7230_v13 = vadd.f32 %v13426_v9, %v7187_v8  ;;  %v7431_v45 = vld [vmem:[%s12140_s27 + $0x5a8] sm:$0xff]  ;;  %v7394_v8 = vld [vmem:[%s12140_s27 + $0x480] sm:$0xff] }
 0xac7   : > { %v10626_v28 = vcombine.high %v7333_v37, %v7337_v59 }
 0xac8   : > { %v7232_v18 = vadd.f32 %v7231_v42, %v7189_v29  ;;  %8921 = vmatpush2.bf16.xpose.msra.mxu0 %v10655_v57  ;;  %v7329_v57 = vld [vmem:[%s12140_s27 + $0x278] sm:$0xff]  ;;  %v7316_v29 = vld [vmem:[%s12140_s27 + $0x210] sm:$0xff]  ;;  %v7248_v44 = vmax.f32 %v7230_v13, 0.0  ;;  %v7390_v13 = vld [vmem:[%s12140_s27 + $0x460] sm:$0xff] }
 0xac9   : > { %8964 = vmatpush2.bf16.xpose.msra.mxu1 %v10657_v32  ;;  %8922 = vmatprep.subr.bf16.mxu0 %v10648_v33  ;;  %v10625_v32 = vcombine.low %v7333_v37, %v7337_v59  ;;  %v10616_v33 = vcombine.high %v7324_v26, %v7328_v56  ;;  %v10618_v40 = vcombine.high %v7325_v5, %v7329_v57  ;;  %v7317_v42 = vld [vmem:[%s12140_s27 + $0x218] sm:$0xff]  ;;  %v7418_v59 = vld [vmem:[%s12140_s27 + $0x540] sm:$0xff] }
 0xaca   : > { %v7249_v3 = vmax.f32 %v7232_v18, 0.0  ;;  %8965 = vmatprep.subr.bf16.mxu1 %v10650_v41  ;;  %v7320_v41 = vld [vmem:[%s12140_s27 + $0x230] sm:$0xff]  ;;  %v7321_v18 = vld [vmem:[%s12140_s27 + $0x238] sm:$0xff] }
 0xacb   : > { %v10608_v15 = vcombine.high %v7316_v29, %v7320_v41  ;;  %v10610_v38 = vcombine.high %v7317_v42, %v7321_v18  ;;  %v10607_v60 = vcombine.low %v7316_v29, %v7320_v41  ;;  %v10609_v54 = vcombine.low %v7317_v42, %v7321_v18  ;;  %v7402_v41 = vld [vmem:[%s12140_s27 + $0x4c0] sm:$0xff]  ;;  %v7403_v18 = vld [vmem:[%s12140_s27 + $0x4c8] sm:$0xff] }
 0xacc   : > { %v13432_v4 = vpack.c.bf16 %v7249_v3, %v7241_v49  ;;  %v10615_v49 = vcombine.low %v7324_v26, %v7328_v56  ;;  %v10617_v3 = vcombine.low %v7325_v5, %v7329_v57  ;;  %v7411_v57 = vld [vmem:[%s12140_s27 + $0x508] sm:$0xff]  ;;  %v7406_v42 = vld [vmem:[%s12140_s27 + $0x4e0] sm:$0xff] }
 0xace   : > { %8977 = vmatprep.mubr.bf16.mxu1 %v13432_v4 }
 0xad0   : > { %8923 = vmatpush2.bf16.xpose.msra.mxu0 %v10647_v30  ;;  %v7434_v30 = vld [vmem:[%s12140_s27 + $0x5c0] sm:$0xff] }
 0xad1   : > { %8966 = vmatpush2.bf16.xpose.msra.mxu1 %v10649_v39  ;;  %8924 = vmatprep.subr.bf16.mxu0 %v10640_v51  ;;  %v7438_v39 = vld [vmem:[%s12140_s27 + $0x5e0] sm:$0xff]  ;;  %v7435_v51 = vld [vmem:[%s12140_s27 + $0x5c8] sm:$0xff] }
 0xad2   : > { %8967 = vmatprep.subr.bf16.mxu1 %v10642_v7  ;;  %v7439_v7 = vld [vmem:[%s12140_s27 + $0x5e8] sm:$0xff]  ;;  %v10724_v23 = vcombine.high %v7434_v30, %v7438_v39  ;;  %v10723_v22 = vcombine.low %v7434_v30, %v7438_v39  ;;  %v7398_v30 = vld [vmem:[%s12140_s27 + $0x4a0] sm:$0xff] }
 0xad3   : > { %v10726_v48 = vcombine.high %v7435_v51, %v7439_v7  ;;  %v10725_v36 = vcombine.low %v7435_v51, %v7439_v7  ;;  %v7395_v39 = vld [vmem:[%s12140_s27 + $0x488] sm:$0xff]  ;;  %v10691_v7 = vcombine.low %v7402_v41, %v7406_v42 }
 0xad4   : > { %v7399_v51 = vld [vmem:[%s12140_s27 + $0x4a8] sm:$0xff] }
 0xad8   : > { %8925 = vmatpush2.bf16.xpose.msra.mxu0 %v10639_v55  ;;  %v7426_v55 = vld [vmem:[%s12140_s27 + $0x580] sm:$0xff] }
 0xad9   : > { %8968 = vmatpush2.bf16.xpose.msra.mxu1 %v10641_v62  ;;  %8926 = vmatprep.subr.bf16.mxu0 %v10632_v31  ;;  %v7430_v62 = vld [vmem:[%s12140_s27 + $0x5a0] sm:$0xff]  ;;  %v7240_v31 = vmax.f32 %v7226_v17, 0.0  ;;  %v7391_v17 = vld [vmem:[%s12140_s27 + $0x468] sm:$0xff] }
 0xada   : > { %8969 = vmatprep.subr.bf16.mxu1 %v10634_v20  ;;  %v7427_v20 = vld [vmem:[%s12140_s27 + $0x588] sm:$0xff]  ;;  %v10716_v37 = vcombine.high %v7426_v55, %v7430_v62 }
 0xadb   : > { %v13466_v9 = vpack.c.bf16 %v7248_v44, %v7240_v31  ;;  %v10718_v27 = vcombine.high %v7427_v20, %v7431_v45  ;;  %v10717_v26 = vcombine.low %v7427_v20, %v7431_v45  ;;  %v10683_v44 = vcombine.low %v7394_v8, %v7398_v30  ;;  %v7382_v20 = vld [vmem:[%s12140_s27 + $0x420] sm:$0xff]  ;;  %v7379_v45 = vld [vmem:[%s12140_s27 + $0x408] sm:$0xff] }
 0xae0   : > { %8927 = vmatpush2.bf16.xpose.msra.mxu0 %v10631_v16  ;;  %v7422_v16 = vld [vmem:[%s12140_s27 + $0x560] sm:$0xff] }
 0xae1   : > { %8970 = vmatpush2.bf16.xpose.msra.mxu1 %v10633_v35  ;;  %8928 = vmatprep.subr.bf16.mxu0 %v10624_v52  ;;  %v7419_v35 = vld [vmem:[%s12140_s27 + $0x548] sm:$0xff]  ;;  %v10708_v56 = vcombine.high %v7418_v59, %v7422_v16 }
 0xae2   : > { %8971 = vmatprep.subr.bf16.mxu1 %v10626_v28  ;;  %v7423_v52 = vld [vmem:[%s12140_s27 + $0x568] sm:$0xff]  ;;  %v10715_v28 = vcombine.low %v7426_v55, %v7430_v62  ;;  %v10685_v55 = vcombine.low %v7395_v39, %v7399_v51 }
 0xae3   : > { %v10710_v5 = vcombine.high %v7419_v35, %v7423_v52 }
 0xae8   : > { %8929 = vmatpush2.bf16.xpose.msra.mxu0 %v10623_v21  ;;  %v7415_v21 = vld [vmem:[%s12140_s27 + $0x528] sm:$0xff] }
 0xae9   : > { %8972 = vmatpush2.bf16.xpose.msra.mxu1 %v10625_v32  ;;  %8930 = vmatprep.subr.bf16.mxu0 %v10616_v33  ;;  %v10707_v32 = vcombine.low %v7418_v59, %v7422_v16  ;;  %v10709_v33 = vcombine.low %v7419_v35, %v7423_v52  ;;  %v10702_v29 = vcombine.high %v7411_v57, %v7415_v21  ;;  %v7498_v35 = vld [vmem:[%s12140_s27 + $0x7c0] sm:$0xff] }
 0xaea   : > { %8973 = vmatprep.subr.bf16.mxu1 %v10618_v40  ;;  %v7502_v52 = vld [vmem:[%s12140_s27 + $0x7e0] sm:$0xff] }
 0xaf0   : > { %8931 = vmatpush2.bf16.xpose.msra.mxu0 %v10615_v49  ;;  %v7407_v49 = vld [vmem:[%s12140_s27 + $0x4e8] sm:$0xff] }
 0xaf1   : > { %8974 = vmatpush2.bf16.xpose.msra.mxu1 %v10617_v3  ;;  %8932 = vmatprep.subr.bf16.mxu0 %v10608_v15  ;;  %v10701_v15 = vcombine.low %v7411_v57, %v7415_v21  ;;  %v10694_v50 = vcombine.high %v7403_v18, %v7407_v49  ;;  %v10693_v58 = vcombine.low %v7403_v18, %v7407_v49  ;;  %v7490_v57 = vld [vmem:[%s12140_s27 + $0x780] sm:$0xff] }
 0xaf2   : > { %8975 = vmatprep.subr.bf16.mxu1 %v10610_v38  ;;  %v10692_v38 = vcombine.high %v7402_v41, %v7406_v42  ;;  %v7494_v21 = vld [vmem:[%s12140_s27 + $0x7a0] sm:$0xff] }
 0xaf3   : > { %v10780_v41 = vcombine.high %v7490_v57, %v7494_v21  ;;  %v7482_v18 = vld [vmem:[%s12140_s27 + $0x740] sm:$0xff] }
 0xaf4   : > { %v7486_v49 = vld [vmem:[%s12140_s27 + $0x760] sm:$0xff] }
 0xaf8   : > { %8933 = vmatpush2.bf16.xpose.msra.mxu0 %v10607_v60  ;;  %v10684_v60 = vcombine.high %v7394_v8, %v7398_v30  ;;  %v10772_v8 = vcombine.high %v7482_v18, %v7486_v49 }
 0xaf9   : > { %8976 = vmatpush2.bf16.xpose.msra.mxu1 %v10609_v54  ;;  %8988 = vmatprep.subr.bf16.mxu0 %v10724_v23  ;;  %v10686_v54 = vcombine.high %v7395_v39, %v7399_v51  ;;  %v7386_v23 = vld [vmem:[%s12140_s27 + $0x440] sm:$0xff] }
 0xafa   : > { %9031 = vmatprep.subr.bf16.mxu1 %v10726_v48  ;;  %v7387_v48 = vld [vmem:[%s12140_s27 + $0x448] sm:$0xff]  ;;  %v10676_v62 = vcombine.high %v7386_v23, %v7390_v13  ;;  %v7474_v39 = vld [vmem:[%s12140_s27 + $0x700] sm:$0xff] }
 0xafb   : > { %v10678_v31 = vcombine.high %v7387_v48, %v7391_v17  ;;  %v7478_v51 = vld [vmem:[%s12140_s27 + $0x720] sm:$0xff] }
 0xaff   : > { %8935 = vmatmul.mubr.bf16.vlgmr.msra.gmra.mxu0 %v13338_v10 }
 0xb00   : > { %8978 = vmatmul.mubr.bf16.vlgmr.msra.gmra.mxu1 %v13466_v9  ;;  %8989 = vmatpush1.bf16.xpose.msra.mxu0 %v10723_v22  ;;  %v7378_v22 = vld [vmem:[%s12140_s27 + $0x400] sm:$0xff] }
 0xb01   : > { %9020 = vmatprep.mubr.bf16.mxu0 %v13287_v46  ;;  %9032 = vmatpush1.bf16.xpose.msra.mxu1 %v10725_v36  ;;  %v7410_v46 = vld [vmem:[%s12140_s27 + $0x500] sm:$0xff]  ;;  %v7383_v36 = vld [vmem:[%s12140_s27 + $0x428] sm:$0xff]  ;;  %v10668_v59 = vcombine.high %v7378_v22, %v7382_v20 }
 0xb02   : > { %9063 = vmatprep.mubr.bf16.mxu1 %v13290_v63  ;;  %8990 = vmatprep.subr.bf16.mxu0 %v10716_v37  ;;  %v7414_v63 = vld [vmem:[%s12140_s27 + $0x520] sm:$0xff]  ;;  %v10675_v37 = vcombine.low %v7386_v23, %v7390_v13  ;;  %v10670_v16 = vcombine.high %v7379_v45, %v7383_v36  ;;  %v10764_v23 = vcombine.high %v7474_v39, %v7478_v51 }
 0xb03   : > { %9033 = vmatprep.subr.bf16.mxu1 %v10718_v27  ;;  %v10700_v40 = vcombine.high %v7410_v46, %v7414_v63  ;;  %v10699_v3 = vcombine.low %v7410_v46, %v7414_v63  ;;  %v10677_v27 = vcombine.low %v7387_v48, %v7391_v17  ;;  %v10788_v46 = vcombine.high %v7498_v35, %v7502_v52  ;;  %v7466_v48 = vld [vmem:[%s12140_s27 + $0x6c0] sm:$0xff] }
 0xb04   : > { %v7470_v17 = vld [vmem:[%s12140_s27 + $0x6e0] sm:$0xff] }
 0xb08   : > { %8991 = vmatpush1.bf16.xpose.msra.mxu0 %v10715_v28  ;;  %v7499_v28 = vld [vmem:[%s12140_s27 + $0x7c8] sm:$0xff] }
 0xb09   : > { %9034 = vmatpush1.bf16.xpose.msra.mxu1 %v10717_v26  ;;  %8992 = vmatprep.subr.bf16.mxu0 %v10708_v56  ;;  %v7503_v26 = vld [vmem:[%s12140_s27 + $0x7e8] sm:$0xff]  ;;  %v10667_v56 = vcombine.low %v7378_v22, %v7382_v20  ;;  %v10756_v22 = vcombine.high %v7466_v48, %v7470_v17 }
 0xb0a   : > { %9035 = vmatprep.subr.bf16.mxu1 %v10710_v5  ;;  %v10669_v5 = vcombine.low %v7379_v45, %v7383_v36  ;;  %v10790_v63 = vcombine.high %v7499_v28, %v7503_v26  ;;  %v7458_v45 = vld [vmem:[%s12140_s27 + $0x680] sm:$0xff] }
 0xb0b   : > { %v7462_v36 = vld [vmem:[%s12140_s27 + $0x6a0] sm:$0xff] }
 0xb10   : > { %8993 = vmatpush1.bf16.xpose.msra.mxu0 %v10707_v32  ;;  %v7491_v32 = vld [vmem:[%s12140_s27 + $0x788] sm:$0xff] }
 0xb11   : > { %9036 = vmatpush1.bf16.xpose.msra.mxu1 %v10709_v33  ;;  %8994 = vmatprep.subr.bf16.mxu0 %v10700_v40  ;;  %v7495_v33 = vld [vmem:[%s12140_s27 + $0x7a8] sm:$0xff]  ;;  %v10787_v40 = vcombine.low %v7498_v35, %v7502_v52  ;;  %v10748_v35 = vcombine.high %v7458_v45, %v7462_v36 }
 0xb12   : > { %9037 = vmatprep.subr.bf16.mxu1 %v10702_v29  ;;  %v10789_v29 = vcombine.low %v7499_v28, %v7503_v26  ;;  %v10782_v42 = vcombine.high %v7491_v32, %v7495_v33  ;;  %v7450_v28 = vld [vmem:[%s12140_s27 + $0x640] sm:$0xff] }
 0xb13   : > { %v7454_v26 = vld [vmem:[%s12140_s27 + $0x660] sm:$0xff] }
 0xb18   : > { %8995 = vmatpush1.bf16.xpose.msra.mxu0 %v10699_v3  ;;  %v7483_v3 = vld [vmem:[%s12140_s27 + $0x748] sm:$0xff] }
 0xb19   : > { %9038 = vmatpush1.bf16.xpose.msra.mxu1 %v10701_v15  ;;  %8996 = vmatprep.subr.bf16.mxu0 %v10692_v38  ;;  %v7487_v15 = vld [vmem:[%s12140_s27 + $0x768] sm:$0xff]  ;;  %v10779_v38 = vcombine.low %v7490_v57, %v7494_v21  ;;  %v10740_v57 = vcombine.high %v7450_v28, %v7454_v26 }
 0xb1a   : > { %9039 = vmatprep.subr.bf16.mxu1 %v10694_v50  ;;  %v10781_v50 = vcombine.low %v7491_v32, %v7495_v33  ;;  %v10774_v30 = vcombine.high %v7483_v3, %v7487_v15  ;;  %v7442_v32 = vld [vmem:[%s12140_s27 + $0x600] sm:$0xff] }
 0xb1b   : > { %v7446_v33 = vld [vmem:[%s12140_s27 + $0x620] sm:$0xff] }
 0xb20   : > { %8997 = vmatpush1.bf16.xpose.msra.mxu0 %v10691_v7  ;;  %v7475_v7 = vld [vmem:[%s12140_s27 + $0x708] sm:$0xff] }
 0xb21   : > { %9040 = vmatpush1.bf16.xpose.msra.mxu1 %v10693_v58  ;;  %8998 = vmatprep.subr.bf16.mxu0 %v10684_v60  ;;  %v7479_v58 = vld [vmem:[%s12140_s27 + $0x728] sm:$0xff]  ;;  %v10771_v60 = vcombine.low %v7482_v18, %v7486_v49  ;;  %v10732_v18 = vcombine.high %v7442_v32, %v7446_v33 }
 0xb22   : > { %9041 = vmatprep.subr.bf16.mxu1 %v10686_v54  ;;  %v10773_v54 = vcombine.low %v7483_v3, %v7487_v15  ;;  %v10766_v13 = vcombine.high %v7475_v7, %v7479_v58  ;;  %v7436_v3 = vld [vmem:[%s12140_s27 + $0x5d0] sm:$0xff] }
 0xb23   : > { %v7440_v15 = vld [vmem:[%s12140_s27 + $0x5f0] sm:$0xff] }
 0xb28   : > { %8999 = vmatpush1.bf16.xpose.msra.mxu0 %v10683_v44  ;;  %v7467_v44 = vld [vmem:[%s12140_s27 + $0x6c8] sm:$0xff] }
 0xb29   : > { %9042 = vmatpush1.bf16.xpose.msra.mxu1 %v10685_v55  ;;  %9000 = vmatprep.subr.bf16.mxu0 %v10676_v62  ;;  %v7471_v55 = vld [vmem:[%s12140_s27 + $0x6e8] sm:$0xff]  ;;  %v10763_v62 = vcombine.low %v7474_v39, %v7478_v51  ;;  %v10728_v39 = vcombine.high %v7436_v3, %v7440_v15 }
 0xb2a   : > { %9043 = vmatprep.subr.bf16.mxu1 %v10678_v31  ;;  %v10765_v31 = vcombine.low %v7475_v7, %v7479_v58  ;;  %v10758_v20 = vcombine.high %v7467_v44, %v7471_v55  ;;  %v7428_v7 = vld [vmem:[%s12140_s27 + $0x590] sm:$0xff] }
 0xb2b   : > { %v7432_v58 = vld [vmem:[%s12140_s27 + $0x5b0] sm:$0xff] }
 0xb30   : > { %9001 = vmatpush1.bf16.xpose.msra.mxu0 %v10675_v37  ;;  %v7459_v37 = vld [vmem:[%s12140_s27 + $0x688] sm:$0xff] }
 0xb31   : > { %9044 = vmatpush1.bf16.xpose.msra.mxu1 %v10677_v27  ;;  %9002 = vmatprep.subr.bf16.mxu0 %v10668_v59  ;;  %v7463_v27 = vld [vmem:[%s12140_s27 + $0x6a8] sm:$0xff]  ;;  %v10755_v59 = vcombine.low %v7466_v48, %v7470_v17  ;;  %v10720_v48 = vcombine.high %v7428_v7, %v7432_v58 }
 0xb32   : > { %9045 = vmatprep.subr.bf16.mxu1 %v10670_v16  ;;  %v10757_v16 = vcombine.low %v7467_v44, %v7471_v55  ;;  %v10750_v52 = vcombine.high %v7459_v37, %v7463_v27  ;;  %v7420_v44 = vld [vmem:[%s12140_s27 + $0x550] sm:$0xff] }
 0xb33   : > { %v7424_v55 = vld [vmem:[%s12140_s27 + $0x570] sm:$0xff] }
 0xb38   : > { %9003 = vmatpush1.bf16.xpose.msra.mxu0 %v10667_v56  ;;  %v7451_v56 = vld [vmem:[%s12140_s27 + $0x648] sm:$0xff] }
 0xb39   : > { %9046 = vmatpush1.bf16.xpose.msra.mxu1 %v10669_v5  ;;  %9004 = vmatprep.subr.bf16.mxu0 %v10788_v46  ;;  %v7455_v5 = vld [vmem:[%s12140_s27 + $0x668] sm:$0xff]  ;;  %v10747_v46 = vcombine.low %v7458_v45, %v7462_v36  ;;  %v7413_v45 = vld [vmem:[%s12140_s27 + $0x518] sm:$0xff] }
 0xb3a   : > { %9047 = vmatprep.subr.bf16.mxu1 %v10790_v63  ;;  %v10749_v63 = vcombine.low %v7459_v37, %v7463_v27  ;;  %v10742_v21 = vcombine.high %v7451_v56, %v7455_v5  ;;  %v7417_v36 = vld [vmem:[%s12140_s27 + $0x538] sm:$0xff]  ;;  %v10711_v37 = vcombine.low %v7420_v44, %v7424_v55 }
 0xb40   : > { %9005 = vmatpush2.bf16.xpose.msra.mxu0 %v10787_v40  ;;  %v7443_v40 = vld [vmem:[%s12140_s27 + $0x608] sm:$0xff] }
 0xb41   : > { %9048 = vmatpush2.bf16.xpose.msra.mxu1 %v10789_v29  ;;  %9006 = vmatprep.subr.bf16.mxu0 %v10780_v41  ;;  %v7447_v29 = vld [vmem:[%s12140_s27 + $0x628] sm:$0xff]  ;;  %v10739_v41 = vcombine.low %v7450_v28, %v7454_v26  ;;  %v7405_v28 = vld [vmem:[%s12140_s27 + $0x4d8] sm:$0xff] }
 0xb42   : > { %9049 = vmatprep.subr.bf16.mxu1 %v10782_v42  ;;  %v10741_v42 = vcombine.low %v7451_v56, %v7455_v5  ;;  %v10734_v49 = vcombine.high %v7443_v40, %v7447_v29  ;;  %v7409_v26 = vld [vmem:[%s12140_s27 + $0x4f8] sm:$0xff]  ;;  %v10705_v5 = vcombine.low %v7413_v45, %v7417_v36 }
 0xb48   : > { %9007 = vmatpush2.bf16.xpose.msra.mxu0 %v10779_v38  ;;  %v7437_v38 = vld [vmem:[%s12140_s27 + $0x5d8] sm:$0xff] }
 0xb49   : > { %9050 = vmatpush2.bf16.xpose.msra.mxu1 %v10781_v50  ;;  %9008 = vmatprep.subr.bf16.mxu0 %v10772_v8  ;;  %v7441_v50 = vld [vmem:[%s12140_s27 + $0x5f8] sm:$0xff]  ;;  %v10731_v8 = vcombine.low %v7442_v32, %v7446_v33 }
 0xb4a   : > { %9051 = vmatprep.subr.bf16.mxu1 %v10774_v30  ;;  %v10733_v30 = vcombine.low %v7443_v40, %v7447_v29  ;;  %v10730_v51 = vcombine.high %v7437_v38, %v7441_v50  ;;  %v7397_v32 = vld [vmem:[%s12140_s27 + $0x498] sm:$0xff]  ;;  %v10697_v29 = vcombine.low %v7405_v28, %v7409_v26 }
 0xb4b   : > { %v7401_v33 = vld [vmem:[%s12140_s27 + $0x4b8] sm:$0xff] }
 0xb50   : > { %9009 = vmatpush2.bf16.xpose.msra.mxu0 %v10771_v60  ;;  %v10727_v60 = vcombine.low %v7436_v3, %v7440_v15  ;;  %v7389_v3 = vld [vmem:[%s12140_s27 + $0x458] sm:$0xff] }
 0xb51   : > { %9052 = vmatpush2.bf16.xpose.msra.mxu1 %v10773_v54  ;;  %9010 = vmatprep.subr.bf16.mxu0 %v10764_v23  ;;  %v7429_v54 = vld [vmem:[%s12140_s27 + $0x598] sm:$0xff] }
 0xb52   : > { %9053 = vmatprep.subr.bf16.mxu1 %v10766_v13  ;;  %v7433_v23 = vld [vmem:[%s12140_s27 + $0x5b8] sm:$0xff]  ;;  %v10729_v13 = vcombine.low %v7437_v38, %v7441_v50  ;;  %v10689_v50 = vcombine.low %v7397_v32, %v7401_v33 }
 0xb53   : > { %v10722_v17 = vcombine.high %v7429_v54, %v7433_v23  ;;  %v7393_v15 = vld [vmem:[%s12140_s27 + $0x478] sm:$0xff] }
 0xb58   : > { %9011 = vmatpush2.bf16.xpose.msra.mxu0 %v10763_v62  ;;  %v7421_v62 = vld [vmem:[%s12140_s27 + $0x558] sm:$0xff] }
 0xb59   : > { %9054 = vmatpush2.bf16.xpose.msra.mxu1 %v10765_v31  ;;  %9012 = vmatprep.subr.bf16.mxu0 %v10756_v22  ;;  %v7425_v31 = vld [vmem:[%s12140_s27 + $0x578] sm:$0xff]  ;;  %v10721_v22 = vcombine.low %v7429_v54, %v7433_v23  ;;  %v10681_v54 = vcombine.low %v7389_v3, %v7393_v15 }
 0xb5a   : > { %9055 = vmatprep.subr.bf16.mxu1 %v10758_v20  ;;  %v10712_v20 = vcombine.high %v7420_v44, %v7424_v55  ;;  %v10713_v27 = vcombine.low %v7421_v62, %v7425_v31  ;;  %v7501_v44 = vld [vmem:[%s12140_s27 + $0x7d8] sm:$0xff] }
 0xb5b   : > { %v7505_v55 = vld [vmem:[%s12140_s27 + $0x7f8] sm:$0xff] }
 0xb60   : > { %9013 = vmatpush2.bf16.xpose.msra.mxu0 %v10755_v59 }
 0xb61   : > { %9056 = vmatpush2.bf16.xpose.msra.mxu1 %v10757_v16  ;;  %9014 = vmatprep.subr.bf16.mxu0 %v10748_v35  ;;  %v10706_v16 = vcombine.high %v7413_v45, %v7417_v36  ;;  %v7404_v35 = vld [vmem:[%s12140_s27 + $0x4d0] sm:$0xff]  ;;  %v10793_v36 = vcombine.low %v7501_v44, %v7505_v55 }
 0xb62   : > { %9057 = vmatprep.subr.bf16.mxu1 %v10750_v52  ;;  %v7408_v52 = vld [vmem:[%s12140_s27 + $0x4f0] sm:$0xff] }
 0xb63   : > { %v10695_v40 = vcombine.low %v7404_v35, %v7408_v52 }
 0xb68   : > { %9015 = vmatpush2.bf16.xpose.msra.mxu0 %v10747_v46  ;;  %v10696_v46 = vcombine.high %v7404_v35, %v7408_v52  ;;  %v7485_v35 = vld [vmem:[%s12140_s27 + $0x758] sm:$0xff] }
 0xb69   : > { %9058 = vmatpush2.bf16.xpose.msra.mxu1 %v10749_v63  ;;  %9016 = vmatprep.subr.bf16.mxu0 %v10740_v57  ;;  %v10698_v63 = vcombine.high %v7405_v28, %v7409_v26  ;;  %v7396_v57 = vld [vmem:[%s12140_s27 + $0x490] sm:$0xff]  ;;  %v7489_v52 = vld [vmem:[%s12140_s27 + $0x778] sm:$0xff] }
 0xb6a   : > { %9059 = vmatprep.subr.bf16.mxu1 %v10742_v21  ;;  %v7400_v21 = vld [vmem:[%s12140_s27 + $0x4b0] sm:$0xff] }
 0xb6b   : > { %v10687_v38 = vcombine.low %v7396_v57, %v7400_v21 }
 0xb70   : > { %9017 = vmatpush2.bf16.xpose.msra.mxu0 %v10739_v41  ;;  %v10688_v41 = vcombine.high %v7396_v57, %v7400_v21  ;;  %v7477_v57 = vld [vmem:[%s12140_s27 + $0x718] sm:$0xff] }
 0xb71   : > { %9060 = vmatpush2.bf16.xpose.msra.mxu1 %v10741_v42  ;;  %9018 = vmatprep.subr.bf16.mxu0 %v10732_v18  ;;  %v10690_v42 = vcombine.high %v7397_v32, %v7401_v33  ;;  %v7388_v18 = vld [vmem:[%s12140_s27 + $0x450] sm:$0xff]  ;;  %v7481_v21 = vld [vmem:[%s12140_s27 + $0x738] sm:$0xff]  ;;  %v10777_v33 = vcombine.low %v7485_v35, %v7489_v52 }
 0xb72   : > { %9061 = vmatprep.subr.bf16.mxu1 %v10734_v49  ;;  %v7392_v49 = vld [vmem:[%s12140_s27 + $0x470] sm:$0xff] }
 0xb78   : > { %9019 = vmatpush2.bf16.xpose.msra.mxu0 %v10731_v8  ;;  %v10680_v8 = vcombine.high %v7388_v18, %v7392_v49 }
 0xb79   : > { %9062 = vmatpush2.bf16.xpose.msra.mxu1 %v10733_v30  ;;  %9074 = vmatprep.subr.bf16.mxu0 %v10728_v39  ;;  %v10682_v30 = vcombine.high %v7389_v3, %v7393_v15  ;;  %v7380_v39 = vld [vmem:[%s12140_s27 + $0x410] sm:$0xff]  ;;  %v10769_v15 = vcombine.low %v7477_v57, %v7481_v21 }
 0xb7a   : > { %9117 = vmatprep.subr.bf16.mxu1 %v10730_v51  ;;  %v7384_v51 = vld [vmem:[%s12140_s27 + $0x430] sm:$0xff] }
 0xb7b   : > { %v10672_v23 = vcombine.high %v7380_v39, %v7384_v51 }
 0xb7f   : > { %9021 = vmatmul.mubr.bf16.vlgmr.msra.gmra.mxu0 %v13165_v0  ;;  %v10719_v0 = vcombine.low %v7428_v7, %v7432_v58  ;;  %v7381_v7 = vld [vmem:[%s12140_s27 + $0x418] sm:$0xff] }
 0xb80   : > { %9064 = vmatmul.mubr.bf16.vlgmr.msra.gmra.mxu1 %v13245_v47  ;;  %9075 = vmatpush1.bf16.xpose.msra.mxu0 %v10727_v60  ;;  %v10714_v47 = vcombine.high %v7421_v62, %v7425_v31  ;;  %v7385_v58 = vld [vmem:[%s12140_s27 + $0x438] sm:$0xff]  ;;  %v10679_v60 = vcombine.low %v7388_v18, %v7392_v49  ;;  %v10671_v62 = vcombine.low %v7380_v39, %v7384_v51 }
 0xb81   : > { %9106 = vmatprep.mubr.bf16.mxu0 %v13373_v14  ;;  %9118 = vmatpush1.bf16.xpose.msra.mxu1 %v10729_v13  ;;  %v7412_v14 = vld [vmem:[%s12140_s27 + $0x510] sm:$0xff]  ;;  %v10674_v13 = vcombine.high %v7381_v7, %v7385_v58  ;;  %v10673_v31 = vcombine.low %v7381_v7, %v7385_v58  ;;  %v7469_v18 = vld [vmem:[%s12140_s27 + $0x6d8] sm:$0xff] }
 0xb82   : > { %9149 = vmatprep.mubr.bf16.mxu1 %v13432_v4  ;;  %9076 = vmatprep.subr.bf16.mxu0 %v10720_v48  ;;  %v7416_v4 = vld [vmem:[%s12140_s27 + $0x530] sm:$0xff]  ;;  %v7473_v49 = vld [vmem:[%s12140_s27 + $0x6f8] sm:$0xff] }
 0xb83   : > { %9119 = vmatprep.subr.bf16.mxu1 %v10722_v17  ;;  %v10704_v59 = vcombine.high %v7412_v14, %v7416_v4  ;;  %v10703_v56 = vcombine.low %v7412_v14, %v7416_v4  ;;  %v7500_v48 = vld [vmem:[%s12140_s27 + $0x7d0] sm:$0xff]  ;;  %v7493_v14 = vld [vmem:[%s12140_s27 + $0x798] sm:$0xff]  ;;  %v10761_v58 = vcombine.low %v7469_v18, %v7473_v49 }
 0xb84   : > { %v7504_v17 = vld [vmem:[%s12140_s27 + $0x7f0] sm:$0xff]  ;;  %v7497_v4 = vld [vmem:[%s12140_s27 + $0x7b8] sm:$0xff] }
 0xb85   : > { %v10791_v45 = vcombine.low %v7500_v48, %v7504_v17  ;;  %v10785_v26 = vcombine.low %v7493_v14, %v7497_v4  ;;  %v7461_v39 = vld [vmem:[%s12140_s27 + $0x698] sm:$0xff] }
 0xb86   : > { %v7465_v51 = vld [vmem:[%s12140_s27 + $0x6b8] sm:$0xff] }
 0xb88   : > { %9077 = vmatpush1.bf16.xpose.msra.mxu0 %v10719_v0  ;;  %v10792_v0 = vcombine.high %v7500_v48, %v7504_v17  ;;  %v7453_v48 = vld [vmem:[%s12140_s27 + $0x658] sm:$0xff] }
 0xb89   : > { %9120 = vmatpush1.bf16.xpose.msra.mxu1 %v10721_v22  ;;  %9078 = vmatprep.subr.bf16.mxu0 %v10712_v20  ;;  %v10794_v22 = vcombine.high %v7501_v44, %v7505_v55  ;;  %v7492_v20 = vld [vmem:[%s12140_s27 + $0x790] sm:$0xff]  ;;  %v7457_v17 = vld [vmem:[%s12140_s27 + $0x678] sm:$0xff]  ;;  %v10753_v55 = vcombine.low %v7461_v39, %v7465_v51 }
 0xb8a   : > { %9121 = vmatprep.subr.bf16.mxu1 %v10714_v47  ;;  %v7496_v47 = vld [vmem:[%s12140_s27 + $0x7b0] sm:$0xff] }
 0xb8b   : > { %v10783_v28 = vcombine.low %v7492_v20, %v7496_v47 }
 0xb90   : > { %9079 = vmatpush1.bf16.xpose.msra.mxu0 %v10711_v37  ;;  %v10784_v37 = vcombine.high %v7492_v20, %v7496_v47  ;;  %v7445_v20 = vld [vmem:[%s12140_s27 + $0x618] sm:$0xff] }
 0xb91   : > { %9122 = vmatpush1.bf16.xpose.msra.mxu1 %v10713_v27  ;;  %9080 = vmatprep.subr.bf16.mxu0 %v10704_v59  ;;  %v10786_v27 = vcombine.high %v7493_v14, %v7497_v4  ;;  %v7484_v59 = vld [vmem:[%s12140_s27 + $0x750] sm:$0xff]  ;;  %v7449_v47 = vld [vmem:[%s12140_s27 + $0x638] sm:$0xff]  ;;  %v10745_v4 = vcombine.low %v7453_v48, %v7457_v17 }
 0xb92   : > { %9123 = vmatprep.subr.bf16.mxu1 %v10706_v16  ;;  %v7488_v16 = vld [vmem:[%s12140_s27 + $0x770] sm:$0xff] }
 0xb93   : > { %v10775_v32 = vcombine.low %v7484_v59, %v7488_v16 }
 0xb98   : > { %9081 = vmatpush1.bf16.xpose.msra.mxu0 %v10703_v56  ;;  %v10776_v56 = vcombine.high %v7484_v59, %v7488_v16  ;;  %v8850_v59 = vpop.f32.mrf.mxu0  ;;  %v8893_v16 = vpop.f32.mrf.mxu1 }
 0xb99   : > { %9124 = vmatpush1.bf16.xpose.msra.mxu1 %v10705_v5  ;;  %9082 = vmatprep.subr.bf16.mxu0 %v10696_v46  ;;  %v10778_v5 = vcombine.high %v7485_v35, %v7489_v52  ;;  %v7476_v46 = vld [vmem:[%s12140_s27 + $0x710] sm:$0xff] }
 0xb9a   : > { %9125 = vmatprep.subr.bf16.mxu1 %v10698_v63  ;;  %v7480_v63 = vld [vmem:[%s12140_s27 + $0x730] sm:$0xff]  ;;  %v8852_v35 = vpop.f32.mrf.mxu0  ;;  %v8895_v52 = vpop.f32.mrf.mxu1 }
 0xb9b   : > { %v10767_v3 = vcombine.low %v7476_v46, %v7480_v63 }
 0xba0   : > { %9083 = vmatpush1.bf16.xpose.msra.mxu0 %v10695_v40  ;;  %v10768_v40 = vcombine.high %v7476_v46, %v7480_v63 }
 0xba1   : > { %9126 = vmatpush1.bf16.xpose.msra.mxu1 %v10697_v29  ;;  %9084 = vmatprep.subr.bf16.mxu0 %v10688_v41  ;;  %v10770_v29 = vcombine.high %v7477_v57, %v7481_v21  ;;  %v7468_v41 = vld [vmem:[%s12140_s27 + $0x6d0] sm:$0xff] }
 0xba2   : > { %9127 = vmatprep.subr.bf16.mxu1 %v10690_v42  ;;  %v7472_v42 = vld [vmem:[%s12140_s27 + $0x6f0] sm:$0xff] }
 0xba3   : > { %v10759_v7 = vcombine.low %v7468_v41, %v7472_v42 }
 0xba8   : > { %9085 = vmatpush1.bf16.xpose.msra.mxu0 %v10687_v38  ;;  %v10760_v38 = vcombine.high %v7468_v41, %v7472_v42 }
 0xba9   : > { %9128 = vmatpush1.bf16.xpose.msra.mxu1 %v10689_v50  ;;  %9086 = vmatprep.subr.bf16.mxu0 %v10680_v8  ;;  %v10762_v50 = vcombine.high %v7469_v18, %v7473_v49  ;;  %v7460_v8 = vld [vmem:[%s12140_s27 + $0x690] sm:$0xff] }
 0xbaa   : > { %9129 = vmatprep.subr.bf16.mxu1 %v10682_v30  ;;  %v7464_v30 = vld [vmem:[%s12140_s27 + $0x6b0] sm:$0xff] }
 0xbab   : > { %v10751_v44 = vcombine.low %v7460_v8, %v7464_v30 }
 0xbb0   : > { %9087 = vmatpush1.bf16.xpose.msra.mxu0 %v10679_v60  ;;  %v10752_v60 = vcombine.high %v7460_v8, %v7464_v30 }
 0xbb1   : > { %9130 = vmatpush1.bf16.xpose.msra.mxu1 %v10681_v54  ;;  %9088 = vmatprep.subr.bf16.mxu0 %v10672_v23  ;;  %v10754_v54 = vcombine.high %v7461_v39, %v7465_v51  ;;  %v7452_v23 = vld [vmem:[%s12140_s27 + $0x650] sm:$0xff] }
 0xbb2   : > { %9131 = vmatprep.subr.bf16.mxu1 %v10674_v13  ;;  %v7456_v13 = vld [vmem:[%s12140_s27 + $0x670] sm:$0xff] }
 0xbb3   : > { %v10743_v14 = vcombine.low %v7452_v23, %v7456_v13 }
 0xbb8   : > { %9089 = vmatpush1.bf16.xpose.msra.mxu0 %v10671_v62  ;;  %v10744_v62 = vcombine.high %v7452_v23, %v7456_v13 }
 0xbb9   : > { %9132 = vmatpush1.bf16.xpose.msra.mxu1 %v10673_v31  ;;  %9090 = vmatprep.subr.bf16.mxu0 %v10792_v0  ;;  %v10746_v31 = vcombine.high %v7453_v48, %v7457_v17  ;;  %v7444_v0 = vld [vmem:[%s12140_s27 + $0x610] sm:$0xff] }
 0xbba   : > { %9133 = vmatprep.subr.bf16.mxu1 %v10794_v22  ;;  %v7448_v22 = vld [vmem:[%s12140_s27 + $0x630] sm:$0xff] }
 0xbc0   : > { %9091 = vmatpush2.bf16.xpose.msra.mxu0 %v10791_v45  ;;  %v10736_v45 = vcombine.high %v7444_v0, %v7448_v22 }
 0xbc1   : > { %9134 = vmatpush2.bf16.xpose.msra.mxu1 %v10793_v36  ;;  %9092 = vmatprep.subr.bf16.mxu0 %v10784_v37  ;;  %v10738_v36 = vcombine.high %v7445_v20, %v7449_v47  ;;  %v10735_v37 = vcombine.low %v7444_v0, %v7448_v22 }
 0xbc2   : > { %9135 = vmatprep.subr.bf16.mxu1 %v10786_v27  ;;  %v10737_v27 = vcombine.low %v7445_v20, %v7449_v47 }
 0xbc8   : > { %9093 = vmatpush2.bf16.xpose.msra.mxu0 %v10783_v28  ;;  %v8854_v28 = vpop.f32.mrf.mxu0 }
 0xbc9   : > { %9136 = vmatpush2.bf16.xpose.msra.mxu1 %v10785_v26  ;;  %9094 = vmatprep.subr.bf16.mxu0 %v10776_v56  ;;  %v8897_v26 = vpop.f32.mrf.mxu1 }
 0xbca   : > { %9137 = vmatprep.subr.bf16.mxu1 %v10778_v5  ;;  %v8856_v56 = vpop.f32.mrf.mxu0 }
 0xbcb   : > { %v8899_v5 = vpop.f32.mrf.mxu1 }
 0xbcc   : > { %v8936_v46 = vpop.f32.mrf.mxu0 }
 0xbcd   : > { %v8979_v63 = vpop.f32.mrf.mxu1 }
 0xbce   : > { %v8938_v57 = vpop.f32.mrf.mxu0 }
 0xbcf   : > { %v8981_v21 = vpop.f32.mrf.mxu1 }
 0xbd0   : > { %9095 = vmatpush2.bf16.xpose.msra.mxu0 %v10775_v32  ;;  %v8940_v32 = vpop.f32.mrf.mxu0 }
 0xbd1   : > { %9138 = vmatpush2.bf16.xpose.msra.mxu1 %v10777_v33  ;;  %9096 = vmatprep.subr.bf16.mxu0 %v10768_v40  ;;  %v8983_v33 = vpop.f32.mrf.mxu1 }
 0xbd2   : > { %9139 = vmatprep.subr.bf16.mxu1 %v10770_v29  ;;  %v8942_v29 = vpop.f32.mrf.mxu0 }
 0xbd3   : > { %v8985_v41 = vpop.f32.mrf.mxu1 }
 0xbd8   : > { %9097 = vmatpush2.bf16.xpose.msra.mxu0 %v10767_v3 }
 0xbd9   : > { %9140 = vmatpush2.bf16.xpose.msra.mxu1 %v10769_v15  ;;  %9098 = vmatprep.subr.bf16.mxu0 %v10760_v38 }
 0xbda   : > { %9141 = vmatprep.subr.bf16.mxu1 %v10762_v50 }
 0xbe0   : > { %9099 = vmatpush2.bf16.xpose.msra.mxu0 %v10759_v7 }
 0xbe1   : > { %9142 = vmatpush2.bf16.xpose.msra.mxu1 %v10761_v58  ;;  %9100 = vmatprep.subr.bf16.mxu0 %v10752_v60 }
 0xbe2   : > { %9143 = vmatprep.subr.bf16.mxu1 %v10754_v54 }
 0xbe8   : > { %9101 = vmatpush2.bf16.xpose.msra.mxu0 %v10751_v44 }
 0xbe9   : > { %9144 = vmatpush2.bf16.xpose.msra.mxu1 %v10753_v55  ;;  %9102 = vmatprep.subr.bf16.mxu0 %v10744_v62 }
 0xbea   : > { %9145 = vmatprep.subr.bf16.mxu1 %v10746_v31 }
 0xbf0   : > { %9103 = vmatpush2.bf16.xpose.msra.mxu0 %v10743_v14 }
 0xbf1   : > { %9146 = vmatpush2.bf16.xpose.msra.mxu1 %v10745_v4  ;;  %9104 = vmatprep.subr.bf16.mxu0 %v10736_v45 }
 0xbf2   : > { %9147 = vmatprep.subr.bf16.mxu1 %v10738_v36 }
 0xbf8   : > { %9105 = vmatpush2.bf16.xpose.msra.mxu0 %v10735_v37 }
 0xbf9   : > { %9148 = vmatpush2.bf16.xpose.msra.mxu1 %v10737_v27 }
 0xbff   : > { %9107 = vmatmul.mubr.bf16.vlgmr.msra.gmra.mxu0 %v13338_v10  ;;  %v7506_v10 = vld [vmem:[%s667_s3] sm:$0xf] }
 0xc00   : > { %9150 = vmatmul.mubr.bf16.vlgmr.msra.gmra.mxu1 %v13466_v9  ;;  %v7523_v9 = vrot.slane %v7506_v10, %v12637_v1  ;;  %v7519_v40 = vrot.slane %v7506_v10, %v12651_v19  ;;  %v7527_v8 = vrot.slane %v7506_v10, %v12656_v24  ;;  %v7531_v58 = vrot.slane %v7506_v10, %v12640_v2 }
 0xc02   : > { %v8853_v42 = vadd.f32 %v8852_v35, %v7523_v9  ;;  %v8851_v3 = vadd.f32 %v8850_v59, %v7519_v40  ;;  %v8857_v38 = vadd.f32 %v8856_v56, %v7523_v9  ;;  %v8855_v51 = vadd.f32 %v8854_v28, %v7519_v40 }
 0xc04   : > { %v8896_v15 = vadd.f32 %v8895_v52, %v8853_v42  ;;  %v8894_v39 = vadd.f32 %v8893_v16, %v8851_v3  ;;  %v8900_v60 = vadd.f32 %v8899_v5, %v8857_v38  ;;  %v8898_v17 = vadd.f32 %v8897_v26, %v8855_v51 }
 0xc06   : > { %v8939_v7 = vadd.f32 %v8938_v57, %v8896_v15  ;;  %v8937_v54 = vadd.f32 %v8936_v46, %v8894_v39  ;;  %v8943_v55 = vadd.f32 %v8942_v29, %v8900_v60  ;;  %v8941_v0 = vadd.f32 %v8940_v32, %v8898_v17 }
 0xc08   : > { %v8982_v44 = vadd.f32 %v8981_v21, %v8939_v7  ;;  %v8980_v31 = vadd.f32 %v8979_v63, %v8937_v54  ;;  %v8986_v45 = vadd.f32 %v8985_v41, %v8943_v55  ;;  %v8984_v52 = vadd.f32 %v8983_v33, %v8941_v0 }
 0xc0a   : > { %v9161_v4 = vadd.f32 %v8982_v44, %v13010_v6  ;;  %v9160_v35 = vadd.f32 %v8980_v31, %v13018_v53  ;;  %v9165_v57 = vadd.f32 %v8986_v45, %v13012_v25  ;;  %v9164_v29 = vadd.f32 %v8984_v52, %v13020_v34  ;;  %v9168_v52 = vld [vmem:[%s671_s13] sm:$0xf]  ;;  %s13900_s13 = sld [smem:[#allocation9_spill]] (!%p10795_p5) }
 0xc0c   : > { %v9170_v63 = vadd.f32 %v9161_v4, %v9160_v35  ;;  %v9175_v3 = vadd.f32 %v9165_v57, %v9164_v29 }
 0xc3f   : > { %v9022_v18 = vpop.f32.mrf.mxu0 }
 0xc40   : > { %v9065_v49 = vpop.f32.mrf.mxu1  ;;  %v9023_v13 = vadd.f32 %v9022_v18, %v7527_v8 }
 0xc41   : > { %v9024_v50 = vpop.f32.mrf.mxu0 }
 0xc42   : > { %v9067_v30 = vpop.f32.mrf.mxu1  ;;  %v9025_v62 = vadd.f32 %v9024_v50, %v7531_v58  ;;  %v9066_v20 = vadd.f32 %v9065_v49, %v9023_v13 }
 0xc43   : > { %v9026_v23 = vpop.f32.mrf.mxu0 }
 0xc44   : > { %v9069_v48 = vpop.f32.mrf.mxu1  ;;  %v9027_v47 = vadd.f32 %v9026_v23, %v7527_v8  ;;  %v9068_v37 = vadd.f32 %v9067_v30, %v9025_v62 }
 0xc45   : > { %v9028_v22 = vpop.f32.mrf.mxu0 }
 0xc46   : > { %v9071_v14 = vpop.f32.mrf.mxu1  ;;  %v9029_v27 = vadd.f32 %v9028_v22, %v7531_v58  ;;  %v9070_v26 = vadd.f32 %v9069_v48, %v9027_v47 }
 0xc48   : > { %v9072_v32 = vadd.f32 %v9071_v14, %v9029_v27 }
 0xcbf   : > { %v9108_v36 = vpop.f32.mrf.mxu0 }
 0xcc0   : > { %v9109_v59 = vadd.f32 %v9108_v36, %v9066_v20  ;;  %v9151_v16 = vpop.f32.mrf.mxu1 }
 0xcc1   : > { %v9110_v28 = vpop.f32.mrf.mxu0 }
 0xcc2   : > { %v9152_v56 = vadd.f32 %v9151_v16, %v9109_v59  ;;  %v9111_v5 = vadd.f32 %v9110_v28, %v9068_v37  ;;  %v9153_v46 = vpop.f32.mrf.mxu1  ;;  %v9169_v28 = vld [vmem:[%s675_s7] sm:$0xf] }
 0xcc3   : > { %v9112_v21 = vpop.f32.mrf.mxu0 }
 0xcc4   : > { %v9162_v6 = vadd.f32 %v9152_v56, %v13022_v43  ;;  %v9154_v10 = vadd.f32 %v9153_v46, %v9111_v5  ;;  %v9113_v9 = vadd.f32 %v9112_v21, %v9070_v26  ;;  %v9155_v40 = vpop.f32.mrf.mxu1  ;;  %v9226_v26 = vrot.slane %v9168_v52, %v12651_v19 }
 0xcc5   : > { %v9114_v41 = vpop.f32.mrf.mxu0  ;;  %v9230_v56 = vrot.slane %v9168_v52, %v12637_v1  ;;  %v9234_v5 = vrot.slane %v9168_v52, %v12656_v24  ;;  %v9238_v46 = vrot.slane %v9168_v52, %v12640_v2  ;;  %v9259_v21 = vrot.slane %v9169_v28, %v12637_v1 }
 0xcc6   : > { %v9163_v53 = vadd.f32 %v9154_v10, %v13014_v61  ;;  %v9156_v33 = vadd.f32 %v9155_v40, %v9113_v9  ;;  %v9115_v42 = vadd.f32 %v9114_v41, %v9072_v32  ;;  %v9171_v18 = vadd.f32 %v9170_v63, %v9162_v6  ;;  %v9157_v49 = vpop.f32.mrf.mxu1 }
 0xcc7   : > { %v9263_v32 = vrot.slane %v9169_v28, %v12656_v24 }
 0xcc8   : > { %v9166_v15 = vadd.f32 %v9156_v33, %v13024_v12  ;;  %v9158_v25 = vadd.f32 %v9157_v49, %v9115_v42  ;;  %v9172_v38 = vadd.f32 %v9171_v18, %v9163_v53 }
 0xcca   : > { %v9167_v50 = vadd.f32 %v9158_v25, %v13016_v11  ;;  %9173 = vadd.xlane.f32.xlu0 %v9172_v38  ;;  %v9176_v43 = vadd.f32 %v9175_v3, %v9166_v15 }
 0xccc   : > { %v9177_v8 = vadd.f32 %v9176_v43, %v9167_v50 }
 0xcce   : > { %9178 = vadd.xlane.f32.xlu1 %v9177_v8 }
 0xd53   : > { %v9174_v30 = vpop.xlane.xlu0 %9173 }
 0xd54   : > { %v9180_v34 = vmul.f32 0.001953125, %v9174_v30 }
 0xd56   : > { %v9182_v39 = vsub.f32 %v9160_v35, %v9180_v34  ;;  %v9183_v51 = vsub.f32 %v9161_v4, %v9180_v34  ;;  %v9184_v61 = vsub.f32 %v9162_v6, %v9180_v34  ;;  %v9185_v58 = vsub.f32 %v9163_v53, %v9180_v34 }
 0xd57   : > { %v9179_v7 = vpop.xlane.xlu1 %9178  ;;  %v9267_v6 = vrot.slane %v9169_v28, %v12640_v2 }
 0xd58   : > { %v9181_v60 = vmul.f32 0.001953125, %v9179_v7  ;;  %v9190_v54 = vmul.f32 %v9182_v39, %v9182_v39  ;;  %v9191_v23 = vmul.f32 %v9183_v51, %v9183_v51  ;;  %v9192_v13 = vmul.f32 %v9184_v61, %v9184_v61 }
 0xd59   : > { %v9193_v11 = vmul.f32 %v9185_v58, %v9185_v58 }
 0xd5a   : > { %v9186_v12 = vsub.f32 %v9164_v29, %v9181_v60  ;;  %v9187_v48 = vsub.f32 %v9165_v57, %v9181_v60  ;;  %v9198_v17 = vadd.f32 %v9191_v23, %v9190_v54  ;;  %v9188_v44 = vsub.f32 %v9166_v15, %v9181_v60 }
 0xd5b   : > { %v9189_v62 = vsub.f32 %v9167_v50, %v9181_v60  ;;  %v9255_v57 = vrot.slane %v9169_v28, %v12651_v19 }
 0xd5c   : > { %v9199_v55 = vadd.f32 %v9198_v17, %v9192_v13  ;;  %v9194_v31 = vmul.f32 %v9186_v12, %v9186_v12  ;;  %v9195_v0 = vmul.f32 %v9187_v48, %v9187_v48  ;;  %v9196_v20 = vmul.f32 %v9188_v44, %v9188_v44 }
 0xd5d   : > { %v9197_v14 = vmul.f32 %v9189_v62, %v9189_v62 }
 0xd5e   : > { %v9200_v22 = vadd.f32 %v9199_v55, %v9193_v11  ;;  %v9203_v47 = vadd.f32 %v9195_v0, %v9194_v31 }
 0xd60   : > { %9201 = vadd.xlane.f32.xlu0 %v9200_v22  ;;  %v9204_v4 = vadd.f32 %v9203_v47, %v9196_v20 }
 0xd62   : > { %v9205_v45 = vadd.f32 %v9204_v4, %v9197_v14 }
 0xd64   : > { %9206 = vadd.xlane.f32.xlu1 %v9205_v45 }
 0xde9   : > { %v9202_v36 = vpop.xlane.xlu0 %9201 }
 0xdea   : > { %v9208_v37 = vmul.f32 0.001953125, %v9202_v36 }
 0xdec   : > { %v9210_v27 = vadd.f32 1e-05, %v9208_v37 }
 0xded   : > { %v9207_v59 = vpop.xlane.xlu1 %9206 }
 0xdee   : > { %11984 = vrsqrt.f32 %v9210_v27  ;;  %v9209_v16 = vmul.f32 0.001953125, %v9207_v59 }
 0xdf0   : > { %v9211_v35 = vadd.f32 1e-05, %v9209_v16 }
 0xdf2   : > { %11986 = vrsqrt.f32 %v9211_v35 }
 0xdfb   : > { %v11985_v63 = vpop.eup %11984 }
 0xdfc   : > { %v9214_v10 = vmul.f32 %v11985_v63, %v9182_v39  ;;  %v9215_v9 = vmul.f32 %v11985_v63, %v9183_v51  ;;  %v9216_v40 = vmul.f32 %v11985_v63, %v9184_v61  ;;  %v9217_v29 = vmul.f32 %v11985_v63, %v9185_v58 }
 0xdfe   : > { %v9243_v41 = vmul.f32 %v9226_v26, %v9214_v10  ;;  %v9244_v53 = vmul.f32 %v9230_v56, %v9215_v9  ;;  %v9245_v33 = vmul.f32 %v9234_v5, %v9216_v40  ;;  %v9246_v42 = vmul.f32 %v9238_v46, %v9217_v29 }
 0xdff   : > { %v11987_v18 = vpop.eup %11986 }
 0xe00   : > { %v13633_v49 = vadd.f32 %v9255_v57, %v9243_v41  ;;  %v9273_v3 = vadd.f32 %v9259_v21, %v9244_v53  ;;  %v13635_v15 = vadd.f32 %v9263_v32, %v9245_v33  ;;  %v9275_v25 = vadd.f32 %v9267_v6, %v9246_v42 }
 0xe01   : > { %v9218_v1 = vmul.f32 %v11987_v18, %v9186_v12  ;;  %v9219_v38 = vmul.f32 %v11987_v18, %v9187_v48  ;;  %v9220_v24 = vmul.f32 %v11987_v18, %v9188_v44  ;;  %v9221_v50 = vmul.f32 %v11987_v18, %v9189_v62 }
 0xe02   : > { %9280 = vst [vmem:[#allocation2 + $0x30] sm:$0xff] %v13633_v49  ;;  %9281 = vst [vmem:[#allocation2] sm:$0xff] %v9273_v3 }
 0xe03   : > { %9282 = vst [vmem:[#allocation2 + $0x18] sm:$0xff] %v13635_v15  ;;  %9283 = vst [vmem:[#allocation2 + $0x10] sm:$0xff] %v9275_v25  ;;  %v9247_v2 = vmul.f32 %v9226_v26, %v9218_v1  ;;  %v9248_v43 = vmul.f32 %v9230_v56, %v9219_v38  ;;  %v9249_v8 = vmul.f32 %v9234_v5, %v9220_v24 }
 0xe04   : > { %v9250_v30 = vmul.f32 %v9238_v46, %v9221_v50  ;;  %9291 = sbr.rel (%p10795_p5) target bundleno = 3867 (0xf1b), region = 88 }
 0xe05   : > { %v13639_v34 = vadd.f32 %v9255_v57, %v9247_v2  ;;  %v13641_v39 = vadd.f32 %v9259_v21, %v9248_v43  ;;  %v13643_v51 = vadd.f32 %v9263_v32, %v9249_v8 }
 0xe06   : > { %v13645_v61 = vadd.f32 %v9267_v6, %v9250_v30 }
 0xe07   : > { %9284 = vst [vmem:[#allocation2 + $0x8] sm:$0xff] %v13639_v34  ;;  %9285 = vst [vmem:[#allocation2 + $0x20] sm:$0xff] %v13641_v39 }
 0xe08   : > { %9286 = vst [vmem:[#allocation2 + $0x28] sm:$0xff] %v13643_v51  ;;  %9287 = vst [vmem:[#allocation2 + $0x38] sm:$0xff] %v13645_v61 }
 0xe09   : > { %v9353_v7 = vld [vmem:[%s13900_s13 + $0x1e8] sm:$0xff]  ;;  %v9355_v58 = vld [vmem:[%s13900_s13 + $0x1f8] sm:$0xff]  ;;  %v9352_v60 = vld [vmem:[%s13900_s13 + $0x1e0] sm:$0xff]  ;;  %9492 = vmatprep.mubr.f32.mxu0 %v9273_v3  ;;  %9567 = vmatprep.mubr.f32.mxu1 %v9275_v25 }
 0xe0a   : > { %v9417_v54 = vmul.f32 0.00044194172, %v9353_v7  ;;  %v9419_v23 = vmul.f32 0.00044194172, %v9355_v58  ;;  %v9416_v13 = vmul.f32 0.00044194172, %v9352_v60 }
 0xe0b   : > { %v9354_v12 = vld [vmem:[%s13900_s13 + $0x1f0] sm:$0xff]  ;;  %v9349_v48 = vld [vmem:[%s13900_s13 + $0x1c8] sm:$0xff]  ;;  %v9351_v17 = vld [vmem:[%s13900_s13 + $0x1d8] sm:$0xff] }
 0xe0c   : > { %9428 = vmatprep.subr.mxu0 %v9417_v54  ;;  %9503 = vmatprep.subr.mxu1 %v9419_v23  ;;  %v9418_v44 = vmul.f32 0.00044194172, %v9354_v12  ;;  %v9413_v11 = vmul.f32 0.00044194172, %v9349_v48  ;;  %v9415_v55 = vmul.f32 0.00044194172, %v9351_v17 }
 0xe0d   : > { %9429 = vmatpush1.xpose.msra.mxu0 %v9416_v13  ;;  %v9348_v62 = vld [vmem:[%s13900_s13 + $0x1c0] sm:$0xff]  ;;  %v9350_v31 = vld [vmem:[%s13900_s13 + $0x1d0] sm:$0xff]  ;;  %v9345_v0 = vld [vmem:[%s13900_s13 + $0x1a8] sm:$0xff] }
 0xe0e   : > { %9504 = vmatpush1.xpose.msra.mxu1 %v9418_v44  ;;  %9430 = vmatprep.subr.mxu0 %v9413_v11  ;;  %v9412_v22 = vmul.f32 0.00044194172, %v9348_v62  ;;  %v9414_v20 = vmul.f32 0.00044194172, %v9350_v31  ;;  %v9409_v47 = vmul.f32 0.00044194172, %v9345_v0 }
 0xe0f   : > { %9505 = vmatprep.subr.mxu1 %v9415_v55  ;;  %v9347_v14 = vld [vmem:[%s13900_s13 + $0x1b8] sm:$0xff]  ;;  %v9344_v4 = vld [vmem:[%s13900_s13 + $0x1a0] sm:$0xff]  ;;  %v9346_v45 = vld [vmem:[%s13900_s13 + $0x1b0] sm:$0xff] }
 0xe10   : > { %v9411_v36 = vmul.f32 0.00044194172, %v9347_v14  ;;  %v9408_v37 = vmul.f32 0.00044194172, %v9344_v4  ;;  %v9341_v27 = vld [vmem:[%s13900_s13 + $0x188] sm:$0xff]  ;;  %v9343_v59 = vld [vmem:[%s13900_s13 + $0x198] sm:$0xff] }
 0xe11   : > { %9431 = vmatpush1.xpose.msra.mxu0 %v9412_v22  ;;  %v9410_v16 = vmul.f32 0.00044194172, %v9346_v45  ;;  %v9405_v35 = vmul.f32 0.00044194172, %v9341_v27  ;;  %v9340_v52 = vld [vmem:[%s13900_s13 + $0x180] sm:$0xff]  ;;  %v9342_v26 = vld [vmem:[%s13900_s13 + $0x190] sm:$0xff] }
 0xe12   : > { %9506 = vmatpush1.xpose.msra.mxu1 %v9414_v20  ;;  %9432 = vmatprep.subr.mxu0 %v9409_v47  ;;  %v9407_v28 = vmul.f32 0.00044194172, %v9343_v59  ;;  %v9337_v56 = vld [vmem:[%s13900_s13 + $0x168] sm:$0xff]  ;;  %v9339_v5 = vld [vmem:[%s13900_s13 + $0x178] sm:$0xff]  ;;  %v9404_v46 = vmul.f32 0.00044194172, %v9340_v52 }
 0xe13   : > { %9507 = vmatprep.subr.mxu1 %v9411_v36  ;;  %v9406_v63 = vmul.f32 0.00044194172, %v9342_v26  ;;  %v9401_v57 = vmul.f32 0.00044194172, %v9337_v56  ;;  %v9336_v21 = vld [vmem:[%s13900_s13 + $0x160] sm:$0xff]  ;;  %v9338_v6 = vld [vmem:[%s13900_s13 + $0x170] sm:$0xff] }
 0xe14   : > { %v9403_v32 = vmul.f32 0.00044194172, %v9339_v5  ;;  %v9333_v10 = vld [vmem:[%s13900_s13 + $0x148] sm:$0xff]  ;;  %v9335_v9 = vld [vmem:[%s13900_s13 + $0x158] sm:$0xff]  ;;  %v9400_v40 = vmul.f32 0.00044194172, %v9336_v21 }
 0xe15   : > { %9433 = vmatpush1.xpose.msra.mxu0 %v9408_v37  ;;  %v9402_v29 = vmul.f32 0.00044194172, %v9338_v6  ;;  %v9397_v41 = vmul.f32 0.00044194172, %v9333_v10  ;;  %v9332_v53 = vld [vmem:[%s13900_s13 + $0x140] sm:$0xff]  ;;  %v9334_v42 = vld [vmem:[%s13900_s13 + $0x150] sm:$0xff] }
 0xe16   : > { %9508 = vmatpush1.xpose.msra.mxu1 %v9410_v16  ;;  %9434 = vmatprep.subr.mxu0 %v9405_v35  ;;  %v9399_v33 = vmul.f32 0.00044194172, %v9335_v9  ;;  %v9329_v18 = vld [vmem:[%s13900_s13 + $0x128] sm:$0xff]  ;;  %v9331_v3 = vld [vmem:[%s13900_s13 + $0x138] sm:$0xff]  ;;  %v9396_v25 = vmul.f32 0.00044194172, %v9332_v53 }
 0xe17   : > { %9509 = vmatprep.subr.mxu1 %v9407_v28  ;;  %v9398_v1 = vmul.f32 0.00044194172, %v9334_v42  ;;  %v9393_v38 = vmul.f32 0.00044194172, %v9329_v18  ;;  %v9328_v24 = vld [vmem:[%s13900_s13 + $0x120] sm:$0xff]  ;;  %v9330_v2 = vld [vmem:[%s13900_s13 + $0x130] sm:$0xff] }
 0xe18   : > { %v9395_v50 = vmul.f32 0.00044194172, %v9331_v3  ;;  %v9325_v43 = vld [vmem:[%s13900_s13 + $0x108] sm:$0xff]  ;;  %v9327_v8 = vld [vmem:[%s13900_s13 + $0x118] sm:$0xff]  ;;  %v9392_v30 = vmul.f32 0.00044194172, %v9328_v24 }
 0xe19   : > { %9435 = vmatpush1.xpose.msra.mxu0 %v9404_v46  ;;  %v9394_v7 = vmul.f32 0.00044194172, %v9330_v2  ;;  %v9389_v58 = vmul.f32 0.00044194172, %v9325_v43  ;;  %v9324_v60 = vld [vmem:[%s13900_s13 + $0x100] sm:$0xff]  ;;  %v9326_v23 = vld [vmem:[%s13900_s13 + $0x110] sm:$0xff] }
 0xe1a   : > { %9510 = vmatpush1.xpose.msra.mxu1 %v9406_v63  ;;  %9436 = vmatprep.subr.mxu0 %v9401_v57  ;;  %v9391_v54 = vmul.f32 0.00044194172, %v9327_v8  ;;  %v9321_v13 = vld [vmem:[%s13900_s13 + $0xe8] sm:$0xff]  ;;  %v9323_v12 = vld [vmem:[%s13900_s13 + $0xf8] sm:$0xff]  ;;  %v9388_v48 = vmul.f32 0.00044194172, %v9324_v60 }
 0xe1b   : > { %9511 = vmatprep.subr.mxu1 %v9403_v32  ;;  %v9390_v17 = vmul.f32 0.00044194172, %v9326_v23  ;;  %v9385_v44 = vmul.f32 0.00044194172, %v9321_v13  ;;  %v9320_v11 = vld [vmem:[%s13900_s13 + $0xe0] sm:$0xff]  ;;  %v9322_v62 = vld [vmem:[%s13900_s13 + $0xf0] sm:$0xff] }
 0xe1c   : > { %v9387_v55 = vmul.f32 0.00044194172, %v9323_v12  ;;  %v9317_v31 = vld [vmem:[%s13900_s13 + $0xc8] sm:$0xff]  ;;  %v9319_v0 = vld [vmem:[%s13900_s13 + $0xd8] sm:$0xff]  ;;  %v9384_v22 = vmul.f32 0.00044194172, %v9320_v11 }
 0xe1d   : > { %9437 = vmatpush1.xpose.msra.mxu0 %v9400_v40  ;;  %v9386_v20 = vmul.f32 0.00044194172, %v9322_v62  ;;  %v9381_v47 = vmul.f32 0.00044194172, %v9317_v31  ;;  %v9316_v14 = vld [vmem:[%s13900_s13 + $0xc0] sm:$0xff]  ;;  %v9318_v45 = vld [vmem:[%s13900_s13 + $0xd0] sm:$0xff] }
 0xe1e   : > { %9512 = vmatpush1.xpose.msra.mxu1 %v9402_v29  ;;  %9438 = vmatprep.subr.mxu0 %v9397_v41  ;;  %v9383_v4 = vmul.f32 0.00044194172, %v9319_v0  ;;  %v9313_v36 = vld [vmem:[%s13900_s13 + $0xa8] sm:$0xff]  ;;  %v9315_v37 = vld [vmem:[%s13900_s13 + $0xb8] sm:$0xff]  ;;  %v9380_v27 = vmul.f32 0.00044194172, %v9316_v14 }
 0xe1f   : > { %9513 = vmatprep.subr.mxu1 %v9399_v33  ;;  %v9382_v59 = vmul.f32 0.00044194172, %v9318_v45  ;;  %v9377_v16 = vmul.f32 0.00044194172, %v9313_v36  ;;  %v9312_v35 = vld [vmem:[%s13900_s13 + $0xa0] sm:$0xff]  ;;  %v9314_v28 = vld [vmem:[%s13900_s13 + $0xb0] sm:$0xff] }
 0xe20   : > { %v9379_v52 = vmul.f32 0.00044194172, %v9315_v37  ;;  %v9309_v26 = vld [vmem:[%s13900_s13 + $0x88] sm:$0xff]  ;;  %v9311_v56 = vld [vmem:[%s13900_s13 + $0x98] sm:$0xff]  ;;  %v9376_v5 = vmul.f32 0.00044194172, %v9312_v35 }
 0xe21   : > { %9439 = vmatpush1.xpose.msra.mxu0 %v9396_v25  ;;  %v9378_v46 = vmul.f32 0.00044194172, %v9314_v28  ;;  %v9373_v63 = vmul.f32 0.00044194172, %v9309_v26  ;;  %v9308_v57 = vld [vmem:[%s13900_s13 + $0x80] sm:$0xff]  ;;  %v9310_v32 = vld [vmem:[%s13900_s13 + $0x90] sm:$0xff] }
 0xe22   : > { %9514 = vmatpush1.xpose.msra.mxu1 %v9398_v1  ;;  %9440 = vmatprep.subr.mxu0 %v9393_v38  ;;  %v9375_v21 = vmul.f32 0.00044194172, %v9311_v56  ;;  %v9305_v6 = vld [vmem:[%s13900_s13 + $0x68] sm:$0xff]  ;;  %v9307_v10 = vld [vmem:[%s13900_s13 + $0x78] sm:$0xff]  ;;  %v9372_v9 = vmul.f32 0.00044194172, %v9308_v57 }
 0xe23   : > { %9515 = vmatprep.subr.mxu1 %v9395_v50  ;;  %v9374_v40 = vmul.f32 0.00044194172, %v9310_v32  ;;  %v9369_v29 = vmul.f32 0.00044194172, %v9305_v6  ;;  %v9304_v41 = vld [vmem:[%s13900_s13 + $0x60] sm:$0xff]  ;;  %v9306_v33 = vld [vmem:[%s13900_s13 + $0x70] sm:$0xff] }
 0xe24   : > { %v9371_v53 = vmul.f32 0.00044194172, %v9307_v10  ;;  %v9301_v42 = vld [vmem:[%s13900_s13 + $0x48] sm:$0xff]  ;;  %v9303_v18 = vld [vmem:[%s13900_s13 + $0x58] sm:$0xff]  ;;  %v9368_v3 = vmul.f32 0.00044194172, %v9304_v41 }
 0xe25   : > { %9441 = vmatpush1.xpose.msra.mxu0 %v9392_v30  ;;  %v9370_v25 = vmul.f32 0.00044194172, %v9306_v33  ;;  %v9365_v1 = vmul.f32 0.00044194172, %v9301_v42  ;;  %v9300_v38 = vld [vmem:[%s13900_s13 + $0x40] sm:$0xff]  ;;  %v9302_v50 = vld [vmem:[%s13900_s13 + $0x50] sm:$0xff] }
 0xe26   : > { %9516 = vmatpush1.xpose.msra.mxu1 %v9394_v7  ;;  %9442 = vmatprep.subr.mxu0 %v9389_v58  ;;  %v9367_v24 = vmul.f32 0.00044194172, %v9303_v18  ;;  %v9297_v2 = vld [vmem:[%s13900_s13 + $0x28] sm:$0xff]  ;;  %v9299_v43 = vld [vmem:[%s13900_s13 + $0x38] sm:$0xff]  ;;  %v9364_v8 = vmul.f32 0.00044194172, %v9300_v38 }
 0xe27   : > { %9517 = vmatprep.subr.mxu1 %v9391_v54  ;;  %v9366_v30 = vmul.f32 0.00044194172, %v9302_v50  ;;  %v9361_v7 = vmul.f32 0.00044194172, %v9297_v2  ;;  %v9296_v58 = vld [vmem:[%s13900_s13 + $0x20] sm:$0xff]  ;;  %v9298_v54 = vld [vmem:[%s13900_s13 + $0x30] sm:$0xff] }
 0xe28   : > { %v9363_v60 = vmul.f32 0.00044194172, %v9299_v43  ;;  %v9293_v23 = vld [vmem:[%s13900_s13 + $0x8] sm:$0xff]  ;;  %v9295_v13 = vld [vmem:[%s13900_s13 + $0x18] sm:$0xff]  ;;  %v9360_v12 = vmul.f32 0.00044194172, %v9296_v58 }
 0xe29   : > { %9443 = vmatpush1.xpose.msra.mxu0 %v9388_v48  ;;  %v9362_v48 = vmul.f32 0.00044194172, %v9298_v54  ;;  %v9359_v11 = vmul.f32 0.00044194172, %v9295_v13  ;;  %v9420_v0 = vld [vmem:[%s13901_s18] sm:$0x1] }
 0xe2a   : > { %9518 = vmatpush1.xpose.msra.mxu1 %v9390_v17  ;;  %9444 = vmatprep.subr.mxu0 %v9385_v44  ;;  %v9357_v17 = vmul.f32 0.00044194172, %v9293_v23  ;;  %v9292_v44 = vld [vmem:[%s13900_s13] sm:$0xff] }
 0xe2b   : > { %9519 = vmatprep.subr.mxu1 %v9387_v55  ;;  %v9294_v55 = vld [vmem:[%s13900_s13 + $0x10] sm:$0xff]  ;;  %v9356_v62 = vmul.f32 0.00044194172, %v9292_v44 }
 0xe2c   : > { %v9358_v31 = vmul.f32 0.00044194172, %v9294_v55 }
 0xe2d   : > { %9445 = vmatpush1.xpose.msra.mxu0 %v9384_v22  ;;  %v9421_v22 = vmul.f32 0.01, %v9420_v0 }
 0xe2e   : > { %9520 = vmatpush1.xpose.msra.mxu1 %v9386_v20  ;;  %9446 = vmatprep.subr.mxu0 %v9381_v47 }
 0xe2f   : > { %9521 = vmatprep.subr.mxu1 %v9383_v4  ;;  %v9426_v20 = vrot.slane %v9421_v22, %v12651_v19 }
 0xe31   : > { %9447 = vmatpush1.xpose.msra.mxu0 %v9380_v27 }
 0xe32   : > { %9522 = vmatpush1.xpose.msra.mxu1 %v9382_v59  ;;  %9448 = vmatprep.subr.mxu0 %v9377_v16 }
 0xe33   : > { %9523 = vmatprep.subr.mxu1 %v9379_v52 }
 0xe35   : > { %9449 = vmatpush1.xpose.msra.mxu0 %v9376_v5 }
 0xe36   : > { %9524 = vmatpush1.xpose.msra.mxu1 %v9378_v46  ;;  %9450 = vmatprep.subr.mxu0 %v9373_v63 }
 0xe37   : > { %9525 = vmatprep.subr.mxu1 %v9375_v21 }
 0xe39   : > { %9451 = vmatpush1.xpose.msra.mxu0 %v9372_v9 }
 0xe3a   : > { %9526 = vmatpush1.xpose.msra.mxu1 %v9374_v40  ;;  %9452 = vmatprep.subr.mxu0 %v9369_v29 }
 0xe3b   : > { %9527 = vmatprep.subr.mxu1 %v9371_v53 }
 0xe3d   : > { %9453 = vmatpush1.xpose.msra.mxu0 %v9368_v3 }
 0xe3e   : > { %9528 = vmatpush1.xpose.msra.mxu1 %v9370_v25  ;;  %9454 = vmatprep.subr.mxu0 %v9365_v1 }
 0xe3f   : > { %9529 = vmatprep.subr.mxu1 %v9367_v24 }
 0xe41   : > { %9455 = vmatpush1.xpose.msra.mxu0 %v9364_v8 }
 0xe42   : > { %9530 = vmatpush1.xpose.msra.mxu1 %v9366_v30  ;;  %9456 = vmatprep.subr.mxu0 %v9361_v7 }
 0xe43   : > { %9531 = vmatprep.subr.mxu1 %v9363_v60 }
 0xe45   : > { %9457 = vmatpush1.xpose.msra.mxu0 %v9360_v12 }
 0xe46   : > { %9532 = vmatpush1.xpose.msra.mxu1 %v9362_v48  ;;  %9458 = vmatprep.subr.mxu0 %v9357_v17 }
 0xe47   : > { %9533 = vmatprep.subr.mxu1 %v9359_v11 }
 0xe49   : > { %9459 = vmatpush1.xpose.msra.mxu0 %v9356_v62 }
 0xe4a   : > { %9534 = vmatpush1.xpose.msra.mxu1 %v9358_v31 }
 0xe4c   : > { %9493 = vmatmul.mubr.f32.vlgmr.msra.gmra.mxu0 %v13633_v49 }
 0xe4d   : > { %9568 = vmatmul.mubr.f32.vlgmr.msra.gmra.mxu1 %v13635_v15  ;;  %9497 = vmatprep.mubr.f32.mxu0 %v13641_v39 }
 0xe4e   : > { %9572 = vmatprep.mubr.f32.mxu1 %v13645_v61 }
 0xe50   : > { %9498 = vmatmul.mubr.f32.gmra.mxu0 %v13639_v34 }
 0xe51   : > { %9573 = vmatmul.mubr.f32.gmra.mxu1 %v13643_v51 }
 0xf0c   : > { %v9494_v47 = vpop.f32.mrf.mxu0 }
 0xf0d   : > { %v9495_v14 = vadd.f32 %v9494_v47, %v9426_v20  ;;  %v9569_v49 = vpop.f32.mrf.mxu1 }
 0xf0e   : > { %v9496_v4 = vpop.f32.mrf.mxu0 }
 0xf0f   : > { %v9570_v15 = vadd.f32 %v9569_v49, %v9495_v14  ;;  %v9571_v45 = vpop.f32.mrf.mxu1 }
 0xf10   : > { %v9499_v39 = vpop.f32.mrf.mxu0 }
 0xf11   : > { %vm9578_vm1 = vcmp.ge.f32.partialorder %v9570_v15, 0.0  ;;  %v9580_v61 = vmul.f32 0.2, %v9570_v15  ;;  %v9500_v36 = vadd.f32 %v9499_v39, %v9426_v20  ;;  %v9574_v34 = vpop.f32.mrf.mxu1 }
 0xf12   : > { %v9501_v37 = vpop.f32.mrf.mxu0 }
 0xf13   : > { %v9582_v51 = vsel %vm9578_vm1, %v9570_v15, %v9580_v61  ;;  %v9575_v27 = vadd.f32 %v9574_v34, %v9500_v36  ;;  %v9576_v59 = vpop.f32.mrf.mxu1 }
 0xf14   : > { %v9584_v16 = vmul.f32 1.4142135, %v9582_v51 }
 0xf15   : > { %vm9579_vm2 = vcmp.ge.f32.partialorder %v9575_v27, 0.0  ;;  %v9581_v35 = vmul.f32 0.2, %v9575_v27 }
 0xf16   : > { %9586 = vst [vmem:[%s13902_s19] sm:$0xff] %v9584_v16 }
 0xf17   : > { %v9583_v19 = vsel %vm9579_vm2, %v9575_v27, %v9581_v35 }
 0xf18   : > { %v9585_v52 = vmul.f32 1.4142135, %v9583_v19 }
 0xf1a   : > { %9587 = vst [vmem:[%s13902_s19 + $0x8] sm:$0xff] %v9585_v52 }
 0xf1b PF: > { %s13903_s16 = sld [smem:[#allocation3_spill]] }
 0xf21   : > { %s25_s18 = sadd.s32 1, %s13903_s16  }
 0xf22   : > { %p22_p6 = scmp.ge.s32.totalorder %s25_s18, 5  }
 0xf24   :  { %24 = sbr.rel (!%p22_p6) target bundleno = 8 (0x8), region = 147 }

</bundles_post_ra>
